<compile_context>
chip_gen: v7x
topology: tpu7x:2x2x1
jax: 0.10.0
libtpu: 0.0.40
codegen_flags: <defaults>
</compile_context>

<pallas_src>
import jax
import jax.numpy as jnp
from jax.experimental import pallas as pl
from jax.experimental.pallas import tpu as pltpu


def _leaky_relu(v, slope=0.1):
    return jnp.where(v > 0, v, slope * v)


# --------------------------------------------------------------------------- #
# Fused kernel: encoder (e1..e3) + decoder (d1..d3) + sigmoid, single grid step
# --------------------------------------------------------------------------- #
def autoencoder_kernel(x_ref, w1_ref, w2_ref, w3_ref, w4_ref, w5_ref, w6_ref,
                       recon_ref, latent_ref):
    bf16 = jnp.bfloat16
    f32 = jnp.float32

    x = x_ref[...].astype(bf16)                               # cast in-kernel
    h1 = _leaky_relu(jnp.dot(x, w1_ref[...], preferred_element_type=f32))
    h2 = _leaky_relu(jnp.dot(h1.astype(bf16), w2_ref[...],
                             preferred_element_type=f32))
    lat = _leaky_relu(jnp.dot(h2.astype(bf16), w3_ref[...],
                              preferred_element_type=f32))
    h4 = _leaky_relu(jnp.dot(lat.astype(bf16), w4_ref[...],
                             preferred_element_type=f32))
    h5 = _leaky_relu(jnp.dot(h4.astype(bf16), w5_ref[...],
                             preferred_element_type=f32))
    y = jnp.dot(h5.astype(bf16), w6_ref[...], preferred_element_type=f32)

    # sigmoid(y) = 1 / (1 + exp(-y)); exp + approx-reciprocal both on the EUP.
    e = jnp.exp(-y)
    recon_ref[...] = pl.reciprocal(1.0 + e, approx=True)
    latent_ref[...] = lat


# --------------------------------------------------------------------------- #
# Wrapper
# --------------------------------------------------------------------------- #
def make_autoencoder(weights):
    """weights: list of 6 (in_features, out_features) f32 matrices
    (transpose of PyTorch nn.Linear.weight).  Returns (jitted forward, params)."""
    w1, w2, w3, w4, w5, w6 = weights
    n_in = w1.shape[0]
    d1 = w1.shape[1]            # n_init // 59
    d2 = w2.shape[1]            # d1 // 8
    n_latent = w3.shape[1]
    n_out = w6.shape[1]         # reconstruction width (== n_init)

    # One-time prep: all weights -> bf16 (f32 MXU accumulation in-kernel).
    params = tuple(w.astype(jnp.bfloat16) for w in (w1, w2, w3, w4, w5, w6))

    vmem_bytes = 16 << 20       # actual footprint ~4.5 MiB; safe on v5e/v6e/v7x

    @jax.jit
    def forward(x, params):
        w1p, w2p, w3p, w4p, w5p, w6p = params
        B = x.shape[0]

        recon, latent = pl.pallas_call(
            autoencoder_kernel,
            out_shape=(jax.ShapeDtypeStruct((B, n_out), jnp.float32),
                       jax.ShapeDtypeStruct((B, n_latent), jnp.float32)),
            grid_spec=pltpu.PrefetchScalarGridSpec(
                num_scalar_prefetch=0,
                grid=(1,),
                in_specs=[
                    pl.BlockSpec((B, n_in), lambda i: (0, 0)),        # x (f32)
                    pl.BlockSpec((n_in, d1), lambda i: (0, 0)),       # W1 bf16
                    pl.BlockSpec((d1, d2), lambda i: (0, 0)),         # W2 bf16
                    pl.BlockSpec((d2, n_latent), lambda i: (0, 0)),   # W3 bf16
                    pl.BlockSpec((n_latent, d2), lambda i: (0, 0)),   # W4 bf16
                    pl.BlockSpec((d2, d1), lambda i: (0, 0)),         # W5 bf16
                    pl.BlockSpec((d1, n_out), lambda i: (0, 0)),      # W6 bf16
                ],
                out_specs=(
                    pl.BlockSpec((B, n_out), lambda i: (0, 0)),       # recon
                    pl.BlockSpec((B, n_latent), lambda i: (0, 0)),    # latent
                ),
            ),
            compiler_params=pltpu.CompilerParams(
                dimension_semantics=("arbitrary",),
                vmem_limit_bytes=vmem_bytes),
        )(x, w1p, w2p, w3p, w4p, w5p, w6p)

        return recon, latent

    return forward, params


# --------------------------------------------------------------------------- #
# Init + reference
# --------------------------------------------------------------------------- #
def init_weights(key, n_init, n_latent):
    """Deterministic init; shapes match AutoEncoder.__init__ (stored transposed)."""
    d1 = n_init // 59
    d2 = d1 // 8
    dims = [
        (n_init, d1),    # e1
        (d1, d2),        # e2
        (d2, n_latent),  # e3
        (n_latent, d2),  # d1
        (d2, d1),        # d2
        (d1, n_init),    # d3
    ]
    keys = jax.random.split(key, len(dims))
    weights = []
    for k, (fi, fo) in zip(keys, dims):
        scale = 1.0 / jnp.sqrt(jnp.float32(fi))
        weights.append(jax.random.uniform(k, (fi, fo), jnp.float32,
                                          minval=-scale, maxval=scale))
    return weights


def reference_forward(x, weights):
    """Pure-JAX reference mirroring the kernel numerics (bf16 weights/activations,
    f32 accumulation, exact sigmoid)."""
    bf = jnp.bfloat16
    f32 = jnp.float32
    w1, w2, w3, w4, w5, w6 = [w.astype(bf) for w in weights]
    h1 = _leaky_relu(jnp.dot(x.astype(bf), w1, preferred_element_type=f32))
    h2 = _leaky_relu(jnp.dot(h1.astype(bf), w2, preferred_element_type=f32))
    lat = _leaky_relu(jnp.dot(h2.astype(bf), w3, preferred_element_type=f32))
    h4 = _leaky_relu(jnp.dot(lat.astype(bf), w4, preferred_element_type=f32))
    h5 = _leaky_relu(jnp.dot(h4.astype(bf), w5, preferred_element_type=f32))
    y = jnp.dot(h5.astype(bf), w6, preferred_element_type=f32)
    return jax.nn.sigmoid(y), lat


if __name__ == "__main__":
    # n_init must be a multiple of 59*8 so the decoder output width == n_init.
    # 7552 = 59*128 -> e1: 128 -> e2: 16 -> latent: 8; W1/W6 are single unpadded
    # VMEM-resident blocks.
    n_init = 59 * 8 * 16   # 7552
    n_latent = 8
    batch = 8

    key = jax.random.PRNGKey(0)
    k_x, k_w = jax.random.split(key)
    x = jax.random.normal(k_x, (batch, n_init), jnp.float32)
    weights = init_weights(k_w, n_init, n_latent)

    forward, params = make_autoencoder(weights)
    recon, latent = forward(x, params)
    recon = jax.block_until_ready(recon)
    latent = jax.block_until_ready(latent)

    ref_recon, ref_latent = reference_forward(x, weights)
    assert recon.shape == (batch, n_init)
    assert latent.shape == (batch, n_latent)
    # bf16 weights/activations + approx reciprocal -> ~1e-2 tolerance.
    assert jnp.allclose(recon, ref_recon, atol=2e-2, rtol=2e-2), \
        float(jnp.max(jnp.abs(recon - ref_recon)))
    assert jnp.allclose(latent, ref_latent, atol=2e-2, rtol=2e-2), \
        float(jnp.max(jnp.abs(latent - ref_latent)))

    print("KERNEL_OK")
</pallas_src>

<mosaic_0001>
module attributes {stable_mosaic.version = 11 : i64} {
  func.func @autoencoder_kernel(%arg0: i32, %arg1: memref<8x7552xf32, #tpu.memory_space<vmem>>, %arg2: memref<7552x128xbf16, #tpu.memory_space<vmem>>, %arg3: memref<128x16xbf16, #tpu.memory_space<vmem>>, %arg4: memref<16x8xbf16, #tpu.memory_space<vmem>>, %arg5: memref<8x16xbf16, #tpu.memory_space<vmem>>, %arg6: memref<16x128xbf16, #tpu.memory_space<vmem>>, %arg7: memref<128x7552xbf16, #tpu.memory_space<vmem>>, %arg8: memref<8x7552xf32, #tpu.memory_space<vmem>>, %arg9: memref<8x8xf32, #tpu.memory_space<vmem>>) attributes {dimension_semantics = [#tpu.dimension_semantics<arbitrary>], iteration_bounds = array<i64: 1>, scalar_prefetch = 0 : i64, scratch_operands = 0 : i64, tpu.core_type = #tpu.core_type<tc>, window_params = [{pipeline_mode = #tpu.pipeline_mode<synchronous>, transform_indices = @transform_0, window_bounds = array<i64: 8, 7552>}, {pipeline_mode = #tpu.pipeline_mode<synchronous>, transform_indices = @transform_1, window_bounds = array<i64: 7552, 128>}, {pipeline_mode = #tpu.pipeline_mode<synchronous>, transform_indices = @transform_2, window_bounds = array<i64: 128, 16>}, {pipeline_mode = #tpu.pipeline_mode<synchronous>, transform_indices = @transform_3, window_bounds = array<i64: 16, 8>}, {pipeline_mode = #tpu.pipeline_mode<synchronous>, transform_indices = @transform_4, window_bounds = array<i64: 8, 16>}, {pipeline_mode = #tpu.pipeline_mode<synchronous>, transform_indices = @transform_5, window_bounds = array<i64: 16, 128>}, {pipeline_mode = #tpu.pipeline_mode<synchronous>, transform_indices = @transform_6, window_bounds = array<i64: 128, 7552>}, {pipeline_mode = #tpu.pipeline_mode<synchronous>, transform_indices = @transform_7, window_bounds = array<i64: 8, 7552>}, {pipeline_mode = #tpu.pipeline_mode<synchronous>, transform_indices = @transform_8, window_bounds = array<i64: 8, 8>}]} {
    %c0 = arith.constant 0 : index
    %c0_0 = arith.constant 0 : index
    %0 = vector.load %arg1[%c0, %c0_0] : memref<8x7552xf32, #tpu.memory_space<vmem>>, vector<8x7552xf32>
    %1 = arith.truncf %0 : vector<8x7552xf32> to vector<8x7552xbf16>
    %c0_1 = arith.constant 0 : index
    %c0_2 = arith.constant 0 : index
    %2 = vector.load %arg2[%c0_1, %c0_2] : memref<7552x128xbf16, #tpu.memory_space<vmem>>, vector<7552x128xbf16>
    %cst = arith.constant dense<0.000000e+00> : vector<8x128xf32>
    %3 = tpu.matmul %1, %2, %cst {dimension_numbers = #tpu.dot_dimension_numbers<[1], [0], [0], [1], [0, 0, 1, 1], [], []>} : vector<8x7552xbf16>, vector<7552x128xbf16>, vector<8x128xf32> -> vector<8x128xf32>
    %cst_3 = arith.constant 0.000000e+00 : f32
    %4 = vector.broadcast %cst_3 : f32 to vector<8x128xf32>
    %5 = arith.cmpf ogt, %3, %4 : vector<8x128xf32>
    %cst_4 = arith.constant 1.000000e-01 : f32
    %6 = vector.broadcast %cst_4 : f32 to vector<8x128xf32>
    %7 = arith.mulf %6, %3 : vector<8x128xf32>
    %8 = arith.select %5, %3, %7 : vector<8x128xi1>, vector<8x128xf32>
    %9 = arith.truncf %8 : vector<8x128xf32> to vector<8x128xbf16>
    %c0_5 = arith.constant 0 : index
    %c0_6 = arith.constant 0 : index
    %10 = vector.load %arg3[%c0_5, %c0_6] : memref<128x16xbf16, #tpu.memory_space<vmem>>, vector<128x16xbf16>
    %cst_7 = arith.constant dense<0.000000e+00> : vector<8x16xf32>
    %11 = tpu.matmul %9, %10, %cst_7 {dimension_numbers = #tpu.dot_dimension_numbers<[1], [0], [0], [1], [0, 0, 1, 1], [], []>} : vector<8x128xbf16>, vector<128x16xbf16>, vector<8x16xf32> -> vector<8x16xf32>
    %cst_8 = arith.constant 0.000000e+00 : f32
    %12 = vector.broadcast %cst_8 : f32 to vector<8x16xf32>
    %13 = arith.cmpf ogt, %11, %12 : vector<8x16xf32>
    %cst_9 = arith.constant 1.000000e-01 : f32
    %14 = vector.broadcast %cst_9 : f32 to vector<8x16xf32>
    %15 = arith.mulf %14, %11 : vector<8x16xf32>
    %16 = arith.select %13, %11, %15 : vector<8x16xi1>, vector<8x16xf32>
    %17 = arith.truncf %16 : vector<8x16xf32> to vector<8x16xbf16>
    %c0_10 = arith.constant 0 : index
    %c0_11 = arith.constant 0 : index
    %18 = vector.load %arg4[%c0_10, %c0_11] : memref<16x8xbf16, #tpu.memory_space<vmem>>, vector<16x8xbf16>
    %cst_12 = arith.constant dense<0.000000e+00> : vector<8x8xf32>
    %19 = tpu.matmul %17, %18, %cst_12 {dimension_numbers = #tpu.dot_dimension_numbers<[1], [0], [0], [1], [0, 0, 1, 1], [], []>} : vector<8x16xbf16>, vector<16x8xbf16>, vector<8x8xf32> -> vector<8x8xf32>
    %cst_13 = arith.constant 0.000000e+00 : f32
    %20 = vector.broadcast %cst_13 : f32 to vector<8x8xf32>
    %21 = arith.cmpf ogt, %19, %20 : vector<8x8xf32>
    %cst_14 = arith.constant 1.000000e-01 : f32
    %22 = vector.broadcast %cst_14 : f32 to vector<8x8xf32>
    %23 = arith.mulf %22, %19 : vector<8x8xf32>
    %24 = arith.select %21, %19, %23 : vector<8x8xi1>, vector<8x8xf32>
    %25 = arith.truncf %24 : vector<8x8xf32> to vector<8x8xbf16>
    %c0_15 = arith.constant 0 : index
    %c0_16 = arith.constant 0 : index
    %26 = vector.load %arg5[%c0_15, %c0_16] : memref<8x16xbf16, #tpu.memory_space<vmem>>, vector<8x16xbf16>
    %cst_17 = arith.constant dense<0.000000e+00> : vector<8x16xf32>
    %27 = tpu.matmul %25, %26, %cst_17 {dimension_numbers = #tpu.dot_dimension_numbers<[1], [0], [0], [1], [0, 0, 1, 1], [], []>} : vector<8x8xbf16>, vector<8x16xbf16>, vector<8x16xf32> -> vector<8x16xf32>
    %cst_18 = arith.constant 0.000000e+00 : f32
    %28 = vector.broadcast %cst_18 : f32 to vector<8x16xf32>
    %29 = arith.cmpf ogt, %27, %28 : vector<8x16xf32>
    %cst_19 = arith.constant 1.000000e-01 : f32
    %30 = vector.broadcast %cst_19 : f32 to vector<8x16xf32>
    %31 = arith.mulf %30, %27 : vector<8x16xf32>
    %32 = arith.select %29, %27, %31 : vector<8x16xi1>, vector<8x16xf32>
    %33 = arith.truncf %32 : vector<8x16xf32> to vector<8x16xbf16>
    %c0_20 = arith.constant 0 : index
    %c0_21 = arith.constant 0 : index
    %34 = vector.load %arg6[%c0_20, %c0_21] : memref<16x128xbf16, #tpu.memory_space<vmem>>, vector<16x128xbf16>
    %cst_22 = arith.constant dense<0.000000e+00> : vector<8x128xf32>
    %35 = tpu.matmul %33, %34, %cst_22 {dimension_numbers = #tpu.dot_dimension_numbers<[1], [0], [0], [1], [0, 0, 1, 1], [], []>} : vector<8x16xbf16>, vector<16x128xbf16>, vector<8x128xf32> -> vector<8x128xf32>
    %cst_23 = arith.constant 0.000000e+00 : f32
    %36 = vector.broadcast %cst_23 : f32 to vector<8x128xf32>
    %37 = arith.cmpf ogt, %35, %36 : vector<8x128xf32>
    %cst_24 = arith.constant 1.000000e-01 : f32
    %38 = vector.broadcast %cst_24 : f32 to vector<8x128xf32>
    %39 = arith.mulf %38, %35 : vector<8x128xf32>
    %40 = arith.select %37, %35, %39 : vector<8x128xi1>, vector<8x128xf32>
    %41 = arith.truncf %40 : vector<8x128xf32> to vector<8x128xbf16>
    %c0_25 = arith.constant 0 : index
    %c0_26 = arith.constant 0 : index
    %42 = vector.load %arg7[%c0_25, %c0_26] : memref<128x7552xbf16, #tpu.memory_space<vmem>>, vector<128x7552xbf16>
    %cst_27 = arith.constant dense<0.000000e+00> : vector<8x7552xf32>
    %43 = tpu.matmul %41, %42, %cst_27 {dimension_numbers = #tpu.dot_dimension_numbers<[1], [0], [0], [1], [0, 0, 1, 1], [], []>} : vector<8x128xbf16>, vector<128x7552xbf16>, vector<8x7552xf32> -> vector<8x7552xf32>
    %cst_28 = arith.constant 0.000000e+00 : f32
    %44 = vector.broadcast %cst_28 : f32 to vector<8x7552xf32>
    %45 = arith.subf %44, %43 : vector<8x7552xf32>
    %46 = math.exp %45 : vector<8x7552xf32>
    %cst_29 = arith.constant 1.000000e+00 : f32
    %47 = vector.broadcast %cst_29 : f32 to vector<8x7552xf32>
    %48 = arith.addf %47, %46 : vector<8x7552xf32>
    %49 = tpu.reciprocal %48 {approx = true} : vector<8x7552xf32> -> vector<8x7552xf32>
    %c0_30 = arith.constant 0 : index
    %c0_31 = arith.constant 0 : index
    %50 = vector.load %arg8[%c0_30, %c0_31] : memref<8x7552xf32, #tpu.memory_space<vmem>>, vector<8x7552xf32>
    tpu.vector_store %arg8[%c0_30, %c0_31], %49 {strides = array<i32>} : memref<8x7552xf32, #tpu.memory_space<vmem>>, vector<8x7552xf32>,
    %c0_32 = arith.constant 0 : index
    %c0_33 = arith.constant 0 : index
    %51 = vector.load %arg9[%c0_32, %c0_33] : memref<8x8xf32, #tpu.memory_space<vmem>>, vector<8x8xf32>
    tpu.vector_store %arg9[%c0_32, %c0_33], %24 {strides = array<i32>} : memref<8x8xf32, #tpu.memory_space<vmem>>, vector<8x8xf32>,
    return
  }
  func.func @transform_0(%arg0: i32) -> (i32, i32) {
    %c0_i32 = arith.constant 0 : i32
    %c0_i32_0 = arith.constant 0 : i32
    %c0_i32_1 = arith.constant 0 : i32
    return %c0_i32, %c0_i32_0 : i32, i32
  }
  func.func @transform_1(%arg0: i32) -> (i32, i32) {
    %c0_i32 = arith.constant 0 : i32
    %c0_i32_0 = arith.constant 0 : i32
    %c0_i32_1 = arith.constant 0 : i32
    return %c0_i32, %c0_i32_0 : i32, i32
  }
  func.func @transform_2(%arg0: i32) -> (i32, i32) {
    %c0_i32 = arith.constant 0 : i32
    %c0_i32_0 = arith.constant 0 : i32
    %c0_i32_1 = arith.constant 0 : i32
    return %c0_i32, %c0_i32_0 : i32, i32
  }
  func.func @transform_3(%arg0: i32) -> (i32, i32) {
    %c0_i32 = arith.constant 0 : i32
    %c0_i32_0 = arith.constant 0 : i32
    %c0_i32_1 = arith.constant 0 : i32
    return %c0_i32, %c0_i32_0 : i32, i32
  }
  func.func @transform_4(%arg0: i32) -> (i32, i32) {
    %c0_i32 = arith.constant 0 : i32
    %c0_i32_0 = arith.constant 0 : i32
    %c0_i32_1 = arith.constant 0 : i32
    return %c0_i32, %c0_i32_0 : i32, i32
  }
  func.func @transform_5(%arg0: i32) -> (i32, i32) {
    %c0_i32 = arith.constant 0 : i32
    %c0_i32_0 = arith.constant 0 : i32
    %c0_i32_1 = arith.constant 0 : i32
    return %c0_i32, %c0_i32_0 : i32, i32
  }
  func.func @transform_6(%arg0: i32) -> (i32, i32) {
    %c0_i32 = arith.constant 0 : i32
    %c0_i32_0 = arith.constant 0 : i32
    %c0_i32_1 = arith.constant 0 : i32
    return %c0_i32, %c0_i32_0 : i32, i32
  }
  func.func @transform_7(%arg0: i32) -> (i32, i32) {
    %c0_i32 = arith.constant 0 : i32
    %c0_i32_0 = arith.constant 0 : i32
    %c0_i32_1 = arith.constant 0 : i32
    return %c0_i32, %c0_i32_0 : i32, i32
  }
  func.func @transform_8(%arg0: i32) -> (i32, i32) {
    %c0_i32 = arith.constant 0 : i32
    %c0_i32_0 = arith.constant 0 : i32
    %c0_i32_1 = arith.constant 0 : i32
    return %c0_i32, %c0_i32_0 : i32, i32
  }
}

</mosaic_0001>

<bundles_post_ra>
// kernel: forward.1
= control target key start
LH: loop header
LB: loop body
LE: loop exit
PB: predicated region body
PF: predicated region fallthrough
CT: control target
= control target key end

     0   :  { %14 = vsyncpa [#allocation3], 0  ;;  %s13527_s0 = inlined_call_operand.hbm [shape: f32[8,7552], index: 0, kind: input, shape index: {}]   ;;  %s13528_s1 = inlined_call_operand.hbm [shape: bf16[7552,128], index: 1, kind: input, shape index: {}]   ;;  %s13529_s2 = inlined_call_operand.vmem [shape: bf16[128,16], index: 2, kind: input, shape index: {}]   ;;  %s13530_s3 = inlined_call_operand.vmem [shape: bf16[16,8], index: 3, kind: input, shape index: {}]   ;;  %s13531_s4 = inlined_call_operand.hbm [shape: bf16[8,16], index: 4, kind: input, shape index: {}]   ;;  %s13532_s5 = inlined_call_operand.hbm [shape: bf16[16,128], index: 5, kind: input, shape index: {}]   ;;  %s13533_s6 = inlined_call_operand.hbm [shape: bf16[128,7552], index: 6, kind: input, shape index: {}]   ;;  %s13534_s7 = inlined_call_operand.hbm [shape: f32[8,7552], index: 7, kind: output, shape index: {0}]   ;;  %s13535_s8 = inlined_call_operand.hbm [shape: f32[8,8], index: 8, kind: output, shape index: {1}]  }
   0x1   :  { %15 = vsyncpa [#allocation6], 0 }
   0x2   :  { %16 = vsyncpa [#allocation9], 0 }
   0x3   :  { %17 = vsyncpa [#allocation4], 0 }
   0x4   :  { %18 = vsyncpa [#allocation13], 0  ;;  %s13234_s27 = smov [#allocation5]   ;;  %s13070_s9 = scalar_lea.hbm %s13528_s1, 60416 }
   0x5   :  { %s34_s28 = sshll.u32 %s13234_s27, 4  ;;  %p13071_p0 = scmp.ne.s32.totalorder %s13528_s1, %s13070_s9  ;;  %s35_s28 = int_to_ptr.vmem [resolvable:$true] %s34_s28 }
   0x6   :  { %p13074_p1 = scmp.lt.u32.totalorder %s13070_s9, %s13528_s1 }
   0x8   :  { %p13076_p2 = pnand %p13074_p1, %p13071_p0 }
   0xa   :  { %13079 = shalt.err (!%p13076_p2)
}
   0xb   :  { %s13080_s14 = scalar_lea.vmem %s35_s28, 60416  ;;  %p13085_p4 = scmp.lt.s32.totalorder %s35_s28, %s35_s28 }
   0xc   :  { %p13081_p3 = scmp.ne.s32.totalorder %s35_s28, %s13080_s14  ;;  %p13086_p5 = scmp.lt.s32.totalorder %s13080_s14, %s13080_s14 }
   0xe   :  { %p13087_p6 = por %p13086_p5, %p13085_p4 }
  0x10   :  { %p13088_p7 = pnand %p13087_p6, %p13081_p3 }
  0x12   :  { %13091 = shalt.err (!%p13088_p7)
}
  0x13   :  { %s13235_s15 = smov 64   ;;  %s13236_s16 = smov 4  }
  0x14   :  { %40 = dma.hbm_to_vmem [thread:$0]  %s13528_s1, 60416, %s35_s28, [#allocation6], %s13235_s15, %s13235_s15, %s13236_s16  }
  0x15   :  { %s13237_s19 = smov [#allocation8]   ;;  %s13238_s21 = smov [#allocation2]  }
  0x16   :  { %s60_s20 = sshll.u32 %s13237_s19, 4  ;;  %s25_s22 = sshll.u32 %s13238_s21, 4  ;;  %s61_s20 = int_to_ptr.vmem [resolvable:$true] %s60_s20  ;;  %s26_s22 = int_to_ptr.vmem [resolvable:$true] %s25_s22 }
  0x17   :  { %s13092_s25 = scalar_lea.hbm %s13532_s5, 128 }
  0x18   :  { %p13093_p8 = scmp.ne.s32.totalorder %s13532_s5, %s13092_s25  ;;  %p13096_p9 = scmp.lt.u32.totalorder %s13092_s25, %s13532_s5 }
  0x1a   :  { %p13098_p10 = pnand %p13096_p9, %p13093_p8 }
  0x1c   :  { %13101 = shalt.err (!%p13098_p10)
}
  0x1d   :  { %s13102_s1 = scalar_lea.vmem %s61_s20, 128  ;;  %p13107_p12 = scmp.lt.s32.totalorder %s61_s20, %s61_s20 }
  0x1e   :  { %p13103_p11 = scmp.ne.s32.totalorder %s61_s20, %s13102_s1  ;;  %p13108_p13 = scmp.lt.s32.totalorder %s13102_s1, %s13102_s1 }
  0x20   :  { %p13109_p0 = por %p13108_p13, %p13107_p12 }
  0x22   :  { %p13110_p1 = pnand %p13109_p0, %p13103_p11 }
  0x24   :  { %13113 = shalt.err (!%p13110_p1)
}
  0x25   :  { %66 = dma.hbm_to_vmem [thread:$0]  %s13532_s5, 128, %s61_s20, [#allocation9], %s13235_s15, %s13235_s15, %s13236_s16  }
  0x26   :  { %s13114_s12 = scalar_lea.hbm %s13527_s0, 7552 }
  0x27   :  { %p13115_p2 = scmp.ne.s32.totalorder %s13527_s0, %s13114_s12  ;;  %p13118_p3 = scmp.lt.u32.totalorder %s13114_s12, %s13527_s0 }
  0x29   :  { %p13120_p4 = pnand %p13118_p3, %p13115_p2 }
  0x2b   :  { %13123 = shalt.err (!%p13120_p4)
}
  0x2c   :  { %s13124_s19 = scalar_lea.vmem %s26_s22, 7552  ;;  %p13129_p6 = scmp.lt.s32.totalorder %s26_s22, %s26_s22 }
  0x2d   :  { %p13125_p5 = scmp.ne.s32.totalorder %s26_s22, %s13124_s19  ;;  %p13130_p7 = scmp.lt.s32.totalorder %s13124_s19, %s13124_s19 }
  0x2f   :  { %p13131_p8 = por %p13130_p7, %p13129_p6 }
  0x31   :  { %p13132_p9 = pnand %p13131_p8, %p13125_p5 }
  0x33   :  { %13135 = shalt.err (!%p13132_p9)
}
  0x34   :  { %28 = dma.hbm_to_vmem [thread:$0]  %s13527_s0, 7552, %s26_s22, [#allocation3]  }
  0x35   :  { %s13239_s16 = smov [#allocation7]   ;;  %s13240_s21 = smov [#allocation10]  }
  0x36   :  { %s51_s20 = sshll.u32 %s13239_s16, 4  ;;  %s72_s23 = sshll.u32 %s13240_s21, 4  ;;  %s52_s20 = int_to_ptr.vmem [resolvable:$true] %s51_s20  ;;  %s73_s23 = int_to_ptr.vmem [resolvable:$true] %s72_s23 }
  0x37   :  { %s13136_s26 = scalar_lea.hbm %s13531_s4, 64 }
  0x38   :  { %p13137_p10 = scmp.ne.s32.totalorder %s13531_s4, %s13136_s26  ;;  %p13140_p11 = scmp.lt.u32.totalorder %s13136_s26, %s13531_s4 }
  0x3a   :  { %p13142_p12 = pnand %p13140_p11, %p13137_p10 }
  0x3c   :  { %13145 = shalt.err (!%p13142_p12)
}
  0x3d   :  { %s13146_s0 = scalar_lea.vmem %s52_s20, 64  ;;  %p13151_p0 = scmp.lt.s32.totalorder %s52_s20, %s52_s20 }
  0x3e   :  { %p13147_p13 = scmp.ne.s32.totalorder %s52_s20, %s13146_s0  ;;  %p13152_p1 = scmp.lt.s32.totalorder %s13146_s0, %s13146_s0 }
  0x40   :  { %p13153_p2 = por %p13152_p1, %p13151_p0 }
  0x42   :  { %p13154_p3 = pnand %p13153_p2, %p13147_p13 }
  0x44   :  { %13157 = shalt.err (!%p13154_p3)
}
  0x45   :  { %54 = dma.hbm_to_vmem [thread:$0]  %s13531_s4, 64, %s52_s20, [#allocation6]  }
  0x46   :  { %s13158_s11 = scalar_lea.hbm %s13533_s6, 60416 }
  0x47   :  { %p13159_p4 = scmp.ne.s32.totalorder %s13533_s6, %s13158_s11  ;;  %p13162_p5 = scmp.lt.u32.totalorder %s13158_s11, %s13533_s6 }
  0x49   :  { %p13164_p6 = pnand %p13162_p5, %p13159_p4 }
  0x4b   :  { %13167 = shalt.err (!%p13164_p6)
}
  0x4c   :  { %s13168_s18 = scalar_lea.vmem %s73_s23, 60416  ;;  %p13173_p8 = scmp.lt.s32.totalorder %s73_s23, %s73_s23 }
  0x4d   :  { %p13169_p7 = scmp.ne.s32.totalorder %s73_s23, %s13168_s18  ;;  %p13174_p9 = scmp.lt.s32.totalorder %s13168_s18, %s13168_s18 }
  0x4f   :  { %p13175_p10 = por %p13174_p9, %p13173_p8 }
  0x51   :  { %p13176_p11 = pnand %p13175_p10, %p13169_p7 }
  0x53   :  { %13179 = shalt.err (!%p13176_p11)
}
  0x54   :  { %s13241_s4 = smov 3776   ;;  %s13242_s19 = smov 236  }
  0x55   :  { %78 = dma.hbm_to_vmem [thread:$0]  %s13533_s6, 60416, %s73_s23, [#allocation9], %s13241_s4, %s13241_s4, %s13242_s19  }
  0x56   :  { %13224 = dma.done.wait [#allocation3], 7552  }
  0x57   :  { %13225 = vsyncadd [#allocation3], 4294959744 }
  0x58   :  { %13226 = dma.done.wait [#allocation6], 60480  }
  0x59   :  { %13227 = vsyncadd [#allocation6], 4294906816 }
  0x5a   :  { %13228 = dma.done.wait [#allocation9], 60544  }
  0x5b   :  { %13229 = vsyncadd [#allocation9], 4294906752  ;;  %v11648_v0 = vld [vmem:[#allocation5 + $0x40] sm:$0xff]   ;;  %v11652_v4 = vld [vmem:[#allocation5 + $0x48] sm:$0xff]   ;;  %vm13244_vm0 = vmmov 0   ;;  %vm5362_vm3 = vcmask 1043456  }
  0x5c   :  { %v11649_v1 = vld [vmem:[#allocation5 + $0xc0] sm:$0xff]   ;;  %10885 = vmatprep.subr.bf16.mxu0 %v11648_v0  ;;  %v11653_v5 = vld [vmem:[#allocation5 + $0xc8] sm:$0xff]   ;;  %v11656_v8 = vld [vmem:[#allocation5 + $0x50] sm:$0xff]   ;;  %vm5309_vm4 = vcmask 130048   ;;  %vm5358_vm6 = vcmask 64512  }
  0x5d   :  { %v11650_v2 = vld [vmem:[#allocation5] sm:$0xff]   ;;  %10907 = vmatprep.subr.bf16.mxu1 %v11649_v1  ;;  %v11654_v6 = vld [vmem:[#allocation5 + $0x8] sm:$0xff]   ;;  %v11657_v9 = vld [vmem:[#allocation5 + $0xd0] sm:$0xff]  }
  0x5e   :  { %v11651_v3 = vld [vmem:[#allocation5 + $0x80] sm:$0xff]   ;;  %10886 = vmatpush3.bf16.msra.mxu0 %v11650_v2  ;;  %v11655_v7 = vld [vmem:[#allocation5 + $0x88] sm:$0xff]   ;;  %v11658_v10 = vld [vmem:[#allocation5 + $0x10] sm:$0xff]  }
  0x5f   :  { %10908 = vmatpush3.bf16.msra.mxu1 %v11651_v3  ;;  %10887 = vmatprep.subr.bf16.mxu0 %v11652_v4  ;;  %v11659_v11 = vld [vmem:[#allocation5 + $0x90] sm:$0xff]   ;;  %v11660_v12 = vld [vmem:[#allocation5 + $0x58] sm:$0xff]   ;;  %v11664_v16 = vld [vmem:[#allocation5 + $0x60] sm:$0xff]  }
  0x60   :  { %10909 = vmatprep.subr.bf16.mxu1 %v11653_v5  ;;  %v11661_v13 = vld [vmem:[#allocation5 + $0xd8] sm:$0xff]   ;;  %v11665_v17 = vld [vmem:[#allocation5 + $0xe0] sm:$0xff]   ;;  %v11668_v20 = vld [vmem:[#allocation5 + $0x68] sm:$0xff]  }
  0x61   :  { %v11662_v14 = vld [vmem:[#allocation5 + $0x18] sm:$0xff]   ;;  %v11666_v18 = vld [vmem:[#allocation5 + $0x20] sm:$0xff]   ;;  %v11669_v21 = vld [vmem:[#allocation5 + $0xe8] sm:$0xff]  }
  0x62   :  { %10888 = vmatpush3.bf16.msra.mxu0 %v11654_v6  ;;  %v11663_v15 = vld [vmem:[#allocation5 + $0x98] sm:$0xff]   ;;  %v11667_v19 = vld [vmem:[#allocation5 + $0xa0] sm:$0xff]   ;;  %v11670_v22 = vld [vmem:[#allocation5 + $0x28] sm:$0xff]  }
  0x63   :  { %10910 = vmatpush3.bf16.msra.mxu1 %v11655_v7  ;;  %10889 = vmatprep.subr.bf16.mxu0 %v11656_v8  ;;  %v11671_v23 = vld [vmem:[#allocation5 + $0xa8] sm:$0xff]   ;;  %v11672_v24 = vld [vmem:[#allocation5 + $0x70] sm:$0xff]   ;;  %v11676_v28 = vld [vmem:[#allocation5 + $0x78] sm:$0xff]  }
  0x64   :  { %10911 = vmatprep.subr.bf16.mxu1 %v11657_v9  ;;  %v11673_v25 = vld [vmem:[#allocation5 + $0xf0] sm:$0xff]   ;;  %v11677_v29 = vld [vmem:[#allocation5 + $0xf8] sm:$0xff]   ;;  %v98_v33 = vld [vmem:[#allocation2 + $0x18] sm:$0xff] }
  0x65   :  { %v11674_v26 = vld [vmem:[#allocation5 + $0x30] sm:$0xff]   ;;  %v11678_v30 = vld [vmem:[#allocation5 + $0x38] sm:$0xff]   ;;  %v95_v34 = vld [vmem:[#allocation2] sm:$0xff]  ;;  %v157_v36 = vpack.c.bf16 %v98_v33, %v98_v33 }
  0x66   :  { %10890 = vmatpush3.bf16.msra.mxu0 %v11658_v10  ;;  %v11675_v27 = vld [vmem:[#allocation5 + $0xb0] sm:$0xff]   ;;  %v11679_v31 = vld [vmem:[#allocation5 + $0xb8] sm:$0xff]   ;;  %v154_v37 = vpack.c.bf16 %v95_v34, %v95_v34  ;;  %v11680_v40 = vld [vmem:[#allocation5 + $0x140] sm:$0xff]  }
  0x67   :  { %10912 = vmatpush3.bf16.msra.mxu1 %v11659_v11  ;;  %10891 = vmatprep.subr.bf16.mxu0 %v11660_v12  ;;  %v96_v32 = vld [vmem:[#allocation2 + $0x8] sm:$0xff]  ;;  %v97_v38 = vld [vmem:[#allocation2 + $0x10] sm:$0xff]  ;;  %v11681_v41 = vld [vmem:[#allocation5 + $0x100] sm:$0xff]  }
  0x68   :  { %10913 = vmatprep.subr.bf16.mxu1 %v11661_v13  ;;  %v155_v35 = vpack.c.bf16 %v96_v32, %v96_v32  ;;  %v156_v39 = vpack.c.bf16 %v97_v38, %v97_v38  ;;  %4061 = vmatprep.mubr.bf16.mxu1 %v157_v36  ;;  %v11682_v42 = vld [vmem:[#allocation5 + $0x1c0] sm:$0xff]   ;;  %v11684_v44 = vld [vmem:[#allocation5 + $0x148] sm:$0xff]   ;;  %v11688_v48 = vld [vmem:[#allocation5 + $0x150] sm:$0xff]  }
  0x69   :  { %v11683_v43 = vld [vmem:[#allocation5 + $0x180] sm:$0xff]   ;;  %v11685_v45 = vld [vmem:[#allocation5 + $0x108] sm:$0xff]   ;;  %v11689_v49 = vld [vmem:[#allocation5 + $0x110] sm:$0xff]  }
  0x6a   :  { %10892 = vmatpush3.bf16.msra.mxu0 %v11662_v14  ;;  %4021 = vmatprep.mubr.bf16.mxu0 %v155_v35  ;;  %v11686_v46 = vld [vmem:[#allocation5 + $0x1c8] sm:$0xff]   ;;  %v11690_v50 = vld [vmem:[#allocation5 + $0x1d0] sm:$0xff]   ;;  %v11692_v52 = vld [vmem:[#allocation5 + $0x158] sm:$0xff]  }
  0x6b   :  { %10914 = vmatpush3.bf16.msra.mxu1 %v11663_v15  ;;  %10893 = vmatprep.subr.bf16.mxu0 %v11664_v16  ;;  %v11687_v47 = vld [vmem:[#allocation5 + $0x188] sm:$0xff]   ;;  %v11691_v51 = vld [vmem:[#allocation5 + $0x190] sm:$0xff]   ;;  %v11693_v53 = vld [vmem:[#allocation5 + $0x118] sm:$0xff]  }
  0x6c   :  { %10915 = vmatprep.subr.bf16.mxu1 %v11665_v17  ;;  %v11694_v54 = vld [vmem:[#allocation5 + $0x1d8] sm:$0xff]   ;;  %v11696_v56 = vld [vmem:[#allocation5 + $0x160] sm:$0xff]   ;;  %v11700_v60 = vld [vmem:[#allocation5 + $0x168] sm:$0xff]  }
  0x6d   :  { %v11695_v55 = vld [vmem:[#allocation5 + $0x198] sm:$0xff]   ;;  %v11697_v57 = vld [vmem:[#allocation5 + $0x120] sm:$0xff]   ;;  %v11701_v61 = vld [vmem:[#allocation5 + $0x128] sm:$0xff]  }
  0x6e   :  { %10894 = vmatpush3.bf16.msra.mxu0 %v11666_v18  ;;  %v11698_v58 = vld [vmem:[#allocation5 + $0x1e0] sm:$0xff]   ;;  %v11702_v62 = vld [vmem:[#allocation5 + $0x1e8] sm:$0xff]   ;;  %v11704_v0 = vld [vmem:[#allocation5 + $0x170] sm:$0xff]  }
  0x6f   :  { %10916 = vmatpush3.bf16.msra.mxu1 %v11667_v19  ;;  %10895 = vmatprep.subr.bf16.mxu0 %v11668_v20  ;;  %v11699_v59 = vld [vmem:[#allocation5 + $0x1a0] sm:$0xff]   ;;  %v11703_v63 = vld [vmem:[#allocation5 + $0x1a8] sm:$0xff]   ;;  %v11705_v1 = vld [vmem:[#allocation5 + $0x130] sm:$0xff]  }
  0x70   :  { %10917 = vmatprep.subr.bf16.mxu1 %v11669_v21  ;;  %v11706_v2 = vld [vmem:[#allocation5 + $0x1f0] sm:$0xff]   ;;  %v11708_v4 = vld [vmem:[#allocation5 + $0x178] sm:$0xff]   ;;  %v99_v10 = vld [vmem:[#allocation2 + $0x20] sm:$0xff] }
  0x71   :  { %v11707_v3 = vld [vmem:[#allocation5 + $0x1b0] sm:$0xff]   ;;  %v11709_v5 = vld [vmem:[#allocation5 + $0x138] sm:$0xff]   ;;  %v158_v11 = vpack.c.bf16 %v99_v10, %v99_v10  ;;  %v11712_v12 = vld [vmem:[#allocation5 + $0x240] sm:$0xff]  }
  0x72   :  { %10896 = vmatpush3.bf16.msra.mxu0 %v11670_v22  ;;  %v11710_v6 = vld [vmem:[#allocation5 + $0x1f8] sm:$0xff]   ;;  %v100_v7 = vld [vmem:[#allocation2 + $0x28] sm:$0xff]  ;;  %v102_v13 = vld [vmem:[#allocation2 + $0x38] sm:$0xff] }
  0x73   :  { %10918 = vmatpush3.bf16.msra.mxu1 %v11671_v23  ;;  %10897 = vmatprep.subr.bf16.mxu0 %v11672_v24  ;;  %v159_v8 = vpack.c.bf16 %v100_v7, %v100_v7  ;;  %v11711_v9 = vld [vmem:[#allocation5 + $0x1b8] sm:$0xff]   ;;  %v161_v14 = vpack.c.bf16 %v102_v13, %v102_v13  ;;  %v11713_v15 = vld [vmem:[#allocation5 + $0x200] sm:$0xff]   ;;  %v11716_v20 = vld [vmem:[#allocation5 + $0x248] sm:$0xff]  }
  0x74   :  { %10919 = vmatprep.subr.bf16.mxu1 %v11673_v25  ;;  %v101_v16 = vld [vmem:[#allocation2 + $0x30] sm:$0xff]  ;;  %v11714_v18 = vld [vmem:[#allocation5 + $0x2c0] sm:$0xff]   ;;  %v11717_v21 = vld [vmem:[#allocation5 + $0x208] sm:$0xff]  }
  0x75   :  { %v160_v17 = vpack.c.bf16 %v101_v16, %v101_v16  ;;  %v11715_v19 = vld [vmem:[#allocation5 + $0x280] sm:$0xff]   ;;  %v11718_v22 = vld [vmem:[#allocation5 + $0x2c8] sm:$0xff]   ;;  %v11720_v24 = vld [vmem:[#allocation5 + $0x250] sm:$0xff]  }
  0x76   :  { %10898 = vmatpush3.bf16.msra.mxu0 %v11674_v26  ;;  %v11719_v23 = vld [vmem:[#allocation5 + $0x288] sm:$0xff]   ;;  %v11721_v25 = vld [vmem:[#allocation5 + $0x210] sm:$0xff]   ;;  %v11728_v32 = vld [vmem:[#allocation5 + $0x260] sm:$0xff]  }
  0x77   :  { %10920 = vmatpush3.bf16.msra.mxu1 %v11675_v27  ;;  %10899 = vmatprep.subr.bf16.mxu0 %v11676_v28  ;;  %v11722_v26 = vld [vmem:[#allocation5 + $0x2d0] sm:$0xff]   ;;  %v11724_v28 = vld [vmem:[#allocation5 + $0x258] sm:$0xff]   ;;  %v11729_v33 = vld [vmem:[#allocation5 + $0x220] sm:$0xff]  }
  0x78   :  { %10921 = vmatprep.subr.bf16.mxu1 %v11677_v29  ;;  %v11723_v27 = vld [vmem:[#allocation5 + $0x290] sm:$0xff]   ;;  %v11725_v29 = vld [vmem:[#allocation5 + $0x218] sm:$0xff]   ;;  %v11730_v34 = vld [vmem:[#allocation5 + $0x2e0] sm:$0xff]  }
  0x79   :  { %v11731_v35 = vld [vmem:[#allocation5 + $0x2a0] sm:$0xff]   ;;  %v11732_v36 = vld [vmem:[#allocation5 + $0x268] sm:$0xff]   ;;  %v11759_v7 = vld [vmem:[#allocation5 + $0x398] sm:$0xff]  }
  0x7a   :  { %10900 = vmatpush3.bf16.msra.mxu0 %v11678_v30  ;;  %v11726_v30 = vld [vmem:[#allocation5 + $0x2d8] sm:$0xff]   ;;  %v11734_v38 = vld [vmem:[#allocation5 + $0x2e8] sm:$0xff]   ;;  %v11762_v10 = vld [vmem:[#allocation5 + $0x3e0] sm:$0xff]  }
  0x7b   :  { %10922 = vmatpush3.bf16.msra.mxu1 %v11679_v31  ;;  %10929 = vmatprep.subr.bf16.mxu0 %v11680_v40  ;;  %v11727_v31 = vld [vmem:[#allocation5 + $0x298] sm:$0xff]   ;;  %v11736_v40 = vld [vmem:[#allocation5 + $0x270] sm:$0xff]   ;;  %v11765_v13 = vld [vmem:[#allocation5 + $0x328] sm:$0xff]  }
  0x7c   :  { %10951 = vmatprep.subr.bf16.mxu1 %v11682_v42  ;;  %v11738_v42 = vld [vmem:[#allocation5 + $0x2f0] sm:$0xff]  }
  0x7d   :  { %4022 = vmatmul.mubr.bf16.vlgmr.msra.gmra.mrb[0].mxu0 %v154_v37  ;;  %v11733_v37 = vld [vmem:[#allocation5 + $0x228] sm:$0xff]   ;;  %v11768_v16 = vld [vmem:[#allocation5 + $0x370] sm:$0xff]  }
  0x7e   :  { %4062 = vmatmul.mubr.bf16.vlgmr.msra.gmra.mrb[0].mxu1 %v156_v39  ;;  %10930 = vmatpush3.bf16.msra.mxu0 %v11681_v41  ;;  %v11735_v39 = vld [vmem:[#allocation5 + $0x2a8] sm:$0xff]   ;;  %v11737_v41 = vld [vmem:[#allocation5 + $0x230] sm:$0xff]  }
  0x7f   :  { %10952 = vmatpush3.bf16.msra.mxu1 %v11683_v43  ;;  %10931 = vmatprep.subr.bf16.mxu0 %v11684_v44  ;;  %v11739_v43 = vld [vmem:[#allocation5 + $0x2b0] sm:$0xff]   ;;  %v11740_v44 = vld [vmem:[#allocation5 + $0x278] sm:$0xff]  }
  0x80   :  { %10953 = vmatprep.subr.bf16.mxu1 %v11686_v46  ;;  %4101 = vmatprep.mubr.bf16.mxu0 %v159_v8  ;;  %v11742_v46 = vld [vmem:[#allocation5 + $0x2f8] sm:$0xff]   ;;  %v11760_v8 = vld [vmem:[#allocation5 + $0x360] sm:$0xff]  }
  0x81   :  { %4141 = vmatprep.mubr.bf16.mxu1 %v161_v14  ;;  %v11766_v14 = vld [vmem:[#allocation5 + $0x3e8] sm:$0xff]  }
  0x82   :  { %10932 = vmatpush3.bf16.msra.mxu0 %v11685_v45  ;;  %v11741_v45 = vld [vmem:[#allocation5 + $0x238] sm:$0xff]  }
  0x83   :  { %10954 = vmatpush3.bf16.msra.mxu1 %v11687_v47  ;;  %10933 = vmatprep.subr.bf16.mxu0 %v11688_v48  ;;  %v104_v47 = vld [vmem:[#allocation2 + $0x48] sm:$0xff] }
  0x84   :  { %10955 = vmatprep.subr.bf16.mxu1 %v11690_v50  ;;  %v163_v48 = vpack.c.bf16 %v104_v47, %v104_v47  ;;  %v103_v50 = vld [vmem:[#allocation2 + $0x40] sm:$0xff]  ;;  %v11791_v47 = vld [vmem:[#allocation5 + $0x498] sm:$0xff]  }
  0x86   :  { %10934 = vmatpush3.bf16.msra.mxu0 %v11689_v49  ;;  %v11743_v49 = vld [vmem:[#allocation5 + $0x2b8] sm:$0xff]  }
  0x87   :  { %10956 = vmatpush3.bf16.msra.mxu1 %v11691_v51  ;;  %10935 = vmatprep.subr.bf16.mxu0 %v11692_v52  ;;  %v162_v51 = vpack.c.bf16 %v103_v50, %v103_v50  ;;  %v11744_v52 = vld [vmem:[#allocation5 + $0x340] sm:$0xff]  }
  0x88   :  { %10957 = vmatprep.subr.bf16.mxu1 %v11694_v54  ;;  %v11794_v50 = vld [vmem:[#allocation5 + $0x4e0] sm:$0xff]  }
  0x8a   :  { %10936 = vmatpush3.bf16.msra.mxu0 %v11693_v53  ;;  %v106_v53 = vld [vmem:[#allocation2 + $0x58] sm:$0xff] }
  0x8b   :  { %10958 = vmatpush3.bf16.msra.mxu1 %v11695_v55  ;;  %10937 = vmatprep.subr.bf16.mxu0 %v11696_v56  ;;  %v165_v54 = vpack.c.bf16 %v106_v53, %v106_v53  ;;  %v11745_v55 = vld [vmem:[#allocation5 + $0x300] sm:$0xff]   ;;  %v105_v56 = vld [vmem:[#allocation2 + $0x50] sm:$0xff]  ;;  %v11797_v53 = vld [vmem:[#allocation5 + $0x428] sm:$0xff]  }
  0x8c   :  { %10959 = vmatprep.subr.bf16.mxu1 %v11698_v58  ;;  %v11746_v58 = vld [vmem:[#allocation5 + $0x3c0] sm:$0xff]  }
  0x8e   :  { %10938 = vmatpush3.bf16.msra.mxu0 %v11697_v57  ;;  %v164_v57 = vpack.c.bf16 %v105_v56, %v105_v56  ;;  %v11800_v56 = vld [vmem:[#allocation5 + $0x470] sm:$0xff]  }
  0x8f   :  { %10960 = vmatpush3.bf16.msra.mxu1 %v11699_v59  ;;  %10939 = vmatprep.subr.bf16.mxu0 %v11700_v60  ;;  %v11747_v59 = vld [vmem:[#allocation5 + $0x380] sm:$0xff]   ;;  %v11748_v60 = vld [vmem:[#allocation5 + $0x348] sm:$0xff]  }
  0x90   :  { %10961 = vmatprep.subr.bf16.mxu1 %v11702_v62  ;;  %v11750_v62 = vld [vmem:[#allocation5 + $0x3c8] sm:$0xff]  }
  0x92   :  { %10940 = vmatpush3.bf16.msra.mxu0 %v11701_v61  ;;  %v11749_v61 = vld [vmem:[#allocation5 + $0x308] sm:$0xff]  }
  0x93   :  { %10962 = vmatpush3.bf16.msra.mxu1 %v11703_v63  ;;  %10941 = vmatprep.subr.bf16.mxu0 %v11704_v0  ;;  %v11751_v63 = vld [vmem:[#allocation5 + $0x388] sm:$0xff]   ;;  %v11752_v0 = vld [vmem:[#allocation5 + $0x350] sm:$0xff]  }
  0x94   :  { %10963 = vmatprep.subr.bf16.mxu1 %v11706_v2  ;;  %v11754_v2 = vld [vmem:[#allocation5 + $0x3d0] sm:$0xff]  }
  0x96   :  { %10942 = vmatpush3.bf16.msra.mxu0 %v11705_v1  ;;  %v11753_v1 = vld [vmem:[#allocation5 + $0x310] sm:$0xff]  }
  0x97   :  { %10964 = vmatpush3.bf16.msra.mxu1 %v11707_v3  ;;  %10943 = vmatprep.subr.bf16.mxu0 %v11708_v4  ;;  %v11755_v3 = vld [vmem:[#allocation5 + $0x390] sm:$0xff]   ;;  %v11756_v4 = vld [vmem:[#allocation5 + $0x358] sm:$0xff]  }
  0x98   :  { %10965 = vmatprep.subr.bf16.mxu1 %v11710_v6  ;;  %v11758_v6 = vld [vmem:[#allocation5 + $0x3d8] sm:$0xff]  }
  0x9a   :  { %10944 = vmatpush3.bf16.msra.mxu0 %v11709_v5  ;;  %v11757_v5 = vld [vmem:[#allocation5 + $0x318] sm:$0xff]  }
  0x9b   :  { %10966 = vmatpush3.bf16.msra.mxu1 %v11711_v9  ;;  %10973 = vmatprep.subr.bf16.mxu0 %v11712_v12  ;;  %v11761_v9 = vld [vmem:[#allocation5 + $0x320] sm:$0xff]   ;;  %v11764_v12 = vld [vmem:[#allocation5 + $0x368] sm:$0xff]  }
  0x9c   :  { %10995 = vmatprep.subr.bf16.mxu1 %v11714_v18  ;;  %v11770_v18 = vld [vmem:[#allocation5 + $0x3f0] sm:$0xff]  }
  0x9d   :  { %4102 = vmatmul.mubr.bf16.vlgmr.msra.gmra.mrb[4].mxu0 %v158_v11  ;;  %v11763_v11 = vld [vmem:[#allocation5 + $0x3a0] sm:$0xff]  }
  0x9e   :  { %10974 = vmatpush3.bf16.msra.mxu0 %v11713_v15  ;;  %4142 = vmatmul.mubr.bf16.vlgmr.msra.gmra.mrb[4].mxu1 %v160_v17  ;;  %v11767_v15 = vld [vmem:[#allocation5 + $0x3a8] sm:$0xff]   ;;  %v11769_v17 = vld [vmem:[#allocation5 + $0x330] sm:$0xff]  }
  0x9f   :  { %10996 = vmatpush3.bf16.msra.mxu1 %v11715_v19  ;;  %10975 = vmatprep.subr.bf16.mxu0 %v11716_v20  ;;  %v11771_v19 = vld [vmem:[#allocation5 + $0x3b0] sm:$0xff]   ;;  %v11772_v20 = vld [vmem:[#allocation5 + $0x378] sm:$0xff]  }
  0xa0   :  { %10997 = vmatprep.subr.bf16.mxu1 %v11718_v22  ;;  %4181 = vmatprep.mubr.bf16.mxu0 %v163_v48  ;;  %v11774_v22 = vld [vmem:[#allocation5 + $0x3f8] sm:$0xff]   ;;  %v11792_v48 = vld [vmem:[#allocation5 + $0x460] sm:$0xff]  }
  0xa1   :  { %4221 = vmatprep.mubr.bf16.mxu1 %v165_v54  ;;  %v11798_v54 = vld [vmem:[#allocation5 + $0x4e8] sm:$0xff]  }
  0xa2   :  { %10976 = vmatpush3.bf16.msra.mxu0 %v11717_v21  ;;  %v11773_v21 = vld [vmem:[#allocation5 + $0x338] sm:$0xff]  }
  0xa3   :  { %10998 = vmatpush3.bf16.msra.mxu1 %v11719_v23  ;;  %10977 = vmatprep.subr.bf16.mxu0 %v11720_v24  ;;  %v108_v23 = vld [vmem:[#allocation2 + $0x68] sm:$0xff] }
  0xa4   :  { %10999 = vmatprep.subr.bf16.mxu1 %v11722_v26  ;;  %v167_v24 = vpack.c.bf16 %v108_v23, %v108_v23  ;;  %v107_v26 = vld [vmem:[#allocation2 + $0x60] sm:$0xff]  ;;  %v11823_v23 = vld [vmem:[#allocation5 + $0x598] sm:$0xff]  }
  0xa6   :  { %10978 = vmatpush3.bf16.msra.mxu0 %v11721_v25  ;;  %v11775_v25 = vld [vmem:[#allocation5 + $0x3b8] sm:$0xff]  }
  0xa7   :  { %11000 = vmatpush3.bf16.msra.mxu1 %v11723_v27  ;;  %10979 = vmatprep.subr.bf16.mxu0 %v11724_v28  ;;  %v166_v27 = vpack.c.bf16 %v107_v26, %v107_v26  ;;  %v11776_v28 = vld [vmem:[#allocation5 + $0x440] sm:$0xff]  }
  0xa8   :  { %11001 = vmatprep.subr.bf16.mxu1 %v11726_v30  ;;  %v11826_v26 = vld [vmem:[#allocation5 + $0x5e0] sm:$0xff]  }
  0xaa   :  { %10980 = vmatpush3.bf16.msra.mxu0 %v11725_v29  ;;  %v110_v29 = vld [vmem:[#allocation2 + $0x78] sm:$0xff] }
  0xab   :  { %11002 = vmatpush3.bf16.msra.mxu1 %v11727_v31  ;;  %10981 = vmatprep.subr.bf16.mxu0 %v11728_v32  ;;  %v169_v30 = vpack.c.bf16 %v110_v29, %v110_v29  ;;  %v11777_v31 = vld [vmem:[#allocation5 + $0x400] sm:$0xff]   ;;  %v109_v32 = vld [vmem:[#allocation2 + $0x70] sm:$0xff]  ;;  %v11829_v29 = vld [vmem:[#allocation5 + $0x528] sm:$0xff]  }
  0xac   :  { %11003 = vmatprep.subr.bf16.mxu1 %v11730_v34  ;;  %v11778_v34 = vld [vmem:[#allocation5 + $0x4c0] sm:$0xff]  }
  0xae   :  { %10982 = vmatpush3.bf16.msra.mxu0 %v11729_v33  ;;  %v168_v33 = vpack.c.bf16 %v109_v32, %v109_v32  ;;  %v11832_v32 = vld [vmem:[#allocation5 + $0x570] sm:$0xff]  }
  0xaf   :  { %11004 = vmatpush3.bf16.msra.mxu1 %v11731_v35  ;;  %10983 = vmatprep.subr.bf16.mxu0 %v11732_v36  ;;  %v11779_v35 = vld [vmem:[#allocation5 + $0x480] sm:$0xff]   ;;  %v11780_v36 = vld [vmem:[#allocation5 + $0x448] sm:$0xff]  }
  0xb0   :  { %11005 = vmatprep.subr.bf16.mxu1 %v11734_v38  ;;  %v11782_v38 = vld [vmem:[#allocation5 + $0x4c8] sm:$0xff]  }
  0xb2   :  { %10984 = vmatpush3.bf16.msra.mxu0 %v11733_v37  ;;  %v11781_v37 = vld [vmem:[#allocation5 + $0x408] sm:$0xff]  }
  0xb3   :  { %11006 = vmatpush3.bf16.msra.mxu1 %v11735_v39  ;;  %10985 = vmatprep.subr.bf16.mxu0 %v11736_v40  ;;  %v11783_v39 = vld [vmem:[#allocation5 + $0x488] sm:$0xff]   ;;  %v11784_v40 = vld [vmem:[#allocation5 + $0x450] sm:$0xff]  }
  0xb4   :  { %11007 = vmatprep.subr.bf16.mxu1 %v11738_v42  ;;  %v11786_v42 = vld [vmem:[#allocation5 + $0x4d0] sm:$0xff]  }
  0xb6   :  { %10986 = vmatpush3.bf16.msra.mxu0 %v11737_v41  ;;  %v11785_v41 = vld [vmem:[#allocation5 + $0x410] sm:$0xff]  }
  0xb7   :  { %11008 = vmatpush3.bf16.msra.mxu1 %v11739_v43  ;;  %10987 = vmatprep.subr.bf16.mxu0 %v11740_v44  ;;  %v11787_v43 = vld [vmem:[#allocation5 + $0x490] sm:$0xff]   ;;  %v11788_v44 = vld [vmem:[#allocation5 + $0x458] sm:$0xff]  }
  0xb8   :  { %11009 = vmatprep.subr.bf16.mxu1 %v11742_v46  ;;  %v11790_v46 = vld [vmem:[#allocation5 + $0x4d8] sm:$0xff]  }
  0xba   :  { %10988 = vmatpush3.bf16.msra.mxu0 %v11741_v45  ;;  %v11789_v45 = vld [vmem:[#allocation5 + $0x418] sm:$0xff]  }
  0xbb   :  { %11010 = vmatpush3.bf16.msra.mxu1 %v11743_v49  ;;  %11017 = vmatprep.subr.bf16.mxu0 %v11744_v52  ;;  %v11793_v49 = vld [vmem:[#allocation5 + $0x420] sm:$0xff]   ;;  %v11796_v52 = vld [vmem:[#allocation5 + $0x468] sm:$0xff]  }
  0xbc   :  { %11039 = vmatprep.subr.bf16.mxu1 %v11746_v58  ;;  %v11802_v58 = vld [vmem:[#allocation5 + $0x4f0] sm:$0xff]  }
  0xbd   :  { %4182 = vmatmul.mubr.bf16.vlgmr.msra.gmra.mrb[8].mxu0 %v162_v51  ;;  %v11795_v51 = vld [vmem:[#allocation5 + $0x4a0] sm:$0xff]  }
  0xbe   :  { %11018 = vmatpush3.bf16.msra.mxu0 %v11745_v55  ;;  %4222 = vmatmul.mubr.bf16.vlgmr.msra.gmra.mrb[8].mxu1 %v164_v57  ;;  %v11799_v55 = vld [vmem:[#allocation5 + $0x4a8] sm:$0xff]   ;;  %v11801_v57 = vld [vmem:[#allocation5 + $0x430] sm:$0xff]  }
  0xbf   :  { %11040 = vmatpush3.bf16.msra.mxu1 %v11747_v59  ;;  %11019 = vmatprep.subr.bf16.mxu0 %v11748_v60  ;;  %v11803_v59 = vld [vmem:[#allocation5 + $0x4b0] sm:$0xff]   ;;  %v11804_v60 = vld [vmem:[#allocation5 + $0x478] sm:$0xff]  }
  0xc0   :  { %11041 = vmatprep.subr.bf16.mxu1 %v11750_v62  ;;  %4261 = vmatprep.mubr.bf16.mxu0 %v167_v24  ;;  %v11806_v62 = vld [vmem:[#allocation5 + $0x4f8] sm:$0xff]   ;;  %v11824_v24 = vld [vmem:[#allocation5 + $0x560] sm:$0xff]  }
  0xc1   :  { %4301 = vmatprep.mubr.bf16.mxu1 %v169_v30  ;;  %v11830_v30 = vld [vmem:[#allocation5 + $0x5e8] sm:$0xff]  }
  0xc2   :  { %11020 = vmatpush3.bf16.msra.mxu0 %v11749_v61  ;;  %v11805_v61 = vld [vmem:[#allocation5 + $0x438] sm:$0xff]  }
  0xc3   :  { %11042 = vmatpush3.bf16.msra.mxu1 %v11751_v63  ;;  %11021 = vmatprep.subr.bf16.mxu0 %v11752_v0  ;;  %v112_v63 = vld [vmem:[#allocation2 + $0x88] sm:$0xff] }
  0xc4   :  { %11043 = vmatprep.subr.bf16.mxu1 %v11754_v2  ;;  %v171_v0 = vpack.c.bf16 %v112_v63, %v112_v63  ;;  %v111_v2 = vld [vmem:[#allocation2 + $0x80] sm:$0xff]  ;;  %v11855_v63 = vld [vmem:[#allocation5 + $0x698] sm:$0xff]  }
  0xc6   :  { %11022 = vmatpush3.bf16.msra.mxu0 %v11753_v1  ;;  %v11807_v1 = vld [vmem:[#allocation5 + $0x4b8] sm:$0xff]  }
  0xc7   :  { %11044 = vmatpush3.bf16.msra.mxu1 %v11755_v3  ;;  %11023 = vmatprep.subr.bf16.mxu0 %v11756_v4  ;;  %v170_v3 = vpack.c.bf16 %v111_v2, %v111_v2  ;;  %v11808_v4 = vld [vmem:[#allocation5 + $0x540] sm:$0xff]  }
  0xc8   :  { %11045 = vmatprep.subr.bf16.mxu1 %v11758_v6  ;;  %v11858_v2 = vld [vmem:[#allocation5 + $0x6e0] sm:$0xff]  }
  0xca   :  { %11024 = vmatpush3.bf16.msra.mxu0 %v11757_v5  ;;  %v114_v5 = vld [vmem:[#allocation2 + $0x98] sm:$0xff] }
  0xcb   :  { %11046 = vmatpush3.bf16.msra.mxu1 %v11759_v7  ;;  %11025 = vmatprep.subr.bf16.mxu0 %v11760_v8  ;;  %v173_v6 = vpack.c.bf16 %v114_v5, %v114_v5  ;;  %v11809_v7 = vld [vmem:[#allocation5 + $0x500] sm:$0xff]   ;;  %v113_v8 = vld [vmem:[#allocation2 + $0x90] sm:$0xff]  ;;  %v11861_v5 = vld [vmem:[#allocation5 + $0x628] sm:$0xff]  }
  0xcc   :  { %11047 = vmatprep.subr.bf16.mxu1 %v11762_v10  ;;  %v11810_v10 = vld [vmem:[#allocation5 + $0x5c0] sm:$0xff]  }
  0xce   :  { %11026 = vmatpush3.bf16.msra.mxu0 %v11761_v9  ;;  %v172_v9 = vpack.c.bf16 %v113_v8, %v113_v8  ;;  %v11864_v8 = vld [vmem:[#allocation5 + $0x670] sm:$0xff]  }
  0xcf   :  { %11048 = vmatpush3.bf16.msra.mxu1 %v11763_v11  ;;  %11027 = vmatprep.subr.bf16.mxu0 %v11764_v12  ;;  %v11811_v11 = vld [vmem:[#allocation5 + $0x580] sm:$0xff]   ;;  %v11812_v12 = vld [vmem:[#allocation5 + $0x548] sm:$0xff]  }
  0xd0   :  { %11049 = vmatprep.subr.bf16.mxu1 %v11766_v14  ;;  %v11814_v14 = vld [vmem:[#allocation5 + $0x5c8] sm:$0xff]  }
  0xd2   :  { %11028 = vmatpush3.bf16.msra.mxu0 %v11765_v13  ;;  %v11813_v13 = vld [vmem:[#allocation5 + $0x508] sm:$0xff]  }
  0xd3   :  { %11050 = vmatpush3.bf16.msra.mxu1 %v11767_v15  ;;  %11029 = vmatprep.subr.bf16.mxu0 %v11768_v16  ;;  %v11815_v15 = vld [vmem:[#allocation5 + $0x588] sm:$0xff]   ;;  %v11816_v16 = vld [vmem:[#allocation5 + $0x550] sm:$0xff]  }
  0xd4   :  { %11051 = vmatprep.subr.bf16.mxu1 %v11770_v18  ;;  %v11818_v18 = vld [vmem:[#allocation5 + $0x5d0] sm:$0xff]  }
  0xd6   :  { %11030 = vmatpush3.bf16.msra.mxu0 %v11769_v17  ;;  %v11817_v17 = vld [vmem:[#allocation5 + $0x510] sm:$0xff]  }
  0xd7   :  { %11052 = vmatpush3.bf16.msra.mxu1 %v11771_v19  ;;  %11031 = vmatprep.subr.bf16.mxu0 %v11772_v20  ;;  %v11819_v19 = vld [vmem:[#allocation5 + $0x590] sm:$0xff]   ;;  %v11820_v20 = vld [vmem:[#allocation5 + $0x558] sm:$0xff]  }
  0xd8   :  { %11053 = vmatprep.subr.bf16.mxu1 %v11774_v22  ;;  %v11822_v22 = vld [vmem:[#allocation5 + $0x5d8] sm:$0xff]  }
  0xda   :  { %11032 = vmatpush3.bf16.msra.mxu0 %v11773_v21  ;;  %v11821_v21 = vld [vmem:[#allocation5 + $0x518] sm:$0xff]  }
  0xdb   :  { %11054 = vmatpush3.bf16.msra.mxu1 %v11775_v25  ;;  %11061 = vmatprep.subr.bf16.mxu0 %v11776_v28  ;;  %v11825_v25 = vld [vmem:[#allocation5 + $0x520] sm:$0xff]   ;;  %v11828_v28 = vld [vmem:[#allocation5 + $0x568] sm:$0xff]  }
  0xdc   :  { %11083 = vmatprep.subr.bf16.mxu1 %v11778_v34  ;;  %v11834_v34 = vld [vmem:[#allocation5 + $0x5f0] sm:$0xff]  }
  0xdd   :  { %4262 = vmatmul.mubr.bf16.vlgmr.msra.gmra.mrb[12].mxu0 %v166_v27  ;;  %v11827_v27 = vld [vmem:[#allocation5 + $0x5a0] sm:$0xff]  }
  0xde   :  { %11062 = vmatpush3.bf16.msra.mxu0 %v11777_v31  ;;  %4302 = vmatmul.mubr.bf16.vlgmr.msra.gmra.mrb[12].mxu1 %v168_v33  ;;  %v11831_v31 = vld [vmem:[#allocation5 + $0x5a8] sm:$0xff]   ;;  %v11833_v33 = vld [vmem:[#allocation5 + $0x530] sm:$0xff]  }
  0xdf   :  { %11084 = vmatpush3.bf16.msra.mxu1 %v11779_v35  ;;  %11063 = vmatprep.subr.bf16.mxu0 %v11780_v36  ;;  %v11835_v35 = vld [vmem:[#allocation5 + $0x5b0] sm:$0xff]   ;;  %v11836_v36 = vld [vmem:[#allocation5 + $0x578] sm:$0xff]  }
  0xe0   :  { %11085 = vmatprep.subr.bf16.mxu1 %v11782_v38  ;;  %4341 = vmatprep.mubr.bf16.mxu0 %v171_v0  ;;  %v11838_v38 = vld [vmem:[#allocation5 + $0x5f8] sm:$0xff]   ;;  %v11856_v0 = vld [vmem:[#allocation5 + $0x660] sm:$0xff]  }
  0xe1   :  { %4381 = vmatprep.mubr.bf16.mxu1 %v173_v6  ;;  %v11862_v6 = vld [vmem:[#allocation5 + $0x6e8] sm:$0xff]  }
  0xe2   :  { %11064 = vmatpush3.bf16.msra.mxu0 %v11781_v37  ;;  %v11837_v37 = vld [vmem:[#allocation5 + $0x538] sm:$0xff]  }
  0xe3   :  { %11086 = vmatpush3.bf16.msra.mxu1 %v11783_v39  ;;  %11065 = vmatprep.subr.bf16.mxu0 %v11784_v40  ;;  %v116_v39 = vld [vmem:[#allocation2 + $0xa8] sm:$0xff] }
  0xe4   :  { %11087 = vmatprep.subr.bf16.mxu1 %v11786_v42  ;;  %v175_v40 = vpack.c.bf16 %v116_v39, %v116_v39  ;;  %v115_v42 = vld [vmem:[#allocation2 + $0xa0] sm:$0xff]  ;;  %v11886_v39 = vld [vmem:[#allocation5 + $0x7d8] sm:$0xff]  }
  0xe6   :  { %11066 = vmatpush3.bf16.msra.mxu0 %v11785_v41  ;;  %v11839_v41 = vld [vmem:[#allocation5 + $0x5b8] sm:$0xff]  }
  0xe7   :  { %11088 = vmatpush3.bf16.msra.mxu1 %v11787_v43  ;;  %11067 = vmatprep.subr.bf16.mxu0 %v11788_v44  ;;  %v174_v43 = vpack.c.bf16 %v115_v42, %v115_v42  ;;  %v11840_v44 = vld [vmem:[#allocation5 + $0x640] sm:$0xff]  }
  0xe8   :  { %11089 = vmatprep.subr.bf16.mxu1 %v11790_v46 }
  0xea   :  { %11068 = vmatpush3.bf16.msra.mxu0 %v11789_v45  ;;  %v118_v45 = vld [vmem:[#allocation2 + $0xb8] sm:$0xff] }
  0xeb   :  { %11090 = vmatpush3.bf16.msra.mxu1 %v11791_v47  ;;  %11069 = vmatprep.subr.bf16.mxu0 %v11792_v48  ;;  %v177_v46 = vpack.c.bf16 %v118_v45, %v118_v45  ;;  %v11841_v47 = vld [vmem:[#allocation5 + $0x600] sm:$0xff]   ;;  %v117_v48 = vld [vmem:[#allocation2 + $0xb0] sm:$0xff] }
  0xec   :  { %11091 = vmatprep.subr.bf16.mxu1 %v11794_v50  ;;  %v11842_v50 = vld [vmem:[#allocation5 + $0x6c0] sm:$0xff]  }
  0xee   :  { %11070 = vmatpush3.bf16.msra.mxu0 %v11793_v49  ;;  %v176_v49 = vpack.c.bf16 %v117_v48, %v117_v48 }
  0xef   :  { %11092 = vmatpush3.bf16.msra.mxu1 %v11795_v51  ;;  %11071 = vmatprep.subr.bf16.mxu0 %v11796_v52  ;;  %v11843_v51 = vld [vmem:[#allocation5 + $0x680] sm:$0xff]   ;;  %v11844_v52 = vld [vmem:[#allocation5 + $0x648] sm:$0xff]  }
  0xf0   :  { %11093 = vmatprep.subr.bf16.mxu1 %v11798_v54  ;;  %v11846_v54 = vld [vmem:[#allocation5 + $0x6c8] sm:$0xff]  }
  0xf2   :  { %11072 = vmatpush3.bf16.msra.mxu0 %v11797_v53  ;;  %v11845_v53 = vld [vmem:[#allocation5 + $0x608] sm:$0xff]  }
  0xf3   :  { %11094 = vmatpush3.bf16.msra.mxu1 %v11799_v55  ;;  %11073 = vmatprep.subr.bf16.mxu0 %v11800_v56  ;;  %v11847_v55 = vld [vmem:[#allocation5 + $0x688] sm:$0xff]   ;;  %v11848_v56 = vld [vmem:[#allocation5 + $0x650] sm:$0xff]  }
  0xf4   :  { %11095 = vmatprep.subr.bf16.mxu1 %v11802_v58  ;;  %v11850_v58 = vld [vmem:[#allocation5 + $0x6d0] sm:$0xff]  }
  0xf6   :  { %11074 = vmatpush3.bf16.msra.mxu0 %v11801_v57  ;;  %v11849_v57 = vld [vmem:[#allocation5 + $0x610] sm:$0xff]  }
  0xf7   :  { %11096 = vmatpush3.bf16.msra.mxu1 %v11803_v59  ;;  %11075 = vmatprep.subr.bf16.mxu0 %v11804_v60  ;;  %v11851_v59 = vld [vmem:[#allocation5 + $0x690] sm:$0xff]   ;;  %v11852_v60 = vld [vmem:[#allocation5 + $0x658] sm:$0xff]  }
  0xf8   :  { %11097 = vmatprep.subr.bf16.mxu1 %v11806_v62  ;;  %v11854_v62 = vld [vmem:[#allocation5 + $0x6d8] sm:$0xff]  }
  0xfa   :  { %11076 = vmatpush3.bf16.msra.mxu0 %v11805_v61  ;;  %v11853_v61 = vld [vmem:[#allocation5 + $0x618] sm:$0xff]  }
  0xfb   :  { %11098 = vmatpush3.bf16.msra.mxu1 %v11807_v1  ;;  %11105 = vmatprep.subr.bf16.mxu0 %v11808_v4  ;;  %v11857_v1 = vld [vmem:[#allocation5 + $0x620] sm:$0xff]   ;;  %v11860_v4 = vld [vmem:[#allocation5 + $0x668] sm:$0xff]  }
  0xfc   :  { %11127 = vmatprep.subr.bf16.mxu1 %v11810_v10  ;;  %v11866_v10 = vld [vmem:[#allocation5 + $0x6f0] sm:$0xff]  }
  0xfd   :  { %4342 = vmatmul.mubr.bf16.vlgmr.msra.gmra.mrb[16].mxu0 %v170_v3  ;;  %v11859_v3 = vld [vmem:[#allocation5 + $0x6a0] sm:$0xff]  }
  0xfe   :  { %11106 = vmatpush3.bf16.msra.mxu0 %v11809_v7  ;;  %4382 = vmatmul.mubr.bf16.vlgmr.msra.gmra.mrb[16].mxu1 %v172_v9  ;;  %v11863_v7 = vld [vmem:[#allocation5 + $0x6a8] sm:$0xff]   ;;  %v11865_v9 = vld [vmem:[#allocation5 + $0x630] sm:$0xff]  }
  0xff   :  { %11128 = vmatpush3.bf16.msra.mxu1 %v11811_v11  ;;  %11107 = vmatprep.subr.bf16.mxu0 %v11812_v12  ;;  %v11867_v11 = vld [vmem:[#allocation5 + $0x6b0] sm:$0xff]   ;;  %v11868_v12 = vld [vmem:[#allocation5 + $0x678] sm:$0xff]  }
 0x100   :  { %11129 = vmatprep.subr.bf16.mxu1 %v11814_v14  ;;  %4421 = vmatprep.mubr.bf16.mxu0 %v175_v40  ;;  %v11870_v14 = vld [vmem:[#allocation5 + $0x6f8] sm:$0xff]  }
 0x101   :  { %4461 = vmatprep.mubr.bf16.mxu1 %v177_v46  ;;  %v11889_v46 = vld [vmem:[#allocation5 + $0x720] sm:$0xff]  }
 0x102   :  { %11108 = vmatpush3.bf16.msra.mxu0 %v11813_v13  ;;  %v11869_v13 = vld [vmem:[#allocation5 + $0x638] sm:$0xff]  }
 0x103   :  { %11130 = vmatpush3.bf16.msra.mxu1 %v11815_v15  ;;  %11109 = vmatprep.subr.bf16.mxu0 %v11816_v16  ;;  %v120_v15 = vld [vmem:[#allocation2 + $0xc8] sm:$0xff] }
 0x104   :  { %11131 = vmatprep.subr.bf16.mxu1 %v11818_v18  ;;  %v179_v16 = vpack.c.bf16 %v120_v15, %v120_v15  ;;  %v119_v18 = vld [vmem:[#allocation2 + $0xc0] sm:$0xff] }
 0x105   :  { %v11908_v15 = vld [vmem:[#allocation5 + $0x848] sm:$0xff]  }
 0x106   :  { %11110 = vmatpush3.bf16.msra.mxu0 %v11817_v17  ;;  %v11871_v17 = vld [vmem:[#allocation5 + $0x6b8] sm:$0xff]  }
 0x107   :  { %11132 = vmatpush3.bf16.msra.mxu1 %v11819_v19  ;;  %11111 = vmatprep.subr.bf16.mxu0 %v11820_v20  ;;  %v178_v19 = vpack.c.bf16 %v119_v18, %v119_v18  ;;  %v11872_v20 = vld [vmem:[#allocation5 + $0x740] sm:$0xff]   ;;  %v11911_v18 = vld [vmem:[#allocation5 + $0x888] sm:$0xff]  }
 0x108   :  { %11133 = vmatprep.subr.bf16.mxu1 %v11822_v22 }
 0x10a   :  { %11112 = vmatpush3.bf16.msra.mxu0 %v11821_v21  ;;  %v122_v21 = vld [vmem:[#allocation2 + $0xd8] sm:$0xff] }
 0x10b   :  { %11134 = vmatpush3.bf16.msra.mxu1 %v11823_v23  ;;  %11113 = vmatprep.subr.bf16.mxu0 %v11824_v24  ;;  %v181_v22 = vpack.c.bf16 %v122_v21, %v122_v21  ;;  %v11873_v23 = vld [vmem:[#allocation5 + $0x700] sm:$0xff]   ;;  %v121_v24 = vld [vmem:[#allocation2 + $0xd0] sm:$0xff]  ;;  %v11914_v21 = vld [vmem:[#allocation5 + $0x8d0] sm:$0xff]  }
 0x10c   :  { %11135 = vmatprep.subr.bf16.mxu1 %v11826_v26  ;;  %v11874_v26 = vld [vmem:[#allocation5 + $0x7c0] sm:$0xff]  }
 0x10e   :  { %11114 = vmatpush3.bf16.msra.mxu0 %v11825_v25  ;;  %v180_v25 = vpack.c.bf16 %v121_v24, %v121_v24  ;;  %v11917_v24 = vld [vmem:[#allocation5 + $0x818] sm:$0xff]  }
 0x10f   :  { %11136 = vmatpush3.bf16.msra.mxu1 %v11827_v27  ;;  %11115 = vmatprep.subr.bf16.mxu0 %v11828_v28  ;;  %v11875_v27 = vld [vmem:[#allocation5 + $0x780] sm:$0xff]   ;;  %v11876_v28 = vld [vmem:[#allocation5 + $0x748] sm:$0xff]  }
 0x110   :  { %11137 = vmatprep.subr.bf16.mxu1 %v11830_v30  ;;  %v11878_v30 = vld [vmem:[#allocation5 + $0x7c8] sm:$0xff]  }
 0x112   :  { %11116 = vmatpush3.bf16.msra.mxu0 %v11829_v29  ;;  %v11877_v29 = vld [vmem:[#allocation5 + $0x708] sm:$0xff]  }
 0x113   :  { %11138 = vmatpush3.bf16.msra.mxu1 %v11831_v31  ;;  %11117 = vmatprep.subr.bf16.mxu0 %v11832_v32  ;;  %v11879_v31 = vld [vmem:[#allocation5 + $0x788] sm:$0xff]   ;;  %v11880_v32 = vld [vmem:[#allocation5 + $0x750] sm:$0xff]  }
 0x114   :  { %11139 = vmatprep.subr.bf16.mxu1 %v11834_v34  ;;  %v11882_v34 = vld [vmem:[#allocation5 + $0x7d0] sm:$0xff]  }
 0x116   :  { %11118 = vmatpush3.bf16.msra.mxu0 %v11833_v33  ;;  %v11881_v33 = vld [vmem:[#allocation5 + $0x710] sm:$0xff]  }
 0x117   :  { %11140 = vmatpush3.bf16.msra.mxu1 %v11835_v35  ;;  %11119 = vmatprep.subr.bf16.mxu0 %v11836_v36  ;;  %v11883_v35 = vld [vmem:[#allocation5 + $0x790] sm:$0xff]   ;;  %v11884_v36 = vld [vmem:[#allocation5 + $0x758] sm:$0xff]  }
 0x118   :  { %11141 = vmatprep.subr.bf16.mxu1 %v11838_v38 }
 0x11a   :  { %11120 = vmatpush3.bf16.msra.mxu0 %v11837_v37  ;;  %v11885_v37 = vld [vmem:[#allocation5 + $0x718] sm:$0xff]  }
 0x11b   :  { %11142 = vmatpush3.bf16.msra.mxu1 %v11839_v41  ;;  %11149 = vmatprep.subr.bf16.mxu0 %v11840_v44  ;;  %v11887_v41 = vld [vmem:[#allocation5 + $0x798] sm:$0xff]  }
 0x11c   :  { %11171 = vmatprep.subr.bf16.mxu1 %v11842_v50 }
 0x11d   :  { %4422 = vmatmul.mubr.bf16.vlgmr.msra.gmra.mrb[20].mxu0 %v174_v43  ;;  %v11888_v43 = vld [vmem:[#allocation5 + $0x760] sm:$0xff]  }
 0x11e   :  { %11150 = vmatpush3.bf16.msra.mxu0 %v11841_v47  ;;  %4462 = vmatmul.mubr.bf16.vlgmr.msra.gmra.mrb[20].mxu1 %v176_v49  ;;  %v11890_v49 = vld [vmem:[#allocation5 + $0x7e0] sm:$0xff]  }
 0x11f   :  { %11172 = vmatpush3.bf16.msra.mxu1 %v11843_v51  ;;  %11151 = vmatprep.subr.bf16.mxu0 %v11844_v52  ;;  %v11891_v51 = vld [vmem:[#allocation5 + $0x7a0] sm:$0xff]  }
 0x120   :  { %11173 = vmatprep.subr.bf16.mxu1 %v11846_v54  ;;  %4501 = vmatprep.mubr.bf16.mxu0 %v179_v16  ;;  %v11892_v54 = vld [vmem:[#allocation5 + $0x768] sm:$0xff]  }
 0x121   :  { %4541 = vmatprep.mubr.bf16.mxu1 %v181_v22  ;;  %v11909_v16 = vld [vmem:[#allocation5 + $0x808] sm:$0xff]   ;;  %v11915_v22 = vld [vmem:[#allocation5 + $0x890] sm:$0xff]  }
 0x122   :  { %11152 = vmatpush3.bf16.msra.mxu0 %v11845_v53 }
 0x123   :  { %11174 = vmatpush3.bf16.msra.mxu1 %v11847_v55  ;;  %11153 = vmatprep.subr.bf16.mxu0 %v11848_v56  ;;  %v11893_v56 = vld [vmem:[#allocation5 + $0x728] sm:$0xff]  }
 0x124   :  { %11175 = vmatprep.subr.bf16.mxu1 %v11850_v58  ;;  %v11895_v58 = vld [vmem:[#allocation5 + $0x7a8] sm:$0xff]  }
 0x126   :  { %11154 = vmatpush3.bf16.msra.mxu0 %v11849_v57  ;;  %v11894_v57 = vld [vmem:[#allocation5 + $0x7e8] sm:$0xff]  }
 0x127   :  { %11176 = vmatpush3.bf16.msra.mxu1 %v11851_v59  ;;  %11155 = vmatprep.subr.bf16.mxu0 %v11852_v60  ;;  %v11896_v59 = vld [vmem:[#allocation5 + $0x770] sm:$0xff]  }
 0x128   :  { %11177 = vmatprep.subr.bf16.mxu1 %v11854_v62  ;;  %v11897_v60 = vld [vmem:[#allocation5 + $0x730] sm:$0xff]  }
 0x129   :  { %v11899_v62 = vld [vmem:[#allocation5 + $0x7b0] sm:$0xff]  }
 0x12a   :  { %11156 = vmatpush3.bf16.msra.mxu0 %v11853_v61  ;;  %v11898_v61 = vld [vmem:[#allocation5 + $0x7f0] sm:$0xff]  }
 0x12b   :  { %11178 = vmatpush3.bf16.msra.mxu1 %v11855_v63  ;;  %11157 = vmatprep.subr.bf16.mxu0 %v11856_v0  ;;  %v11900_v63 = vld [vmem:[#allocation5 + $0x778] sm:$0xff]  }
 0x12c   :  { %11179 = vmatprep.subr.bf16.mxu1 %v11858_v2  ;;  %v11901_v0 = vld [vmem:[#allocation5 + $0x738] sm:$0xff]   ;;  %v124_v2 = vld [vmem:[#allocation2 + $0xe8] sm:$0xff] }
 0x12e   :  { %11158 = vmatpush3.bf16.msra.mxu0 %v11857_v1  ;;  %v11902_v1 = vld [vmem:[#allocation5 + $0x7f8] sm:$0xff]  }
 0x12f   :  { %11180 = vmatpush3.bf16.msra.mxu1 %v11859_v3  ;;  %11159 = vmatprep.subr.bf16.mxu0 %v11860_v4  ;;  %v183_v3 = vpack.c.bf16 %v124_v2, %v124_v2  ;;  %v11903_v4 = vld [vmem:[#allocation5 + $0x7b8] sm:$0xff]   ;;  %v11939_v2 = vld [vmem:[#allocation5 + $0x980] sm:$0xff]  }
 0x130   :  { %11181 = vmatprep.subr.bf16.mxu1 %v11862_v6 }
 0x132   :  { %11160 = vmatpush3.bf16.msra.mxu0 %v11861_v5  ;;  %v123_v5 = vld [vmem:[#allocation2 + $0xe0] sm:$0xff] }
 0x133   :  { %11182 = vmatpush3.bf16.msra.mxu1 %v11863_v7  ;;  %11161 = vmatprep.subr.bf16.mxu0 %v11864_v8  ;;  %v182_v6 = vpack.c.bf16 %v123_v5, %v123_v5  ;;  %v11904_v7 = vld [vmem:[#allocation5 + $0x840] sm:$0xff]   ;;  %v11942_v5 = vld [vmem:[#allocation5 + $0x9c8] sm:$0xff]  }
 0x134   :  { %11183 = vmatprep.subr.bf16.mxu1 %v11866_v10  ;;  %v126_v8 = vld [vmem:[#allocation2 + $0xf8] sm:$0xff] }
 0x135   :  { %v11905_v10 = vld [vmem:[#allocation5 + $0x800] sm:$0xff]  }
 0x136   :  { %11162 = vmatpush3.bf16.msra.mxu0 %v11865_v9  ;;  %v185_v9 = vpack.c.bf16 %v126_v8, %v126_v8  ;;  %v11945_v8 = vld [vmem:[#allocation5 + $0x910] sm:$0xff]  }
 0x137   :  { %11184 = vmatpush3.bf16.msra.mxu1 %v11867_v11  ;;  %11163 = vmatprep.subr.bf16.mxu0 %v11868_v12  ;;  %v125_v11 = vld [vmem:[#allocation2 + $0xf0] sm:$0xff] }
 0x138   :  { %11185 = vmatprep.subr.bf16.mxu1 %v11870_v14  ;;  %v184_v12 = vpack.c.bf16 %v125_v11, %v125_v11  ;;  %v11907_v14 = vld [vmem:[#allocation5 + $0x880] sm:$0xff]   ;;  %v11948_v11 = vld [vmem:[#allocation5 + $0x958] sm:$0xff]  }
 0x13a   :  { %11164 = vmatpush3.bf16.msra.mxu0 %v11869_v13  ;;  %v11906_v13 = vld [vmem:[#allocation5 + $0x8c0] sm:$0xff]  }
 0x13b   :  { %11186 = vmatpush3.bf16.msra.mxu1 %v11871_v17  ;;  %11193 = vmatprep.subr.bf16.mxu0 %v11872_v20  ;;  %v11910_v17 = vld [vmem:[#allocation5 + $0x8c8] sm:$0xff]   ;;  %v11913_v20 = vld [vmem:[#allocation5 + $0x810] sm:$0xff]  }
 0x13c   :  { %11215 = vmatprep.subr.bf16.mxu1 %v11874_v26  ;;  %v11918_v26 = vld [vmem:[#allocation5 + $0x8d8] sm:$0xff]  }
 0x13d   :  { %4502 = vmatmul.mubr.bf16.vlgmr.msra.gmra.mrb[24].mxu0 %v178_v19  ;;  %v11912_v19 = vld [vmem:[#allocation5 + $0x850] sm:$0xff]  }
 0x13e   :  { %11194 = vmatpush3.bf16.msra.mxu0 %v11873_v23  ;;  %4542 = vmatmul.mubr.bf16.vlgmr.msra.gmra.mrb[24].mxu1 %v180_v25  ;;  %v11916_v23 = vld [vmem:[#allocation5 + $0x858] sm:$0xff]  }
 0x13f   :  { %11216 = vmatpush3.bf16.msra.mxu1 %v11875_v27  ;;  %11195 = vmatprep.subr.bf16.mxu0 %v11876_v28  ;;  %v11919_v28 = vld [vmem:[#allocation5 + $0x898] sm:$0xff]  }
 0x140   :  { %11217 = vmatprep.subr.bf16.mxu1 %v11878_v30  ;;  %4581 = vmatprep.mubr.bf16.mxu0 %v183_v3  ;;  %v11940_v3 = vld [vmem:[#allocation5 + $0x948] sm:$0xff]  }
 0x141   :  { %4621 = vmatprep.mubr.bf16.mxu1 %v185_v9  ;;  %v11946_v9 = vld [vmem:[#allocation5 + $0x9d0] sm:$0xff]  }
 0x142   :  { %11196 = vmatpush3.bf16.msra.mxu0 %v11877_v29 }
 0x143   :  { %11218 = vmatpush3.bf16.msra.mxu1 %v11879_v31  ;;  %11197 = vmatprep.subr.bf16.mxu0 %v11880_v32  ;;  %v11920_v31 = vld [vmem:[#allocation5 + $0x860] sm:$0xff]  }
 0x144   :  { %11219 = vmatprep.subr.bf16.mxu1 %v11882_v34 }
 0x146   :  { %11198 = vmatpush3.bf16.msra.mxu0 %v11881_v33  ;;  %v11921_v33 = vld [vmem:[#allocation5 + $0x820] sm:$0xff]  }
 0x147   :  { %11220 = vmatpush3.bf16.msra.mxu1 %v11883_v35  ;;  %11199 = vmatprep.subr.bf16.mxu0 %v11884_v36  ;;  %v11922_v36 = vld [vmem:[#allocation5 + $0x8e0] sm:$0xff]  }
 0x148   :  { %11221 = vmatprep.subr.bf16.mxu1 %v11886_v39 }
 0x14a   :  { %11200 = vmatpush3.bf16.msra.mxu0 %v11885_v37 }
 0x14b   :  { %11222 = vmatpush3.bf16.msra.mxu1 %v11887_v41  ;;  %11201 = vmatprep.subr.bf16.mxu0 %v11888_v43  ;;  %v11924_v41 = vld [vmem:[#allocation5 + $0x868] sm:$0xff]  }
 0x14c   :  { %11223 = vmatprep.subr.bf16.mxu1 %v11890_v49  ;;  %v11925_v43 = vld [vmem:[#allocation5 + $0x828] sm:$0xff]   ;;  %v11930_v49 = vld [vmem:[#allocation5 + $0x8f0] sm:$0xff]  }
 0x14e   :  { %11202 = vmatpush3.bf16.msra.mxu0 %v11889_v46  ;;  %v11927_v46 = vld [vmem:[#allocation5 + $0x8a8] sm:$0xff]  }
 0x14f   :  { %11224 = vmatpush3.bf16.msra.mxu1 %v11891_v51  ;;  %11203 = vmatprep.subr.bf16.mxu0 %v11892_v54  ;;  %v11932_v51 = vld [vmem:[#allocation5 + $0x878] sm:$0xff]   ;;  %v128_v54 = vld [vmem:[#allocation2 + $0x108] sm:$0xff] }
 0x150   :  { %v10901_v38 = vpop.f32.mrb[0].mxu0  ;;  %11225 = vmatprep.subr.bf16.mxu1 %v11894_v57  ;;  %v127_v57 = vld [vmem:[#allocation2 + $0x100] sm:$0xff] }
 0x151   :  { %v10923_v40 = vpop.f32.mrb[0].mxu1  ;;  %v10902_v42 = vpop.f32.mrb[1].mxu0 }
 0x152   :  { %v10903_v44 = vadd.f32 %v10902_v42, %v10901_v38  ;;  %v10924_v45 = vpop.f32.mrb[1].mxu1  ;;  %v10904_v48 = vpop.f32.mrb[2].mxu0  ;;  %11204 = vmatpush3.bf16.msra.mxu0 %v11893_v56  ;;  %v11923_v38 = vld [vmem:[#allocation5 + $0x8a0] sm:$0xff]   ;;  %v11935_v56 = vld [vmem:[#allocation5 + $0x8b8] sm:$0xff]  }
 0x153   :  { %v10925_v47 = vadd.f32 %v10924_v45, %v10923_v40  ;;  %v10905_v50 = vpop.f32.mrb[3].mxu0  ;;  %v10926_v53 = vpop.f32.mrb[2].mxu1  ;;  %11226 = vmatpush3.bf16.msra.mxu1 %v11895_v58  ;;  %11205 = vmatprep.subr.bf16.mxu0 %v11896_v59  ;;  %v11926_v45 = vld [vmem:[#allocation5 + $0x8e8] sm:$0xff]   ;;  %v11929_v48 = vld [vmem:[#allocation5 + $0x830] sm:$0xff]   ;;  %v186_v58 = vpack.c.bf16 %v127_v57, %v127_v57  ;;  %v11936_v59 = vld [vmem:[#allocation5 + $0x940] sm:$0xff]  }
 0x154   :  { %v10927_v55 = vpop.f32.mrb[3].mxu1  ;;  %11227 = vmatprep.subr.bf16.mxu1 %v11898_v61  ;;  %v11931_v50 = vld [vmem:[#allocation5 + $0x8b0] sm:$0xff]   ;;  %v11934_v53 = vld [vmem:[#allocation5 + $0x8f8] sm:$0xff]   ;;  %v11974_v57 = vld [vmem:[#allocation5 + $0xac8] sm:$0xff]  }
 0x155   :  { %v13353_v52 = vadd.f32 %v10925_v47, %v10903_v44  ;;  %v11928_v47 = vld [vmem:[#allocation5 + $0x870] sm:$0xff]   ;;  %v187_v55 = vpack.c.bf16 %v128_v54, %v128_v54  ;;  %v11971_v54 = vld [vmem:[#allocation5 + $0xa80] sm:$0xff]  }
 0x156   :  { %11206 = vmatpush3.bf16.msra.mxu0 %v11897_v60  ;;  %v130_v60 = vld [vmem:[#allocation2 + $0x118] sm:$0xff] }
 0x157   :  { %11228 = vmatpush3.bf16.msra.mxu1 %v11899_v62  ;;  %11207 = vmatprep.subr.bf16.mxu0 %v11900_v63  ;;  %v189_v61 = vpack.c.bf16 %v130_v60, %v130_v60  ;;  %v11937_v62 = vld [vmem:[#allocation5 + $0x900] sm:$0xff]   ;;  %v129_v63 = vld [vmem:[#allocation2 + $0x110] sm:$0xff]  ;;  %v11977_v60 = vld [vmem:[#allocation5 + $0xa10] sm:$0xff]  }
 0x158   :  { %11229 = vmatprep.subr.bf16.mxu1 %v11902_v1  ;;  %v11938_v1 = vld [vmem:[#allocation5 + $0x9c0] sm:$0xff]  }
 0x15a   :  { %11208 = vmatpush3.bf16.msra.mxu0 %v11901_v0  ;;  %v188_v0 = vpack.c.bf16 %v129_v63, %v129_v63  ;;  %v11980_v63 = vld [vmem:[#allocation5 + $0xa58] sm:$0xff]  }
 0x15b   :  { %11230 = vmatpush3.bf16.msra.mxu1 %v11903_v4  ;;  %11237 = vmatprep.subr.bf16.mxu0 %v11904_v7  ;;  %v11941_v4 = vld [vmem:[#allocation5 + $0x908] sm:$0xff]   ;;  %v11944_v7 = vld [vmem:[#allocation5 + $0x950] sm:$0xff]  }
 0x15c   :  { %11259 = vmatprep.subr.bf16.mxu1 %v11906_v13 }
 0x15d   :  { %4582 = vmatmul.mubr.bf16.vlgmr.msra.gmra.mrb[28].mxu0 %v182_v6  ;;  %v11943_v6 = vld [vmem:[#allocation5 + $0x988] sm:$0xff]  }
 0x15e   :  { %11238 = vmatpush3.bf16.msra.mxu0 %v11905_v10  ;;  %4622 = vmatmul.mubr.bf16.vlgmr.msra.gmra.mrb[28].mxu1 %v184_v12  ;;  %v11947_v10 = vld [vmem:[#allocation5 + $0x990] sm:$0xff]   ;;  %v11949_v12 = vld [vmem:[#allocation5 + $0x918] sm:$0xff]  }
 0x15f   :  { %11260 = vmatpush3.bf16.msra.mxu1 %v11907_v14  ;;  %11239 = vmatprep.subr.bf16.mxu0 %v11908_v15  ;;  %v11950_v14 = vld [vmem:[#allocation5 + $0x9d8] sm:$0xff]  }
 0x160   :  { %11261 = vmatprep.subr.bf16.mxu1 %v11910_v17  ;;  %4661 = vmatprep.mubr.bf16.mxu0 %v187_v55  ;;  %v11972_v55 = vld [vmem:[#allocation5 + $0xa48] sm:$0xff]  }
 0x161   :  { %4701 = vmatprep.mubr.bf16.mxu1 %v189_v61  ;;  %v11978_v61 = vld [vmem:[#allocation5 + $0xad0] sm:$0xff]  }
 0x162   :  { %11240 = vmatpush3.bf16.msra.mxu0 %v11909_v16  ;;  %v11951_v16 = vld [vmem:[#allocation5 + $0x998] sm:$0xff]  }
 0x163   :  { %11262 = vmatpush3.bf16.msra.mxu1 %v11911_v18  ;;  %11241 = vmatprep.subr.bf16.mxu0 %v11912_v19  ;;  %v11952_v19 = vld [vmem:[#allocation5 + $0x960] sm:$0xff]  }
 0x164   :  { %11263 = vmatprep.subr.bf16.mxu1 %v11914_v21  ;;  %v11953_v21 = vld [vmem:[#allocation5 + $0x920] sm:$0xff]  }
 0x166   :  { %11242 = vmatpush3.bf16.msra.mxu0 %v11913_v20 }
 0x167   :  { %11264 = vmatpush3.bf16.msra.mxu1 %v11915_v22  ;;  %11243 = vmatprep.subr.bf16.mxu0 %v11916_v23 }
 0x168   :  { %11265 = vmatprep.subr.bf16.mxu1 %v11918_v26  ;;  %v11955_v26 = vld [vmem:[#allocation5 + $0x9a0] sm:$0xff]  }
 0x16a   :  { %11244 = vmatpush3.bf16.msra.mxu0 %v11917_v24  ;;  %v11954_v24 = vld [vmem:[#allocation5 + $0x9e0] sm:$0xff]  }
 0x16b   :  { %11266 = vmatpush3.bf16.msra.mxu1 %v11919_v28  ;;  %11245 = vmatprep.subr.bf16.mxu0 %v11920_v31  ;;  %v11957_v31 = vld [vmem:[#allocation5 + $0x928] sm:$0xff]  }
 0x16c   :  { %11267 = vmatprep.subr.bf16.mxu1 %v11922_v36  ;;  %v11961_v36 = vld [vmem:[#allocation5 + $0x930] sm:$0xff]  }
 0x16e   :  { %11246 = vmatpush3.bf16.msra.mxu0 %v11921_v33  ;;  %v11958_v33 = vld [vmem:[#allocation5 + $0x9e8] sm:$0xff]  }
 0x16f   :  { %11268 = vmatpush3.bf16.msra.mxu1 %v11923_v38  ;;  %11247 = vmatprep.subr.bf16.mxu0 %v11924_v41  ;;  %v11963_v38 = vld [vmem:[#allocation5 + $0x9b0] sm:$0xff]   ;;  %v11966_v41 = vld [vmem:[#allocation5 + $0x9f8] sm:$0xff]  }
 0x170   :  { %v10945_v25 = vpop.f32.mrb[4].mxu0  ;;  %11269 = vmatprep.subr.bf16.mxu1 %v11926_v45  ;;  %v131_v45 = vld [vmem:[#allocation2 + $0x120] sm:$0xff] }
 0x171   :  { %v10946_v27 = vpop.f32.mrb[5].mxu0  ;;  %v10967_v32 = vpop.f32.mrb[4].mxu1 }
 0x172   :  { %v10947_v29 = vadd.f32 %v10946_v27, %v10945_v25  ;;  %v10948_v30 = vpop.f32.mrb[6].mxu0  ;;  %v10968_v37 = vpop.f32.mrb[5].mxu1  ;;  %11248 = vmatpush3.bf16.msra.mxu0 %v11925_v43 }
 0x173   :  { %v10949_v35 = vpop.f32.mrb[7].mxu0  ;;  %v10969_v39 = vadd.f32 %v10968_v37, %v10967_v32  ;;  %v10970_v40 = vpop.f32.mrb[6].mxu1  ;;  %11270 = vmatpush3.bf16.msra.mxu1 %v11927_v46  ;;  %11249 = vmatprep.subr.bf16.mxu0 %v11928_v47  ;;  %v11962_v37 = vld [vmem:[#allocation5 + $0x9f0] sm:$0xff]   ;;  %v190_v46 = vpack.c.bf16 %v131_v45, %v131_v45  ;;  %v11968_v47 = vld [vmem:[#allocation5 + $0xa40] sm:$0xff]   ;;  %v12006_v45 = vld [vmem:[#allocation5 + $0xbc8] sm:$0xff]  }
 0x174   :  { %v4104_v34 = vadd.f32 %v10947_v29, %v13353_v52  ;;  %v10971_v42 = vpop.f32.mrb[7].mxu1  ;;  %11271 = vmatprep.subr.bf16.mxu1 %v11930_v49  ;;  %v11933_v52 = vld [vmem:[#allocation5 + $0x838] sm:$0xff]   ;;  %v11956_v29 = vld [vmem:[#allocation5 + $0x968] sm:$0xff]   ;;  %v11960_v35 = vld [vmem:[#allocation5 + $0x970] sm:$0xff]  }
 0x175   :  { %v11965_v40 = vld [vmem:[#allocation5 + $0x938] sm:$0xff]   ;;  %v132_v42 = vld [vmem:[#allocation2 + $0x128] sm:$0xff] }
 0x176   :  { %v13356_v44 = vadd.f32 %v10969_v39, %v4104_v34  ;;  %11250 = vmatpush3.bf16.msra.mxu0 %v11929_v48  ;;  %v11959_v34 = vld [vmem:[#allocation5 + $0x9a8] sm:$0xff]   ;;  %v11964_v39 = vld [vmem:[#allocation5 + $0x978] sm:$0xff]   ;;  %v191_v43 = vpack.c.bf16 %v132_v42, %v132_v42  ;;  %v134_v48 = vld [vmem:[#allocation2 + $0x138] sm:$0xff] }
 0x177   :  { %11272 = vmatpush3.bf16.msra.mxu1 %v11931_v50  ;;  %11251 = vmatprep.subr.bf16.mxu0 %v11932_v51  ;;  %v193_v49 = vpack.c.bf16 %v134_v48, %v134_v48  ;;  %v11969_v50 = vld [vmem:[#allocation5 + $0xa00] sm:$0xff]   ;;  %v133_v51 = vld [vmem:[#allocation2 + $0x130] sm:$0xff]  ;;  %v12009_v48 = vld [vmem:[#allocation5 + $0xb10] sm:$0xff]  }
 0x178   :  { %11273 = vmatprep.subr.bf16.mxu1 %v11934_v53  ;;  %v11970_v53 = vld [vmem:[#allocation5 + $0xac0] sm:$0xff]  }
 0x179   :  { %v12003_v42 = vld [vmem:[#allocation5 + $0xb80] sm:$0xff]  }
 0x17a   :  { %11252 = vmatpush3.bf16.msra.mxu0 %v11933_v52  ;;  %v192_v52 = vpack.c.bf16 %v133_v51, %v133_v51  ;;  %v12012_v51 = vld [vmem:[#allocation5 + $0xb58] sm:$0xff]  }
 0x17b   :  { %11274 = vmatpush3.bf16.msra.mxu1 %v11935_v56  ;;  %11281 = vmatprep.subr.bf16.mxu0 %v11936_v59  ;;  %v11973_v56 = vld [vmem:[#allocation5 + $0xa08] sm:$0xff]   ;;  %v11976_v59 = vld [vmem:[#allocation5 + $0xa50] sm:$0xff]  }
 0x17c   :  { %11303 = vmatprep.subr.bf16.mxu1 %v11938_v1  ;;  %v11981_v1 = vld [vmem:[#allocation5 + $0xa18] sm:$0xff]  }
 0x17d   :  { %4662 = vmatmul.mubr.bf16.vlgmr.msra.gmra.mrb[32].mxu0 %v186_v58  ;;  %v11975_v58 = vld [vmem:[#allocation5 + $0xa88] sm:$0xff]  }
 0x17e   :  { %11282 = vmatpush3.bf16.msra.mxu0 %v11937_v62  ;;  %4702 = vmatmul.mubr.bf16.vlgmr.msra.gmra.mrb[32].mxu1 %v188_v0  ;;  %v11979_v62 = vld [vmem:[#allocation5 + $0xa90] sm:$0xff]  }
 0x17f   :  { %11304 = vmatpush3.bf16.msra.mxu1 %v11939_v2  ;;  %11283 = vmatprep.subr.bf16.mxu0 %v11940_v3  ;;  %v11982_v3 = vld [vmem:[#allocation5 + $0xad8] sm:$0xff]  }
 0x180   :  { %11305 = vmatprep.subr.bf16.mxu1 %v11942_v5  ;;  %4741 = vmatprep.mubr.bf16.mxu0 %v191_v43  ;;  %v12004_v43 = vld [vmem:[#allocation5 + $0xb48] sm:$0xff]  }
 0x181   :  { %4781 = vmatprep.mubr.bf16.mxu1 %v193_v49  ;;  %v12010_v49 = vld [vmem:[#allocation5 + $0xbd0] sm:$0xff]  }
 0x182   :  { %11284 = vmatpush3.bf16.msra.mxu0 %v11941_v4 }
 0x183   :  { %11306 = vmatpush3.bf16.msra.mxu1 %v11943_v6  ;;  %11285 = vmatprep.subr.bf16.mxu0 %v11944_v7  ;;  %v11983_v6 = vld [vmem:[#allocation5 + $0xa98] sm:$0xff]  }
 0x184   :  { %11307 = vmatprep.subr.bf16.mxu1 %v11946_v9 }
 0x186   :  { %11286 = vmatpush3.bf16.msra.mxu0 %v11945_v8  ;;  %v11984_v8 = vld [vmem:[#allocation5 + $0xa60] sm:$0xff]  }
 0x187   :  { %11308 = vmatpush3.bf16.msra.mxu1 %v11947_v10  ;;  %11287 = vmatprep.subr.bf16.mxu0 %v11948_v11  ;;  %v11985_v11 = vld [vmem:[#allocation5 + $0xa20] sm:$0xff]  }
 0x188   :  { %11309 = vmatprep.subr.bf16.mxu1 %v11950_v14 }
 0x18a   :  { %11288 = vmatpush3.bf16.msra.mxu0 %v11949_v12 }
 0x18b   :  { %11310 = vmatpush3.bf16.msra.mxu1 %v11951_v16  ;;  %11289 = vmatprep.subr.bf16.mxu0 %v11952_v19  ;;  %v11987_v16 = vld [vmem:[#allocation5 + $0xaa0] sm:$0xff]  }
 0x18c   :  { %11311 = vmatprep.subr.bf16.mxu1 %v11954_v24  ;;  %v11993_v24 = vld [vmem:[#allocation5 + $0xa30] sm:$0xff]  }
 0x18e   :  { %11290 = vmatpush3.bf16.msra.mxu0 %v11953_v21  ;;  %v11990_v21 = vld [vmem:[#allocation5 + $0xae8] sm:$0xff]  }
 0x18f   :  { %11312 = vmatpush3.bf16.msra.mxu1 %v11955_v26  ;;  %11291 = vmatprep.subr.bf16.mxu0 %v11956_v29  ;;  %v11995_v26 = vld [vmem:[#allocation5 + $0xab0] sm:$0xff]   ;;  %v11998_v29 = vld [vmem:[#allocation5 + $0xaf8] sm:$0xff]  }
 0x190   :  { %v10989_v13 = vpop.f32.mrb[8].mxu0  ;;  %11313 = vmatprep.subr.bf16.mxu1 %v11958_v33  ;;  %v135_v33 = vld [vmem:[#allocation2 + $0x140] sm:$0xff] }
 0x191   :  { %v10990_v15 = vpop.f32.mrb[9].mxu0  ;;  %v11011_v20 = vpop.f32.mrb[8].mxu1 }
 0x192   :  { %v10991_v17 = vadd.f32 %v10990_v15, %v10989_v13  ;;  %v10992_v18 = vpop.f32.mrb[10].mxu0  ;;  %v11012_v25 = vpop.f32.mrb[9].mxu1  ;;  %11292 = vmatpush3.bf16.msra.mxu0 %v11957_v31  ;;  %v11986_v13 = vld [vmem:[#allocation5 + $0xae0] sm:$0xff]  }
 0x193   :  { %v10993_v23 = vpop.f32.mrb[11].mxu0  ;;  %v11013_v27 = vadd.f32 %v11012_v25, %v11011_v20  ;;  %v11014_v28 = vpop.f32.mrb[10].mxu1  ;;  %11314 = vmatpush3.bf16.msra.mxu1 %v11959_v34  ;;  %11293 = vmatprep.subr.bf16.mxu0 %v11960_v35  ;;  %v11988_v18 = vld [vmem:[#allocation5 + $0xa68] sm:$0xff]   ;;  %v11994_v25 = vld [vmem:[#allocation5 + $0xaf0] sm:$0xff]   ;;  %v194_v34 = vpack.c.bf16 %v135_v33, %v135_v33  ;;  %v12000_v35 = vld [vmem:[#allocation5 + $0xb40] sm:$0xff]  }
 0x194   :  { %v4184_v22 = vadd.f32 %v10991_v17, %v13356_v44  ;;  %v11015_v30 = vpop.f32.mrb[11].mxu1  ;;  %11315 = vmatprep.subr.bf16.mxu1 %v11962_v37  ;;  %v11967_v44 = vld [vmem:[#allocation5 + $0x9b8] sm:$0xff]   ;;  %v11989_v20 = vld [vmem:[#allocation5 + $0xa28] sm:$0xff]   ;;  %v11992_v23 = vld [vmem:[#allocation5 + $0xa70] sm:$0xff]  }
 0x195   :  { %v11997_v28 = vld [vmem:[#allocation5 + $0xa38] sm:$0xff]   ;;  %v136_v30 = vld [vmem:[#allocation2 + $0x148] sm:$0xff]  ;;  %v12038_v33 = vld [vmem:[#allocation5 + $0xcc8] sm:$0xff]  }
 0x196   :  { %v13359_v32 = vadd.f32 %v11013_v27, %v4184_v22  ;;  %11294 = vmatpush3.bf16.msra.mxu0 %v11961_v36  ;;  %v11991_v22 = vld [vmem:[#allocation5 + $0xaa8] sm:$0xff]   ;;  %v11996_v27 = vld [vmem:[#allocation5 + $0xa78] sm:$0xff]   ;;  %v195_v31 = vpack.c.bf16 %v136_v30, %v136_v30  ;;  %v138_v36 = vld [vmem:[#allocation2 + $0x158] sm:$0xff] }
 0x197   :  { %11316 = vmatpush3.bf16.msra.mxu1 %v11963_v38  ;;  %11295 = vmatprep.subr.bf16.mxu0 %v11964_v39  ;;  %v197_v37 = vpack.c.bf16 %v138_v36, %v138_v36  ;;  %v12001_v38 = vld [vmem:[#allocation5 + $0xb00] sm:$0xff]   ;;  %v137_v39 = vld [vmem:[#allocation2 + $0x150] sm:$0xff]  ;;  %v12041_v36 = vld [vmem:[#allocation5 + $0xc10] sm:$0xff]  }
 0x198   :  { %11317 = vmatprep.subr.bf16.mxu1 %v11966_v41  ;;  %v12002_v41 = vld [vmem:[#allocation5 + $0xbc0] sm:$0xff]  }
 0x199   :  { %v12035_v30 = vld [vmem:[#allocation5 + $0xc80] sm:$0xff]  }
 0x19a   :  { %11296 = vmatpush3.bf16.msra.mxu0 %v11965_v40  ;;  %v196_v40 = vpack.c.bf16 %v137_v39, %v137_v39  ;;  %v12044_v39 = vld [vmem:[#allocation5 + $0xc58] sm:$0xff]  }
 0x19b   :  { %11318 = vmatpush3.bf16.msra.mxu1 %v11967_v44  ;;  %11325 = vmatprep.subr.bf16.mxu0 %v11968_v47  ;;  %v12005_v44 = vld [vmem:[#allocation5 + $0xb08] sm:$0xff]   ;;  %v12008_v47 = vld [vmem:[#allocation5 + $0xb50] sm:$0xff]  }
 0x19c   :  { %11347 = vmatprep.subr.bf16.mxu1 %v11970_v53  ;;  %v12013_v53 = vld [vmem:[#allocation5 + $0xb18] sm:$0xff]  }
 0x19d   :  { %4742 = vmatmul.mubr.bf16.vlgmr.msra.gmra.mrb[36].mxu0 %v190_v46  ;;  %v12007_v46 = vld [vmem:[#allocation5 + $0xb88] sm:$0xff]  }
 0x19e   :  { %11326 = vmatpush3.bf16.msra.mxu0 %v11969_v50  ;;  %4782 = vmatmul.mubr.bf16.vlgmr.msra.gmra.mrb[36].mxu1 %v192_v52  ;;  %v12011_v50 = vld [vmem:[#allocation5 + $0xb90] sm:$0xff]  }
 0x19f   :  { %11348 = vmatpush3.bf16.msra.mxu1 %v11971_v54  ;;  %11327 = vmatprep.subr.bf16.mxu0 %v11972_v55  ;;  %v12014_v55 = vld [vmem:[#allocation5 + $0xbd8] sm:$0xff]  }
 0x1a0   :  { %11349 = vmatprep.subr.bf16.mxu1 %v11974_v57  ;;  %4821 = vmatprep.mubr.bf16.mxu0 %v195_v31  ;;  %v12036_v31 = vld [vmem:[#allocation5 + $0xc48] sm:$0xff]  }
 0x1a1   :  { %4861 = vmatprep.mubr.bf16.mxu1 %v197_v37  ;;  %v12042_v37 = vld [vmem:[#allocation5 + $0xcd0] sm:$0xff]  }
 0x1a2   :  { %11328 = vmatpush3.bf16.msra.mxu0 %v11973_v56 }
 0x1a3   :  { %11350 = vmatpush3.bf16.msra.mxu1 %v11975_v58  ;;  %11329 = vmatprep.subr.bf16.mxu0 %v11976_v59  ;;  %v12015_v58 = vld [vmem:[#allocation5 + $0xb98] sm:$0xff]  }
 0x1a4   :  { %11351 = vmatprep.subr.bf16.mxu1 %v11978_v61 }
 0x1a6   :  { %11330 = vmatpush3.bf16.msra.mxu0 %v11977_v60  ;;  %v12016_v60 = vld [vmem:[#allocation5 + $0xb60] sm:$0xff]  }
 0x1a7   :  { %11352 = vmatpush3.bf16.msra.mxu1 %v11979_v62  ;;  %11331 = vmatprep.subr.bf16.mxu0 %v11980_v63  ;;  %v12017_v63 = vld [vmem:[#allocation5 + $0xb20] sm:$0xff]  }
 0x1a8   :  { %11353 = vmatprep.subr.bf16.mxu1 %v11982_v3 }
 0x1aa   :  { %11332 = vmatpush3.bf16.msra.mxu0 %v11981_v1  ;;  %v12018_v1 = vld [vmem:[#allocation5 + $0xbe0] sm:$0xff]  }
 0x1ab   :  { %11354 = vmatpush3.bf16.msra.mxu1 %v11983_v6  ;;  %11333 = vmatprep.subr.bf16.mxu0 %v11984_v8  ;;  %v12020_v6 = vld [vmem:[#allocation5 + $0xb68] sm:$0xff]  }
 0x1ac   :  { %11355 = vmatprep.subr.bf16.mxu1 %v11986_v13  ;;  %v12021_v8 = vld [vmem:[#allocation5 + $0xb28] sm:$0xff]   ;;  %v12026_v13 = vld [vmem:[#allocation5 + $0xbf0] sm:$0xff]  }
 0x1ae   :  { %11334 = vmatpush3.bf16.msra.mxu0 %v11985_v11  ;;  %v12024_v11 = vld [vmem:[#allocation5 + $0xb70] sm:$0xff]  }
 0x1af   :  { %11356 = vmatpush3.bf16.msra.mxu1 %v11987_v16  ;;  %11335 = vmatprep.subr.bf16.mxu0 %v11988_v18  ;;  %v12029_v16 = vld [vmem:[#allocation5 + $0xb38] sm:$0xff]   ;;  %v140_v18 = vld [vmem:[#allocation2 + $0x168] sm:$0xff] }
 0x1b0   :  { %v11033_v0 = vpop.f32.mrb[12].mxu0  ;;  %11357 = vmatprep.subr.bf16.mxu1 %v11990_v21  ;;  %v139_v21 = vld [vmem:[#allocation2 + $0x160] sm:$0xff] }
 0x1b1   :  { %v11034_v2 = vpop.f32.mrb[13].mxu0  ;;  %v11055_v7 = vpop.f32.mrb[12].mxu1 }
 0x1b2   :  { %v11035_v4 = vadd.f32 %v11034_v2, %v11033_v0  ;;  %v11036_v5 = vpop.f32.mrb[14].mxu0  ;;  %v11056_v12 = vpop.f32.mrb[13].mxu1  ;;  %11336 = vmatpush3.bf16.msra.mxu0 %v11989_v20  ;;  %v12031_v20 = vld [vmem:[#allocation5 + $0xbb8] sm:$0xff]  }
 0x1b3   :  { %v11037_v10 = vpop.f32.mrb[15].mxu0  ;;  %v11057_v14 = vadd.f32 %v11056_v12, %v11055_v7  ;;  %v11058_v15 = vpop.f32.mrb[14].mxu1  ;;  %11358 = vmatpush3.bf16.msra.mxu1 %v11991_v22  ;;  %11337 = vmatprep.subr.bf16.mxu0 %v11992_v23  ;;  %v12025_v12 = vld [vmem:[#allocation5 + $0xb30] sm:$0xff]   ;;  %v198_v22 = vpack.c.bf16 %v139_v21, %v139_v21  ;;  %v12032_v23 = vld [vmem:[#allocation5 + $0xc40] sm:$0xff]   ;;  %v12070_v21 = vld [vmem:[#allocation5 + $0xdc8] sm:$0xff]  }
 0x1b4   :  { %v4264_v9 = vadd.f32 %v11035_v4, %v13359_v32  ;;  %v11059_v17 = vpop.f32.mrb[15].mxu1  ;;  %11359 = vmatprep.subr.bf16.mxu1 %v11994_v25  ;;  %v11999_v32 = vld [vmem:[#allocation5 + $0xab8] sm:$0xff]   ;;  %v12019_v4 = vld [vmem:[#allocation5 + $0xba0] sm:$0xff]   ;;  %v12023_v10 = vld [vmem:[#allocation5 + $0xba8] sm:$0xff]  }
 0x1b5   :  { %v12028_v15 = vld [vmem:[#allocation5 + $0xb78] sm:$0xff]  }
 0x1b6   :  { %v13362_v19 = vadd.f32 %v11057_v14, %v4264_v9  ;;  %11338 = vmatpush3.bf16.msra.mxu0 %v11993_v24  ;;  %v12022_v9 = vld [vmem:[#allocation5 + $0xbe8] sm:$0xff]   ;;  %v12027_v14 = vld [vmem:[#allocation5 + $0xbb0] sm:$0xff]   ;;  %v12030_v17 = vld [vmem:[#allocation5 + $0xbf8] sm:$0xff]  }
 0x1b7   :  { %11360 = vmatpush3.bf16.msra.mxu1 %v11995_v26  ;;  %11339 = vmatprep.subr.bf16.mxu0 %v11996_v27  ;;  %v142_v24 = vld [vmem:[#allocation2 + $0x178] sm:$0xff]  ;;  %v141_v27 = vld [vmem:[#allocation2 + $0x170] sm:$0xff] }
 0x1b8   :  { %11361 = vmatprep.subr.bf16.mxu1 %v11998_v29  ;;  %v201_v25 = vpack.c.bf16 %v142_v24, %v142_v24  ;;  %v12033_v26 = vld [vmem:[#allocation5 + $0xc00] sm:$0xff]   ;;  %v12073_v24 = vld [vmem:[#allocation5 + $0xd10] sm:$0xff]  }
 0x1b9   :  { %v12034_v29 = vld [vmem:[#allocation5 + $0xcc0] sm:$0xff]  }
 0x1ba   :  { %11340 = vmatpush3.bf16.msra.mxu0 %v11997_v28  ;;  %v200_v28 = vpack.c.bf16 %v141_v27, %v141_v27  ;;  %v12076_v27 = vld [vmem:[#allocation5 + $0xd58] sm:$0xff]  }
 0x1bb   :  { %11362 = vmatpush3.bf16.msra.mxu1 %v11999_v32  ;;  %11369 = vmatprep.subr.bf16.mxu0 %v12000_v35  ;;  %v12037_v32 = vld [vmem:[#allocation5 + $0xc08] sm:$0xff]   ;;  %v12040_v35 = vld [vmem:[#allocation5 + $0xc50] sm:$0xff]  }
 0x1bc   :  { %11391 = vmatprep.subr.bf16.mxu1 %v12002_v41 }
 0x1bd   :  { %4822 = vmatmul.mubr.bf16.vlgmr.msra.gmra.mrb[40].mxu0 %v194_v34  ;;  %v12039_v34 = vld [vmem:[#allocation5 + $0xc88] sm:$0xff]  }
 0x1be   :  { %11370 = vmatpush3.bf16.msra.mxu0 %v12001_v38  ;;  %4862 = vmatmul.mubr.bf16.vlgmr.msra.gmra.mrb[40].mxu1 %v196_v40  ;;  %v12043_v38 = vld [vmem:[#allocation5 + $0xc90] sm:$0xff]   ;;  %v12045_v40 = vld [vmem:[#allocation5 + $0xc18] sm:$0xff]  }
 0x1bf   :  { %11392 = vmatpush3.bf16.msra.mxu1 %v12003_v42  ;;  %11371 = vmatprep.subr.bf16.mxu0 %v12004_v43  ;;  %v12046_v42 = vld [vmem:[#allocation5 + $0xcd8] sm:$0xff]  }
 0x1c0   :  { %11393 = vmatprep.subr.bf16.mxu1 %v12006_v45  ;;  %4941 = vmatprep.mubr.bf16.mxu1 %v201_v25  ;;  %v12074_v25 = vld [vmem:[#allocation5 + $0xdd0] sm:$0xff]  }
 0x1c2   :  { %11372 = vmatpush3.bf16.msra.mxu0 %v12005_v44  ;;  %v12047_v44 = vld [vmem:[#allocation5 + $0xc98] sm:$0xff]  }
 0x1c3   :  { %11394 = vmatpush3.bf16.msra.mxu1 %v12007_v46  ;;  %11373 = vmatprep.subr.bf16.mxu0 %v12008_v47  ;;  %v12048_v47 = vld [vmem:[#allocation5 + $0xc60] sm:$0xff]  }
 0x1c4   :  { %11395 = vmatprep.subr.bf16.mxu1 %v12010_v49  ;;  %v12049_v49 = vld [vmem:[#allocation5 + $0xc20] sm:$0xff]  }
 0x1c6   :  { %11374 = vmatpush3.bf16.msra.mxu0 %v12009_v48 }
 0x1c7   :  { %11396 = vmatpush3.bf16.msra.mxu1 %v12011_v50  ;;  %11375 = vmatprep.subr.bf16.mxu0 %v12012_v51 }
 0x1c8   :  { %11397 = vmatprep.subr.bf16.mxu1 %v12014_v55 }
 0x1ca   :  { %11376 = vmatpush3.bf16.msra.mxu0 %v12013_v53 }
 0x1cb   :  { %11398 = vmatpush3.bf16.msra.mxu1 %v12015_v58  ;;  %11377 = vmatprep.subr.bf16.mxu0 %v12016_v60 }
 0x1cc   :  { %11399 = vmatprep.subr.bf16.mxu1 %v12018_v1  ;;  %v12058_v1 = vld [vmem:[#allocation5 + $0xcf0] sm:$0xff]  }
 0x1ce   :  { %11378 = vmatpush3.bf16.msra.mxu0 %v12017_v63  ;;  %v12056_v63 = vld [vmem:[#allocation5 + $0xc70] sm:$0xff]  }
 0x1cf   :  { %11400 = vmatpush3.bf16.msra.mxu1 %v12019_v4  ;;  %11379 = vmatprep.subr.bf16.mxu0 %v12020_v6  ;;  %v12061_v4 = vld [vmem:[#allocation5 + $0xc38] sm:$0xff]   ;;  %v144_v6 = vld [vmem:[#allocation2 + $0x188] sm:$0xff] }
 0x1d0   :  { %v11077_v52 = vpop.f32.mrb[16].mxu0  ;;  %11401 = vmatprep.subr.bf16.mxu1 %v12022_v9  ;;  %v143_v9 = vld [vmem:[#allocation2 + $0x180] sm:$0xff] }
 0x1d1   :  { %v11078_v54 = vpop.f32.mrb[17].mxu0  ;;  %v11099_v59 = vpop.f32.mrb[16].mxu1 }
 0x1d2   :  { %v11079_v56 = vadd.f32 %v11078_v54, %v11077_v52  ;;  %v11080_v57 = vpop.f32.mrb[18].mxu0  ;;  %v11100_v0 = vpop.f32.mrb[17].mxu1  ;;  %11380 = vmatpush3.bf16.msra.mxu0 %v12021_v8  ;;  %v12050_v52 = vld [vmem:[#allocation5 + $0xce0] sm:$0xff]   ;;  %v12063_v8 = vld [vmem:[#allocation5 + $0xcb8] sm:$0xff]  }
 0x1d3   :  { %v11081_v62 = vpop.f32.mrb[19].mxu0  ;;  %v11101_v2 = vadd.f32 %v11100_v0, %v11099_v59  ;;  %v11102_v3 = vpop.f32.mrb[18].mxu1  ;;  %11402 = vmatpush3.bf16.msra.mxu1 %v12023_v10  ;;  %11381 = vmatprep.subr.bf16.mxu0 %v12024_v11  ;;  %v12051_v54 = vld [vmem:[#allocation5 + $0xca0] sm:$0xff]   ;;  %v12052_v57 = vld [vmem:[#allocation5 + $0xc68] sm:$0xff]   ;;  %v12057_v0 = vld [vmem:[#allocation5 + $0xc30] sm:$0xff]   ;;  %v202_v10 = vpack.c.bf16 %v143_v9, %v143_v9 }
 0x1d4   :  { %v4344_v61 = vadd.f32 %v11079_v56, %v13362_v19  ;;  %v11103_v5 = vpop.f32.mrb[19].mxu1  ;;  %11403 = vmatprep.subr.bf16.mxu1 %v12026_v13  ;;  %v199_v19 = vpack.c.bf16 %v140_v18, %v140_v18  ;;  %v12053_v59 = vld [vmem:[#allocation5 + $0xc28] sm:$0xff]   ;;  %v12060_v3 = vld [vmem:[#allocation5 + $0xc78] sm:$0xff]   ;;  %v12064_v11 = vld [vmem:[#allocation5 + $0xd40] sm:$0xff]  }
 0x1d5   :  { %v12055_v62 = vld [vmem:[#allocation5 + $0xca8] sm:$0xff]   ;;  %v12062_v5 = vld [vmem:[#allocation5 + $0xcf8] sm:$0xff]   ;;  %v12067_v18 = vld [vmem:[#allocation5 + $0xd80] sm:$0xff]  }
 0x1d6   :  { %v13365_v7 = vadd.f32 %v11101_v2, %v4344_v61  ;;  %11382 = vmatpush3.bf16.msra.mxu0 %v12025_v12  ;;  %4901 = vmatprep.mubr.bf16.mxu0 %v199_v19  ;;  %v12054_v61 = vld [vmem:[#allocation5 + $0xce8] sm:$0xff]   ;;  %v12059_v2 = vld [vmem:[#allocation5 + $0xcb0] sm:$0xff]   ;;  %v146_v12 = vld [vmem:[#allocation2 + $0x198] sm:$0xff] }
 0x1d7   :  { %11404 = vmatpush3.bf16.msra.mxu1 %v12027_v14  ;;  %11383 = vmatprep.subr.bf16.mxu0 %v12028_v15  ;;  %v205_v13 = vpack.c.bf16 %v146_v12, %v146_v12  ;;  %v12065_v14 = vld [vmem:[#allocation5 + $0xd00] sm:$0xff]   ;;  %v145_v15 = vld [vmem:[#allocation2 + $0x190] sm:$0xff]  ;;  %v12068_v19 = vld [vmem:[#allocation5 + $0xd48] sm:$0xff]  }
 0x1d8   :  { %11405 = vmatprep.subr.bf16.mxu1 %v12030_v17  ;;  %v12066_v17 = vld [vmem:[#allocation5 + $0xdc0] sm:$0xff]   ;;  %v12101_v9 = vld [vmem:[#allocation5 + $0xe88] sm:$0xff]   ;;  %v12104_v12 = vld [vmem:[#allocation5 + $0xe90] sm:$0xff]  }
 0x1da   :  { %11384 = vmatpush3.bf16.msra.mxu0 %v12029_v16  ;;  %v204_v16 = vpack.c.bf16 %v145_v15, %v145_v15  ;;  %v12108_v15 = vld [vmem:[#allocation5 + $0xe60] sm:$0xff]  }
 0x1db   :  { %11406 = vmatpush3.bf16.msra.mxu1 %v12031_v20  ;;  %11413 = vmatprep.subr.bf16.mxu0 %v12032_v23  ;;  %v12069_v20 = vld [vmem:[#allocation5 + $0xd08] sm:$0xff]   ;;  %v12072_v23 = vld [vmem:[#allocation5 + $0xd50] sm:$0xff]  }
 0x1dc   :  { %11435 = vmatprep.subr.bf16.mxu1 %v12034_v29  ;;  %v12077_v29 = vld [vmem:[#allocation5 + $0xd18] sm:$0xff]  }
 0x1dd   :  { %4902 = vmatmul.mubr.bf16.vlgmr.msra.gmra.mrb[44].mxu0 %v198_v22  ;;  %v12071_v22 = vld [vmem:[#allocation5 + $0xd88] sm:$0xff]  }
 0x1de   :  { %11414 = vmatpush3.bf16.msra.mxu0 %v12033_v26  ;;  %4942 = vmatmul.mubr.bf16.vlgmr.msra.gmra.mrb[44].mxu1 %v200_v28  ;;  %v12075_v26 = vld [vmem:[#allocation5 + $0xd90] sm:$0xff]  }
 0x1df   :  { %11436 = vmatpush3.bf16.msra.mxu1 %v12035_v30  ;;  %11415 = vmatprep.subr.bf16.mxu0 %v12036_v31  ;;  %v12078_v31 = vld [vmem:[#allocation5 + $0xdd8] sm:$0xff]  }
 0x1e0   :  { %11437 = vmatprep.subr.bf16.mxu1 %v12038_v33  ;;  %5021 = vmatprep.mubr.bf16.mxu1 %v205_v13  ;;  %v12105_v13 = vld [vmem:[#allocation5 + $0xe58] sm:$0xff]  }
 0x1e2   :  { %11416 = vmatpush3.bf16.msra.mxu0 %v12037_v32 }
 0x1e3   :  { %11438 = vmatpush3.bf16.msra.mxu1 %v12039_v34  ;;  %11417 = vmatprep.subr.bf16.mxu0 %v12040_v35  ;;  %v12079_v34 = vld [vmem:[#allocation5 + $0xd98] sm:$0xff]  }
 0x1e4   :  { %11439 = vmatprep.subr.bf16.mxu1 %v12042_v37 }
 0x1e6   :  { %11418 = vmatpush3.bf16.msra.mxu0 %v12041_v36  ;;  %v12080_v36 = vld [vmem:[#allocation5 + $0xd60] sm:$0xff]  }
 0x1e7   :  { %11440 = vmatpush3.bf16.msra.mxu1 %v12043_v38  ;;  %11419 = vmatprep.subr.bf16.mxu0 %v12044_v39  ;;  %v12081_v39 = vld [vmem:[#allocation5 + $0xd20] sm:$0xff]  }
 0x1e8   :  { %11441 = vmatprep.subr.bf16.mxu1 %v12046_v42 }
 0x1ea   :  { %11420 = vmatpush3.bf16.msra.mxu0 %v12045_v40 }
 0x1eb   :  { %11442 = vmatpush3.bf16.msra.mxu1 %v12047_v44  ;;  %11421 = vmatprep.subr.bf16.mxu0 %v12048_v47  ;;  %v12083_v44 = vld [vmem:[#allocation5 + $0xda0] sm:$0xff]  }
 0x1ec   :  { %11443 = vmatprep.subr.bf16.mxu1 %v12050_v52  ;;  %v12089_v52 = vld [vmem:[#allocation5 + $0xd30] sm:$0xff]  }
 0x1ee   :  { %11422 = vmatpush3.bf16.msra.mxu0 %v12049_v49  ;;  %v12086_v49 = vld [vmem:[#allocation5 + $0xde8] sm:$0xff]  }
 0x1ef   :  { %11444 = vmatpush3.bf16.msra.mxu1 %v12051_v54  ;;  %11423 = vmatprep.subr.bf16.mxu0 %v12052_v57  ;;  %v12091_v54 = vld [vmem:[#allocation5 + $0xdb0] sm:$0xff]   ;;  %v12094_v57 = vld [vmem:[#allocation5 + $0xdf8] sm:$0xff]  }
 0x1f0   :  { %v11121_v41 = vpop.f32.mrb[20].mxu0  ;;  %11445 = vmatprep.subr.bf16.mxu1 %v12054_v61  ;;  %v147_v61 = vld [vmem:[#allocation2 + $0x1a0] sm:$0xff] }
 0x1f1   :  { %v11122_v43 = vpop.f32.mrb[21].mxu0  ;;  %v11143_v48 = vpop.f32.mrb[20].mxu1 }
 0x1f2   :  { %v11123_v45 = vadd.f32 %v11122_v43, %v11121_v41  ;;  %v11124_v46 = vpop.f32.mrb[22].mxu0  ;;  %v11144_v53 = vpop.f32.mrb[21].mxu1  ;;  %11424 = vmatpush3.bf16.msra.mxu0 %v12053_v59  ;;  %v12082_v41 = vld [vmem:[#allocation5 + $0xde0] sm:$0xff]  }
 0x1f3   :  { %v11125_v51 = vpop.f32.mrb[23].mxu0  ;;  %v11145_v55 = vadd.f32 %v11144_v53, %v11143_v48  ;;  %v11146_v56 = vpop.f32.mrb[22].mxu1  ;;  %11446 = vmatpush3.bf16.msra.mxu1 %v12055_v62  ;;  %11425 = vmatprep.subr.bf16.mxu0 %v12056_v63  ;;  %v12084_v46 = vld [vmem:[#allocation5 + $0xd68] sm:$0xff]   ;;  %v12090_v53 = vld [vmem:[#allocation5 + $0xdf0] sm:$0xff]   ;;  %v206_v62 = vpack.c.bf16 %v147_v61, %v147_v61  ;;  %v12096_v63 = vld [vmem:[#allocation5 + $0xe40] sm:$0xff]  }
 0x1f4   :  { %v4424_v50 = vadd.f32 %v11123_v45, %v13365_v7  ;;  %v11147_v58 = vpop.f32.mrb[23].mxu1  ;;  %11447 = vmatprep.subr.bf16.mxu1 %v12058_v1  ;;  %v203_v7 = vpack.c.bf16 %v144_v6, %v144_v6  ;;  %v12085_v48 = vld [vmem:[#allocation5 + $0xd28] sm:$0xff]   ;;  %v12088_v51 = vld [vmem:[#allocation5 + $0xd70] sm:$0xff]   ;;  %v12093_v56 = vld [vmem:[#allocation5 + $0xd38] sm:$0xff]  }
 0x1f5   :  { %v148_v58 = vld [vmem:[#allocation2 + $0x1a8] sm:$0xff]  ;;  %v12098_v6 = vld [vmem:[#allocation5 + $0xe80] sm:$0xff]  }
 0x1f6   :  { %v13368_v60 = vadd.f32 %v11145_v55, %v4424_v50  ;;  %11426 = vmatpush3.bf16.msra.mxu0 %v12057_v0  ;;  %4981 = vmatprep.mubr.bf16.mxu0 %v203_v7  ;;  %v12087_v50 = vld [vmem:[#allocation5 + $0xda8] sm:$0xff]   ;;  %v12092_v55 = vld [vmem:[#allocation5 + $0xd78] sm:$0xff]   ;;  %v207_v59 = vpack.c.bf16 %v148_v58, %v148_v58  ;;  %v150_v0 = vld [vmem:[#allocation2 + $0x1b8] sm:$0xff] }
 0x1f7   :  { %11448 = vmatpush3.bf16.msra.mxu1 %v12059_v2  ;;  %11427 = vmatprep.subr.bf16.mxu0 %v12060_v3  ;;  %v209_v1 = vpack.c.bf16 %v150_v0, %v150_v0  ;;  %v12097_v2 = vld [vmem:[#allocation5 + $0xe00] sm:$0xff]   ;;  %v149_v3 = vld [vmem:[#allocation2 + $0x1b0] sm:$0xff]  ;;  %v12099_v7 = vld [vmem:[#allocation5 + $0xe48] sm:$0xff]  }
 0x1f8   :  { %11449 = vmatprep.subr.bf16.mxu1 %v12062_v5  ;;  %v13243_v5 = vmov 0.0  }
 0x1fa   :  { %11428 = vmatpush3.bf16.msra.mxu0 %v12061_v4  ;;  %v208_v4 = vpack.c.bf16 %v149_v3, %v149_v3 }
 0x1fb   :  { %11450 = vmatpush3.bf16.msra.mxu1 %v12063_v8  ;;  %11457 = vmatprep.subr.bf16.mxu0 %v12064_v11  ;;  %v12100_v8 = vld [vmem:[#allocation5 + $0xe08] sm:$0xff]   ;;  %v12103_v11 = vld [vmem:[#allocation5 + $0xe10] sm:$0xff]  }
 0x1fc   :  { %11479 = vmatprep.subr.bf16.mxu1 %v12066_v17  ;;  %v12107_v17 = vld [vmem:[#allocation5 + $0xe98] sm:$0xff]  }
 0x1fd   :  { %4982 = vmatmul.mubr.bf16.vlgmr.msra.gmra.mrb[48].mxu0 %v202_v10  ;;  %v12102_v10 = vld [vmem:[#allocation5 + $0xe50] sm:$0xff]  }
 0x1fe   :  { %11458 = vmatpush3.bf16.msra.mxu0 %v12065_v14  ;;  %5022 = vmatmul.mubr.bf16.vlgmr.msra.gmra.mrb[48].mxu1 %v204_v16  ;;  %v12106_v14 = vld [vmem:[#allocation5 + $0xe18] sm:$0xff]  }
 0x1ff   :  { %11480 = vmatpush3.bf16.msra.mxu1 %v12067_v18  ;;  %11459 = vmatprep.subr.bf16.mxu0 %v12068_v19 }
 0x200   :  { %11481 = vmatprep.subr.bf16.mxu1 %v12070_v21  ;;  %5061 = vmatprep.mubr.bf16.mxu0 %v207_v59  ;;  %v12109_v21 = vld [vmem:[#allocation5 + $0xe20] sm:$0xff]  }
 0x201   :  { %5101 = vmatprep.mubr.bf16.mxu1 %v209_v1 }
 0x202   :  { %11460 = vmatpush3.bf16.msra.mxu0 %v12069_v20 }
 0x203   :  { %11482 = vmatpush3.bf16.msra.mxu1 %v12071_v22  ;;  %11461 = vmatprep.subr.bf16.mxu0 %v12072_v23 }
 0x204   :  { %11483 = vmatprep.subr.bf16.mxu1 %v12074_v25 }
 0x206   :  { %11462 = vmatpush3.bf16.msra.mxu0 %v12073_v24  ;;  %v12111_v24 = vld [vmem:[#allocation5 + $0xe68] sm:$0xff]  }
 0x207   :  { %11484 = vmatpush3.bf16.msra.mxu1 %v12075_v26  ;;  %11463 = vmatprep.subr.bf16.mxu0 %v12076_v27  ;;  %v12110_v27 = vld [vmem:[#allocation5 + $0xea0] sm:$0xff]  }
 0x208   :  { %11485 = vmatprep.subr.bf16.mxu1 %v12078_v31 }
 0x20a   :  { %11464 = vmatpush3.bf16.msra.mxu0 %v12077_v29 }
 0x20b   :  { %11486 = vmatpush3.bf16.msra.mxu1 %v12079_v34  ;;  %11465 = vmatprep.subr.bf16.mxu0 %v12080_v36  ;;  %v12113_v34 = vld [vmem:[#allocation5 + $0xea8] sm:$0xff]   ;;  %v12115_v36 = vld [vmem:[#allocation5 + $0xe30] sm:$0xff]  }
 0x20c   :  { %11487 = vmatprep.subr.bf16.mxu1 %v12082_v41  ;;  %v151_v41 = vld [vmem:[#allocation2 + $0x1c0] sm:$0xff] }
 0x20e   :  { %11466 = vmatpush3.bf16.msra.mxu0 %v12081_v39  ;;  %v12117_v39 = vld [vmem:[#allocation5 + $0xe78] sm:$0xff]  }
 0x20f   :  { %11488 = vmatpush3.bf16.msra.mxu1 %v12083_v44  ;;  %11467 = vmatprep.subr.bf16.mxu0 %v12084_v46  ;;  %v210_v44 = vpack.c.bf16 %v151_v41, %v151_v41 }
 0x210   :  { %v11165_v28 = vpop.f32.mrb[24].mxu0  ;;  %11489 = vmatprep.subr.bf16.mxu1 %v12086_v49 }
 0x211   :  { %v11166_v30 = vpop.f32.mrb[25].mxu0  ;;  %v11187_v35 = vpop.f32.mrb[24].mxu1 }
 0x212   :  { %v11167_v32 = vadd.f32 %v11166_v30, %v11165_v28  ;;  %v11168_v33 = vpop.f32.mrb[26].mxu0  ;;  %v11188_v40 = vpop.f32.mrb[25].mxu1  ;;  %11468 = vmatpush3.bf16.msra.mxu0 %v12085_v48  ;;  %v12112_v30 = vld [vmem:[#allocation5 + $0xe28] sm:$0xff]  }
 0x213   :  { %v11169_v38 = vpop.f32.mrb[27].mxu0  ;;  %v11189_v42 = vadd.f32 %v11188_v40, %v11187_v35  ;;  %v11190_v43 = vpop.f32.mrb[26].mxu1  ;;  %11490 = vmatpush3.bf16.msra.mxu1 %v12087_v50  ;;  %11469 = vmatprep.subr.bf16.mxu0 %v12088_v51  ;;  %v12114_v33 = vld [vmem:[#allocation5 + $0xe70] sm:$0xff]   ;;  %v12118_v40 = vld [vmem:[#allocation5 + $0xe38] sm:$0xff]  }
 0x214   :  { %v4504_v37 = vadd.f32 %v11167_v32, %v13368_v60  ;;  %v11191_v45 = vpop.f32.mrb[27].mxu1  ;;  %11491 = vmatprep.subr.bf16.mxu1 %v12090_v53  ;;  %v12095_v60 = vld [vmem:[#allocation5 + $0xdb8] sm:$0xff]   ;;  %v152_v35 = vld [vmem:[#allocation2 + $0x1c8] sm:$0xff] }
 0x215   :  { %v12116_v38 = vld [vmem:[#allocation5 + $0xeb0] sm:$0xff]   ;;  %v153_v43 = vld [vmem:[#allocation2 + $0x1d0] sm:$0xff] }
 0x216   :  { %v13371_v47 = vadd.f32 %v11189_v42, %v4504_v37  ;;  %11470 = vmatpush3.bf16.msra.mxu0 %v12089_v52  ;;  %v211_v37 = vpack.c.bf16 %v152_v35, %v152_v35  ;;  %v12119_v42 = vld [vmem:[#allocation5 + $0xeb8] sm:$0xff]   ;;  %v212_v45 = vpack.c.bf16 %v153_v43, %v153_v43 }
 0x217   :  { %11492 = vmatpush3.bf16.msra.mxu1 %v12091_v54  ;;  %11471 = vmatprep.subr.bf16.mxu0 %v12092_v55 }
 0x218   :  { %11493 = vmatprep.subr.bf16.mxu1 %v12094_v57 }
 0x21a   :  { %11472 = vmatpush3.bf16.msra.mxu0 %v12093_v56 }
 0x21b   :  { %11494 = vmatpush3.bf16.msra.mxu1 %v12095_v60  ;;  %11501 = vmatprep.subr.bf16.mxu0 %v12096_v63 }
 0x21c   :  { %11556 = vmatprep.subr.bf16.mxu1 %v13243_v5 }
 0x21d   :  { %5062 = vmatmul.mubr.bf16.vlgmr.msra.gmra.mrb[52].mxu0 %v206_v62 }
 0x21e   :  { %11502 = vmatpush3.bf16.msra.mxu0 %v12097_v2  ;;  %5102 = vmatmul.mubr.bf16.vlgmr.msra.gmra.mrb[52].mxu1 %v208_v4 }
 0x21f   :  { %11557 = vmatpush3.bf16.msra.mxu1 %v12098_v6  ;;  %11503 = vmatprep.subr.bf16.mxu0 %v12099_v7  ;;  %v12120_v7 = vld [vmem:[%s13529_s2] sm:$0xff]  }
 0x220   :  { %11558 = vmatprep.subr.bf16.mxu1 %v13243_v5  ;;  %11572 = vmatprep.mubr.msk.bf16.mxu1 %vm13244_vm0, %v13243_v5 }
 0x221   :  { %5141 = vmatprep.mubr.bf16.mxu0 %v211_v37 }
 0x222   :  { %11504 = vmatpush3.bf16.msra.mxu0 %v12100_v8  ;;  %v12121_v8 = vld [vmem:[%s13529_s2 + $0x8] sm:$0xff]  }
 0x223   :  { %11505 = vmatprep.subr.bf16.mxu0 %v12102_v10  ;;  %11559 = vmatpush3.bf16.msra.mxu1 %v12101_v9  ;;  %v12122_v9 = vld [vmem:[%s13529_s2 + $0x10] sm:$0xff]   ;;  %v12123_v10 = vld [vmem:[%s13529_s2 + $0x18] sm:$0xff]  }
 0x224   :  { %11560 = vmatprep.subr.bf16.mxu1 %v13243_v5 }
 0x226   :  { %11506 = vmatpush3.bf16.msra.mxu0 %v12103_v11  ;;  %v12124_v11 = vld [vmem:[%s13529_s2 + $0x20] sm:$0xff]  }
 0x227   :  { %11507 = vmatprep.subr.bf16.mxu0 %v12105_v13  ;;  %11561 = vmatpush3.bf16.msra.mxu1 %v12104_v12 }
 0x228   :  { %11562 = vmatprep.subr.bf16.mxu1 %v13243_v5 }
 0x22a   :  { %11508 = vmatpush3.bf16.msra.mxu0 %v12106_v14 }
 0x22b   :  { %11509 = vmatprep.subr.bf16.mxu0 %v12108_v15  ;;  %11563 = vmatpush3.bf16.msra.mxu1 %v12107_v17 }
 0x22c   :  { %11564 = vmatprep.subr.bf16.mxu1 %v13243_v5 }
 0x22e   :  { %11510 = vmatpush3.bf16.msra.mxu0 %v12109_v21 }
 0x22f   :  { %11511 = vmatprep.subr.bf16.mxu0 %v12111_v24  ;;  %11565 = vmatpush3.bf16.msra.mxu1 %v12110_v27  ;;  %v12128_v27 = vld [vmem:[%s13530_s3] sm:$0xff]  }
 0x230   :  { %v11209_v16 = vpop.f32.mrb[28].mxu0  ;;  %11566 = vmatprep.subr.bf16.mxu1 %v13243_v5 }
 0x231   :  { %v11210_v18 = vpop.f32.mrb[29].mxu0  ;;  %v11231_v22 = vpop.f32.mrb[28].mxu1 }
 0x232   :  { %v11211_v19 = vadd.f32 %v11210_v18, %v11209_v16  ;;  %v11212_v20 = vpop.f32.mrb[30].mxu0  ;;  %v11232_v26 = vpop.f32.mrb[29].mxu1  ;;  %11512 = vmatpush3.bf16.msra.mxu0 %v12112_v30 }
 0x233   :  { %v11213_v25 = vpop.f32.mrb[31].mxu0  ;;  %v11233_v28 = vadd.f32 %v11232_v26, %v11231_v22  ;;  %v11234_v29 = vpop.f32.mrb[30].mxu1  ;;  %11513 = vmatprep.subr.bf16.mxu0 %v12114_v33  ;;  %11567 = vmatpush3.bf16.msra.mxu1 %v12113_v34  ;;  %v12125_v22 = vld [vmem:[%s13529_s2 + $0x28] sm:$0xff]   ;;  %v12127_v26 = vld [vmem:[%s13529_s2 + $0x38] sm:$0xff]  }
 0x234   :  { %v4584_v23 = vadd.f32 %v11211_v19, %v13371_v47  ;;  %v11235_v31 = vpop.f32.mrb[31].mxu1  ;;  %11568 = vmatprep.subr.bf16.mxu1 %v13243_v5  ;;  %v12126_v25 = vld [vmem:[%s13529_s2 + $0x30] sm:$0xff]   ;;  %s13246_s2 = smov [#allocation12]  }
 0x235   :  { %s9913_s3 = sshll.u32 %s13246_s2, 4  ;;  %s9914_s3 = int_to_ptr.vmem [resolvable:$true] %s9913_s3 }
 0x236   :  { %v4624_v32 = vadd.f32 %v11233_v28, %v4584_v23  ;;  %11514 = vmatpush3.bf16.msra.mxu0 %v12115_v36  ;;  %s13180_s12 = scalar_lea.vmem %s9914_s3, 128  ;;  %p13185_p13 = scmp.lt.s32.totalorder %s9914_s3, %s9914_s3 }
 0x237   :  { %11515 = vmatprep.subr.bf16.mxu0 %v12117_v39  ;;  %11569 = vmatpush3.bf16.msra.mxu1 %v12116_v38  ;;  %p13181_p12 = scmp.ne.s32.totalorder %s9914_s3, %s13180_s12  ;;  %p13186_p0 = scmp.lt.s32.totalorder %s13180_s12, %s13180_s12 }
 0x238   :  { %11570 = vmatprep.subr.bf16.mxu1 %v13243_v5 }
 0x239   :  { %p13187_p1 = por %p13186_p0, %p13185_p13 }
 0x23a   :  { %11516 = vmatpush3.bf16.msra.mxu0 %v12118_v40 }
 0x23b   :  { %11576 = vmatprep.subr.bf16.mxu0 %v13243_v5  ;;  %11571 = vmatpush3.bf16.msra.mxu1 %v12119_v42  ;;  %p13188_p2 = pnand %p13187_p1, %p13181_p12 }
 0x23c   :  { %11596 = vmatprep.subr.bf16.mxu1 %v13243_v5 }
 0x23d   :  { %5142 = vmatmul.mubr.bf16.vlgmr.msra.gmra.mrb[56].mxu0 %v210_v44 }
 0x23e   :  { %11592 = vmatprep.mubr.msk.bf16.mxu0 %vm13244_vm0, %v13243_v5  ;;  %11573 = vmatmul.mubr.bf16.vlgmr.msra.gmra.mrb[56].mxu1 %v212_v45 }
 0x23f   :  { %11598 = vmatprep.mubr.msk.bf16.mxu1 %vm13244_vm0, %v13243_v5  ;;  %11577 = vmatpush3.bf16.msra.mxu0 %v12120_v7 }
 0x240   :  { %11578 = vmatprep.subr.bf16.mxu0 %v13243_v5  ;;  %11597 = vmatpush3.bf16.msra.mxu1 %v12128_v27 }
 0x241   :  { %11602 = vmatprep.subr.bf16.mxu1 %v13243_v5 }
 0x243   :  { %11579 = vmatpush3.bf16.msra.mxu0 %v12121_v8 }
 0x244   :  { %11580 = vmatprep.subr.bf16.mxu0 %v13243_v5 }
 0x247   :  { %11581 = vmatpush3.bf16.msra.mxu0 %v12122_v9 }
 0x248   :  { %11582 = vmatprep.subr.bf16.mxu0 %v13243_v5 }
 0x24b   :  { %11583 = vmatpush3.bf16.msra.mxu0 %v12123_v10 }
 0x24c   :  { %11584 = vmatprep.subr.bf16.mxu0 %v13243_v5 }
 0x24f   :  { %11585 = vmatpush3.bf16.msra.mxu0 %v12124_v11 }
 0x250   :  { %v11253_v46 = vpop.f32.mrb[32].mxu0  ;;  %11586 = vmatprep.subr.bf16.mxu0 %v13243_v5 }
 0x251   :  { %v11254_v47 = vpop.f32.mrb[33].mxu0  ;;  %v11275_v50 = vpop.f32.mrb[32].mxu1 }
 0x252   :  { %v11255_v48 = vadd.f32 %v11254_v47, %v11253_v46  ;;  %v11256_v49 = vpop.f32.mrb[34].mxu0  ;;  %v11276_v52 = vpop.f32.mrb[33].mxu1 }
 0x253   :  { %v11257_v51 = vpop.f32.mrb[35].mxu0  ;;  %v11277_v54 = vadd.f32 %v11276_v52, %v11275_v50  ;;  %v11278_v55 = vpop.f32.mrb[34].mxu1  ;;  %11587 = vmatpush3.bf16.msra.mxu0 %v12125_v22 }
 0x254   :  { %v4664_v53 = vadd.f32 %v11255_v48, %v4624_v32  ;;  %v11279_v56 = vpop.f32.mrb[35].mxu1  ;;  %11588 = vmatprep.subr.bf16.mxu0 %v13243_v5 }
 0x256   :  { %v4704_v57 = vadd.f32 %v11277_v54, %v4664_v53 }
 0x257   :  { %11589 = vmatpush3.bf16.msra.mxu0 %v12126_v25 }
 0x258   :  { %11590 = vmatprep.subr.bf16.mxu0 %v13243_v5 }
 0x25b   :  { %11591 = vmatpush3.bf16.msra.mxu0 %v12127_v26 }
 0x270   :  { %v11297_v58 = vpop.f32.mrb[36].mxu0 }
 0x271   :  { %v11298_v59 = vpop.f32.mrb[37].mxu0  ;;  %v11319_v62 = vpop.f32.mrb[36].mxu1 }
 0x272   :  { %v11299_v60 = vadd.f32 %v11298_v59, %v11297_v58  ;;  %v11300_v61 = vpop.f32.mrb[38].mxu0  ;;  %v11320_v1 = vpop.f32.mrb[37].mxu1 }
 0x273   :  { %v11301_v63 = vpop.f32.mrb[39].mxu0  ;;  %v11321_v2 = vadd.f32 %v11320_v1, %v11319_v62  ;;  %v11322_v3 = vpop.f32.mrb[38].mxu1 }
 0x274   :  { %v4744_v0 = vadd.f32 %v11299_v60, %v4704_v57  ;;  %v11323_v4 = vpop.f32.mrb[39].mxu1 }
 0x276   :  { %v4784_v6 = vadd.f32 %v11321_v2, %v4744_v0 }
 0x290   :  { %v11341_v12 = vpop.f32.mrb[40].mxu0 }
 0x291   :  { %v11342_v13 = vpop.f32.mrb[41].mxu0  ;;  %v11363_v16 = vpop.f32.mrb[40].mxu1 }
 0x292   :  { %v11343_v14 = vadd.f32 %v11342_v13, %v11341_v12  ;;  %v11344_v15 = vpop.f32.mrb[42].mxu0  ;;  %v11364_v19 = vpop.f32.mrb[41].mxu1 }
 0x293   :  { %v11345_v17 = vpop.f32.mrb[43].mxu0  ;;  %v11365_v20 = vadd.f32 %v11364_v19, %v11363_v16  ;;  %v11366_v21 = vpop.f32.mrb[42].mxu1  ;;  %v5357_v16 = vld [vmem:[#allocation7] sm:$0xf] }
 0x294   :  { %v4824_v18 = vadd.f32 %v11343_v14, %v4784_v6  ;;  %v11367_v23 = vpop.f32.mrb[43].mxu1 }
 0x295   :  { %v5364_v23 = vsel %vm5362_vm3, %v5357_v16, 0 }
 0x296   :  { %v4864_v24 = vadd.f32 %v11365_v20, %v4824_v18 }
 0x2b0   :  { %v11385_v28 = vpop.f32.mrb[44].mxu0 }
 0x2b1   :  { %v11386_v29 = vpop.f32.mrb[45].mxu0  ;;  %v11407_v32 = vpop.f32.mrb[44].mxu1 }
 0x2b2   :  { %v11387_v30 = vadd.f32 %v11386_v29, %v11385_v28  ;;  %v11388_v31 = vpop.f32.mrb[46].mxu0  ;;  %v11408_v34 = vpop.f32.mrb[45].mxu1 }
 0x2b3   :  { %v11389_v33 = vpop.f32.mrb[47].mxu0  ;;  %v11409_v36 = vadd.f32 %v11408_v34, %v11407_v32  ;;  %v11410_v37 = vpop.f32.mrb[46].mxu1  ;;  %v12132_v32 = vld [vmem:[#allocation10 + $0x4] ss:$236 sps:$4 sm:$0xff]   ;;  %v12135_v34 = vld [vmem:[#allocation10 + $0xc] ss:$236 sps:$4 sm:$0xff]  }
 0x2b4   :  { %v4904_v35 = vadd.f32 %v11387_v30, %v4864_v24  ;;  %v11411_v38 = vpop.f32.mrb[47].mxu1  ;;  %v12129_v30 = vld [vmem:[#allocation8] sm:$0xff]   ;;  %v12133_v33 = vld [vmem:[#allocation10 + $0x8] ss:$236 sps:$4 sm:$0xff]   ;;  %8354 = vmatprep.subr.bf16.mxu0 %v12135_v34 }
 0x2b5   :  { %v12147_v37 = vld [vmem:[#allocation10 + $0x3bc] ss:$236 sps:$4 sm:$0xff]   ;;  %v12145_v38 = vld [vmem:[#allocation10 + $0x3b8] ss:$236 sps:$4 sm:$0xff]  }
 0x2b6   :  { %v4944_v39 = vadd.f32 %v11409_v36, %v4904_v35  ;;  %v12141_v35 = vld [vmem:[#allocation10 + $0x1e4] ss:$236 sps:$4 sm:$0xff]   ;;  %v12139_v36 = vld [vmem:[#allocation10 + $0x1e0] ss:$236 sps:$4 sm:$0xff]  }
 0x2b7   :  { %v12202_v34 = vld [vmem:[#allocation10 + $0x770] ss:$236 sps:$4 sm:$0xff]  }
 0x2d0   :  { %v11429_v40 = vpop.f32.mrb[48].mxu0 }
 0x2d1   :  { %v11430_v41 = vpop.f32.mrb[49].mxu0  ;;  %v11451_v44 = vpop.f32.mrb[48].mxu1 }
 0x2d2   :  { %v11431_v42 = vadd.f32 %v11430_v41, %v11429_v40  ;;  %v11432_v43 = vpop.f32.mrb[50].mxu0  ;;  %v11452_v47 = vpop.f32.mrb[49].mxu1  ;;  %v12151_v40 = vld [vmem:[#allocation10 + $0x590] ss:$236 sps:$4 sm:$0xff]   ;;  %v12159_v41 = vld [vmem:[#allocation10 + $0x76c] ss:$236 sps:$4 sm:$0xff]  }
 0x2d3   :  { %v11433_v45 = vpop.f32.mrb[51].mxu0  ;;  %v11453_v48 = vadd.f32 %v11452_v47, %v11451_v44  ;;  %v11454_v49 = vpop.f32.mrb[50].mxu1  ;;  %v12165_v43 = vld [vmem:[#allocation10 + $0x944] ss:$236 sps:$4 sm:$0xff]   ;;  %v12163_v44 = vld [vmem:[#allocation10 + $0x940] ss:$236 sps:$4 sm:$0xff]  }
 0x2d4   :  { %v4984_v46 = vadd.f32 %v11431_v42, %v4944_v39  ;;  %v11455_v50 = vpop.f32.mrb[51].mxu1  ;;  %v12153_v39 = vld [vmem:[#allocation10 + $0x594] ss:$236 sps:$4 sm:$0xff]   ;;  %v12171_v45 = vld [vmem:[#allocation10 + $0xb1c] ss:$236 sps:$4 sm:$0xff]  }
 0x2d5   :  { %v12157_v42 = vld [vmem:[#allocation10 + $0x768] ss:$236 sps:$4 sm:$0xff]  }
 0x2d6   :  { %v5024_v51 = vadd.f32 %v11453_v48, %v4984_v46  ;;  %v12169_v46 = vld [vmem:[#allocation10 + $0xb18] ss:$236 sps:$4 sm:$0xff]  }
 0x2f0   :  { %v11473_v52 = vpop.f32.mrb[52].mxu0 }
 0x2f1   :  { %v11474_v53 = vpop.f32.mrb[53].mxu0  ;;  %v11495_v56 = vpop.f32.mrb[52].mxu1 }
 0x2f2   :  { %v11475_v54 = vadd.f32 %v11474_v53, %v11473_v52  ;;  %v11476_v55 = vpop.f32.mrb[54].mxu0  ;;  %v11496_v59 = vpop.f32.mrb[53].mxu1  ;;  %v12130_v53 = vld [vmem:[#allocation10] ss:$236 sps:$4 sm:$0xff]  }
 0x2f3   :  { %v11477_v57 = vpop.f32.mrb[55].mxu0  ;;  %v11497_v60 = vadd.f32 %v11496_v59, %v11495_v56  ;;  %v11498_v61 = vpop.f32.mrb[54].mxu1  ;;  %v12138_v55 = vld [vmem:[#allocation10 + $0x1dc] ss:$236 sps:$4 sm:$0xff]   ;;  %v12136_v56 = vld [vmem:[#allocation10 + $0x1d8] ss:$236 sps:$4 sm:$0xff]  }
 0x2f4   :  { %v5064_v58 = vadd.f32 %v11475_v54, %v5024_v51  ;;  %v11499_v62 = vpop.f32.mrb[55].mxu1  ;;  %v12144_v57 = vld [vmem:[#allocation10 + $0x3b4] ss:$236 sps:$4 sm:$0xff]   ;;  %v12150_v59 = vld [vmem:[#allocation10 + $0x58c] ss:$236 sps:$4 sm:$0xff]  }
 0x2f5   :  { %v12156_v61 = vld [vmem:[#allocation10 + $0x764] ss:$236 sps:$4 sm:$0xff]   ;;  %v12154_v62 = vld [vmem:[#allocation10 + $0x760] ss:$236 sps:$4 sm:$0xff]  }
 0x2f6   :  { %v5104_v63 = vadd.f32 %v11497_v60, %v5064_v58  ;;  %v12142_v58 = vld [vmem:[#allocation10 + $0x3b0] ss:$236 sps:$4 sm:$0xff]   ;;  %v12148_v60 = vld [vmem:[#allocation10 + $0x588] ss:$236 sps:$4 sm:$0xff]  }
 0x310   :  { %v11517_v0 = vpop.f32.mrb[56].mxu0 }
 0x311   :  { %v11518_v1 = vpop.f32.mrb[57].mxu0  ;;  %v5183_v4 = vpop.f32.mrb[56].mxu1 }
 0x312   :  { %v11519_v2 = vadd.f32 %v11518_v1, %v11517_v0  ;;  %v11520_v3 = vpop.f32.mrb[58].mxu0  ;;  %v11574_v7 = vpop.f32.mrb[57].mxu1  ;;  %v12160_v0 = vld [vmem:[#allocation10 + $0x938] ss:$236 sps:$4 sm:$0xff]   ;;  %v12168_v1 = vld [vmem:[#allocation10 + $0xb14] ss:$236 sps:$4 sm:$0xff]  }
 0x313   :  { %v11521_v6 = vpop.f32.mrb[59].mxu0  ;;  %v5186_v9 = vpop.f32.mrb[58].mxu1  ;;  %v12174_v3 = vld [vmem:[#allocation10 + $0xcec] ss:$236 sps:$4 sm:$0xff]   ;;  %v12175_v7 = vld [vmem:[#allocation10 + $0xcf0] ss:$236 sps:$4 sm:$0xff]  }
 0x314   :  { %v5144_v8 = vadd.f32 %v11519_v2, %v5104_v63  ;;  %v11575_v10 = vpop.f32.mrb[59].mxu1  ;;  %v12162_v63 = vld [vmem:[#allocation10 + $0x93c] ss:$236 sps:$4 sm:$0xff]  }
 0x315   :  { %v12166_v2 = vld [vmem:[#allocation10 + $0xb10] ss:$236 sps:$4 sm:$0xff]   ;;  %v12172_v6 = vld [vmem:[#allocation10 + $0xce8] ss:$236 sps:$4 sm:$0xff]   ;;  %v13245_v10 = vmov 0  }
 0x316   :  { %v5184_v11 = vadd.f32 %v5183_v4, %v5144_v8  ;;  %v12177_v4 = vld [vmem:[#allocation10 + $0xcf4] ss:$236 sps:$4 sm:$0xff]   ;;  %v12183_v9 = vld [vmem:[#allocation10 + $0x1c] ss:$236 sps:$4 sm:$0xff]  }
 0x317   :  { %v12180_v8 = vld [vmem:[#allocation10 + $0x14] ss:$236 sps:$4 sm:$0xff]  }
 0x318   :  { %vm5189_vm1 = vcmp.gt.f32.partialorder %v5184_v11, 0.0  ;;  %v5190_v12 = vmul.f32 0.1, %v5184_v11 }
 0x31a   :  { %v5191_v13 = vsel %vm5189_vm1, %v5184_v11, %v5190_v12 }
 0x31b   :  { %v5192_v14 = vpack.c.bf16 %v5191_v13, %v5191_v13 }
 0x31d   :  { %11593 = vmatmul.mubr.bf16.vlgmr.msra.gmra.mrb[60].mxu0 %v5192_v14 }
 0x31e   :  { %8355 = vmatpush1.bf16.msra.mxu0 %v12133_v33  ;;  %8386 = vmatprep.mubr.bf16.mxu0 %v13245_v10  ;;  %v12207_v33 = vld [vmem:[#allocation10 + $0x77c] ss:$236 sps:$4 sm:$0xff]  }
 0x31f   :  { %8356 = vmatprep.subr.bf16.mxu0 %v12141_v35  ;;  %v12205_v35 = vld [vmem:[#allocation10 + $0x778] ss:$236 sps:$4 sm:$0xff]  }
 0x322   :  { %8357 = vmatpush1.bf16.msra.mxu0 %v12139_v36  ;;  %v12210_v36 = vld [vmem:[#allocation10 + $0x94c] ss:$236 sps:$4 sm:$0xff]  }
 0x323   :  { %8358 = vmatprep.subr.bf16.mxu0 %v12147_v37  ;;  %v12213_v37 = vld [vmem:[#allocation10 + $0x954] ss:$236 sps:$4 sm:$0xff]  }
 0x326   :  { %8359 = vmatpush1.bf16.msra.mxu0 %v12145_v38  ;;  %v12208_v38 = vld [vmem:[#allocation10 + $0x948] ss:$236 sps:$4 sm:$0xff]  }
 0x327   :  { %8360 = vmatprep.subr.bf16.mxu0 %v12153_v39  ;;  %v12211_v39 = vld [vmem:[#allocation10 + $0x950] ss:$236 sps:$4 sm:$0xff]  }
 0x32a   :  { %8361 = vmatpush1.bf16.msra.mxu0 %v12151_v40  ;;  %v12216_v40 = vld [vmem:[#allocation10 + $0xb24] ss:$236 sps:$4 sm:$0xff]  }
 0x32b   :  { %8362 = vmatprep.subr.bf16.mxu0 %v12159_v41  ;;  %v12219_v41 = vld [vmem:[#allocation10 + $0xb2c] ss:$236 sps:$4 sm:$0xff]  }
 0x32e   :  { %8363 = vmatpush1.bf16.msra.mxu0 %v12157_v42  ;;  %v12214_v42 = vld [vmem:[#allocation10 + $0xb20] ss:$236 sps:$4 sm:$0xff]  }
 0x32f   :  { %8364 = vmatprep.subr.bf16.mxu0 %v12165_v43  ;;  %v12217_v43 = vld [vmem:[#allocation10 + $0xb28] ss:$236 sps:$4 sm:$0xff]  }
 0x332   :  { %8365 = vmatpush1.bf16.msra.mxu0 %v12163_v44  ;;  %v12222_v44 = vld [vmem:[#allocation10 + $0xcfc] ss:$236 sps:$4 sm:$0xff]  }
 0x333   :  { %8366 = vmatprep.subr.bf16.mxu0 %v12171_v45  ;;  %v12225_v45 = vld [vmem:[#allocation10 + $0xd04] ss:$236 sps:$4 sm:$0xff]  }
 0x336   :  { %8367 = vmatpush1.bf16.msra.mxu0 %v12169_v46  ;;  %v12220_v46 = vld [vmem:[#allocation10 + $0xcf8] ss:$236 sps:$4 sm:$0xff]  }
 0x337   :  { %8368 = vmatprep.subr.bf16.mxu0 %v12177_v4  ;;  %v12258_v4 = vld [vmem:[#allocation10 + $0x95c] ss:$236 sps:$4 sm:$0xff]  }
 0x33a   :  { %8369 = vmatpush1.bf16.msra.mxu0 %v12175_v7  ;;  %v12256_v7 = vld [vmem:[#allocation10 + $0x958] ss:$236 sps:$4 sm:$0xff]  }
 0x33b   :  { %8436 = vmatprep.subr.bf16.mxu0 %v12183_v9  ;;  %v12264_v9 = vld [vmem:[#allocation10 + $0xb34] ss:$236 sps:$4 sm:$0xff]  }
 0x3f0   :  { %v5291_v15 = vpop.f32.mrb[60].mxu0 }
 0x3f1   :  { %vm5297_vm2 = vcmp.gt.f32.partialorder %v5291_v15, 0.0  ;;  %v5298_v17 = vmul.f32 0.1, %v5291_v15  ;;  %v11594_v18 = vpop.f32.mrb[61].mxu0 }
 0x3f2   :  { %v5294_v19 = vpop.f32.mrb[62].mxu0  ;;  %v12181_v18 = vld [vmem:[#allocation10 + $0x18] ss:$236 sps:$4 sm:$0xff]  }
 0x3f3   :  { %v5299_v20 = vsel %vm5297_vm2, %v5291_v15, %v5298_v17  ;;  %v11595_v21 = vpop.f32.mrb[63].mxu0  ;;  %v12178_v17 = vld [vmem:[#allocation10 + $0x10] ss:$236 sps:$4 sm:$0xff]  }
 0x3f4   :  { %v5300_v22 = vpack.c.bf16 %v5299_v20, %v5299_v20  ;;  %v12186_v20 = vld [vmem:[#allocation10 + $0x1ec] ss:$236 sps:$4 sm:$0xff]   ;;  %v12189_v21 = vld [vmem:[#allocation10 + $0x1f4] ss:$236 sps:$4 sm:$0xff]  }
 0x3f6   :  { %11599 = vmatmul.mubr.msk.bf16.vlgmr.msra.gmra.mrb[60].mxu1 %vm5309_vm4, %v5300_v22  ;;  %v12184_v22 = vld [vmem:[#allocation10 + $0x1e8] ss:$236 sps:$4 sm:$0xff]  }
 0x3f7   :  { %11603 = vmatpush3.bf16.msra.mxu1 %v5364_v23  ;;  %11604 = vmatprep.mubr.msk.bf16.mxu1 %vm13244_vm0, %v13243_v5  ;;  %v12187_v23 = vld [vmem:[#allocation10 + $0x1f0] ss:$236 sps:$4 sm:$0xff]  }
 0x3f8   :  { %11608 = vmatprep.subr.bf16.mxu1 %v13243_v5 }
 0x4c9   :  { %v5347_v24 = vpop.f32.mrb[60].mxu1 }
 0x4ca   :  { %vm5353_vm5 = vcmp.gt.f32.partialorder %v5347_v24, 0.0  ;;  %v5354_v25 = vmul.f32 0.1, %v5347_v24  ;;  %v11600_v26 = vpop.f32.mrb[61].mxu1 }
 0x4cb   :  { %v5350_v27 = vpop.f32.mrb[62].mxu1  ;;  %v12190_v26 = vld [vmem:[#allocation10 + $0x3c0] ss:$236 sps:$4 sm:$0xff]  }
 0x4cc   :  { %v5355_v28 = vsel %vm5353_vm5, %v5347_v24, %v5354_v25  ;;  %v11601_v29 = vpop.f32.mrb[63].mxu1  ;;  %v12192_v24 = vld [vmem:[#allocation10 + $0x3c4] ss:$236 sps:$4 sm:$0xff]   ;;  %v12195_v25 = vld [vmem:[#allocation10 + $0x3cc] ss:$236 sps:$4 sm:$0xff]  }
 0x4cd   :  { %v5356_v31 = vpack.c.bf16 %v5355_v28, %v5355_v28  ;;  %9896 = vst.msk [vmem:[#allocation12] sm:$0xff] %vm5358_vm6, %v5355_v28  ;;  %v12193_v27 = vld [vmem:[#allocation10 + $0x3c8] ss:$236 sps:$4 sm:$0xff]   ;;  %v12201_v29 = vld [vmem:[#allocation10 + $0x5a4] ss:$236 sps:$4 sm:$0xff]  }
 0x4ce   :  { %v12198_v28 = vld [vmem:[#allocation10 + $0x59c] ss:$236 sps:$4 sm:$0xff]  }
 0x4cf   :  { %11605 = vmatmul.mubr.msk.bf16.vlgmr.msra.gmra.mrb[64].mxu1 %vm5358_vm6, %v5356_v31  ;;  %v12199_v31 = vld [vmem:[#allocation10 + $0x5a0] ss:$236 sps:$4 sm:$0xff]  }
 0x4d0   :  { %11609 = vmatpush3.bf16.msra.mxu1 %v12129_v30  ;;  %11610 = vmatprep.mubr.msk.bf16.mxu1 %vm13244_vm0, %v13243_v5  ;;  %v12196_v30 = vld [vmem:[#allocation10 + $0x598] ss:$236 sps:$4 sm:$0xff]  }
 0x4d1   :  { %8313 = vmatprep.subr.bf16.mxu1 %v12132_v32  ;;  %v12204_v32 = vld [vmem:[#allocation10 + $0x774] ss:$236 sps:$4 sm:$0xff]  }
 0x5a2   :  { %v5400_v47 = vpop.f32.mrb[64].mxu1 }
 0x5a3   :  { %vm5406_vm7 = vcmp.gt.f32.partialorder %v5400_v47, 0.0  ;;  %v5407_v48 = vmul.f32 0.1, %v5400_v47  ;;  %v11606_v49 = vpop.f32.mrb[65].mxu1 }
 0x5a4   :  { %v5403_v50 = vpop.f32.mrb[66].mxu1  ;;  %v12231_v49 = vld [vmem:[#allocation10 + $0x2c] ss:$236 sps:$4 sm:$0xff]  }
 0x5a5   :  { %v5408_v51 = vsel %vm5406_vm7, %v5400_v47, %v5407_v48  ;;  %v11607_v52 = vpop.f32.mrb[67].mxu1  ;;  %v12223_v47 = vld [vmem:[#allocation10 + $0xd00] ss:$236 sps:$4 sm:$0xff]   ;;  %v12228_v48 = vld [vmem:[#allocation10 + $0x24] ss:$236 sps:$4 sm:$0xff]  }
 0x5a6   :  { %v5409_v54 = vpack.c.bf16 %v5408_v51, %v5408_v51  ;;  %v12226_v50 = vld [vmem:[#allocation10 + $0x20] ss:$236 sps:$4 sm:$0xff]   ;;  %v12229_v51 = vld [vmem:[#allocation10 + $0x28] ss:$236 sps:$4 sm:$0xff]  }
 0x5a7   :  { %v12234_v52 = vld [vmem:[#allocation10 + $0x1fc] ss:$236 sps:$4 sm:$0xff]  }
 0x5a8   :  { %11611 = vmatmul.mubr.msk.bf16.vlgmr.msra.gmra.mrb[68].mxu1 %vm5309_vm4, %v5409_v54  ;;  %v12232_v54 = vld [vmem:[#allocation10 + $0x1f8] ss:$236 sps:$4 sm:$0xff]  }
 0x5a9   :  { %8314 = vmatpush1.bf16.msra.mxu1 %v12130_v53  ;;  %8345 = vmatprep.mubr.bf16.mxu1 %v13245_v10  ;;  %v12237_v53 = vld [vmem:[#allocation10 + $0x204] ss:$236 sps:$4 sm:$0xff]  }
 0x5aa   :  { %8315 = vmatprep.subr.bf16.mxu1 %v12138_v55  ;;  %v12235_v55 = vld [vmem:[#allocation10 + $0x200] ss:$236 sps:$4 sm:$0xff]  }
 0x5ad   :  { %8316 = vmatpush1.bf16.msra.mxu1 %v12136_v56  ;;  %v12240_v56 = vld [vmem:[#allocation10 + $0x3d4] ss:$236 sps:$4 sm:$0xff]  }
 0x5ae   :  { %8317 = vmatprep.subr.bf16.mxu1 %v12144_v57  ;;  %v12243_v57 = vld [vmem:[#allocation10 + $0x3dc] ss:$236 sps:$4 sm:$0xff]  }
 0x5b1   :  { %8318 = vmatpush1.bf16.msra.mxu1 %v12142_v58  ;;  %v12238_v58 = vld [vmem:[#allocation10 + $0x3d0] ss:$236 sps:$4 sm:$0xff]  }
 0x5b2   :  { %8319 = vmatprep.subr.bf16.mxu1 %v12150_v59  ;;  %v12241_v59 = vld [vmem:[#allocation10 + $0x3d8] ss:$236 sps:$4 sm:$0xff]  }
 0x5b5   :  { %8320 = vmatpush1.bf16.msra.mxu1 %v12148_v60  ;;  %v12246_v60 = vld [vmem:[#allocation10 + $0x5ac] ss:$236 sps:$4 sm:$0xff]  }
 0x5b6   :  { %8321 = vmatprep.subr.bf16.mxu1 %v12156_v61  ;;  %v12249_v61 = vld [vmem:[#allocation10 + $0x5b4] ss:$236 sps:$4 sm:$0xff]  }
 0x5b9   :  { %8322 = vmatpush1.bf16.msra.mxu1 %v12154_v62  ;;  %v12244_v62 = vld [vmem:[#allocation10 + $0x5a8] ss:$236 sps:$4 sm:$0xff]  }
 0x5ba   :  { %8323 = vmatprep.subr.bf16.mxu1 %v12162_v63  ;;  %v12247_v63 = vld [vmem:[#allocation10 + $0x5b0] ss:$236 sps:$4 sm:$0xff]  }
 0x5bd   :  { %8324 = vmatpush1.bf16.msra.mxu1 %v12160_v0  ;;  %v12252_v0 = vld [vmem:[#allocation10 + $0x784] ss:$236 sps:$4 sm:$0xff]  }
 0x5be   :  { %8325 = vmatprep.subr.bf16.mxu1 %v12168_v1  ;;  %v12255_v1 = vld [vmem:[#allocation10 + $0x78c] ss:$236 sps:$4 sm:$0xff]  }
 0x5c1   :  { %8326 = vmatpush1.bf16.msra.mxu1 %v12166_v2  ;;  %v12250_v2 = vld [vmem:[#allocation10 + $0x780] ss:$236 sps:$4 sm:$0xff]  }
 0x5c2   :  { %8327 = vmatprep.subr.bf16.mxu1 %v12174_v3  ;;  %v12253_v3 = vld [vmem:[#allocation10 + $0x788] ss:$236 sps:$4 sm:$0xff]  }
 0x5c5   :  { %8328 = vmatpush1.bf16.msra.mxu1 %v12172_v6  ;;  %v12261_v6 = vld [vmem:[#allocation10 + $0x964] ss:$236 sps:$4 sm:$0xff]  }
 0x5c6   :  { %8395 = vmatprep.subr.bf16.mxu1 %v12180_v8  ;;  %v12259_v8 = vld [vmem:[#allocation10 + $0x960] ss:$236 sps:$4 sm:$0xff]  }
 0x67b   :  { %v5455_v11 = vpop.f32.mrb[68].mxu1 }
 0x67c   :  { %vm5461_vm8 = vcmp.gt.f32.partialorder %v5455_v11, 0.0  ;;  %v5462_v12 = vmul.f32 0.1, %v5455_v11  ;;  %v11612_v13 = vpop.f32.mrb[69].mxu1 }
 0x67d   :  { %v5458_v14 = vpop.f32.mrb[70].mxu1  ;;  %v12265_v13 = vld [vmem:[#allocation10 + $0xb38] ss:$236 sps:$4 sm:$0xff]  }
 0x67e   :  { %v5463_v15 = vsel %vm5461_vm8, %v5455_v11, %v5462_v12  ;;  %v11613_v16 = vpop.f32.mrb[71].mxu1  ;;  %v12267_v11 = vld [vmem:[#allocation10 + $0xb3c] ss:$236 sps:$4 sm:$0xff]   ;;  %v12270_v14 = vld [vmem:[#allocation10 + $0xd0c] ss:$236 sps:$4 sm:$0xff]  }
 0x67f   :  { %v13434_v19 = vpack.c.bf16 %v5463_v15, %v5463_v15  ;;  %v12262_v12 = vld [vmem:[#allocation10 + $0xb30] ss:$236 sps:$4 sm:$0xff]   ;;  %v12273_v15 = vld [vmem:[#allocation10 + $0xd14] ss:$236 sps:$4 sm:$0xff]  }
 0x680   :  { %v12268_v16 = vld [vmem:[#allocation10 + $0xd08] ss:$236 sps:$4 sm:$0xff]  }
 0x681   :  { %8346 = vmatmul.mubr.bf16.vlgmr.msra.gmra.mrb[72].mxu1 %v13434_v19  ;;  %8387 = vmatmul.mubr.bf16.vlgmr.msra.gmra.mrb[64].mxu0 %v13434_v19 }
 0x682   :  { %8396 = vmatpush1.bf16.msra.mxu1 %v12178_v17  ;;  %8437 = vmatpush1.bf16.msra.mxu0 %v12181_v18  ;;  %v12271_v17 = vld [vmem:[#allocation10 + $0xd10] ss:$236 sps:$4 sm:$0xff]   ;;  %v12276_v18 = vld [vmem:[#allocation10 + $0x34] ss:$236 sps:$4 sm:$0xff]  }
 0x683   :  { %8397 = vmatprep.subr.bf16.mxu1 %v12186_v20  ;;  %8438 = vmatprep.subr.bf16.mxu0 %v12189_v21  ;;  %v12279_v20 = vld [vmem:[#allocation10 + $0x3c] ss:$236 sps:$4 sm:$0xff]  }
 0x684   :  { %8427 = vmatprep.mubr.bf16.mxu1 %v13245_v10  ;;  %8468 = vmatprep.mubr.bf16.mxu0 %v13245_v10  ;;  %v12274_v21 = vld [vmem:[#allocation10 + $0x30] ss:$236 sps:$4 sm:$0xff]  }
 0x686   :  { %8398 = vmatpush1.bf16.msra.mxu1 %v12184_v22  ;;  %8439 = vmatpush1.bf16.msra.mxu0 %v12187_v23  ;;  %v12277_v22 = vld [vmem:[#allocation10 + $0x38] ss:$236 sps:$4 sm:$0xff]  }
 0x687   :  { %8399 = vmatprep.subr.bf16.mxu1 %v12192_v24  ;;  %8440 = vmatprep.subr.bf16.mxu0 %v12195_v25  ;;  %v12282_v23 = vld [vmem:[#allocation10 + $0x20c] ss:$236 sps:$4 sm:$0xff]   ;;  %v12285_v24 = vld [vmem:[#allocation10 + $0x214] ss:$236 sps:$4 sm:$0xff]  }
 0x688   :  { %v12280_v25 = vld [vmem:[#allocation10 + $0x208] ss:$236 sps:$4 sm:$0xff]  }
 0x68a   :  { %8400 = vmatpush1.bf16.msra.mxu1 %v12190_v26  ;;  %8441 = vmatpush1.bf16.msra.mxu0 %v12193_v27  ;;  %v12283_v26 = vld [vmem:[#allocation10 + $0x210] ss:$236 sps:$4 sm:$0xff]  }
 0x68b   :  { %8401 = vmatprep.subr.bf16.mxu1 %v12198_v28  ;;  %8442 = vmatprep.subr.bf16.mxu0 %v12201_v29  ;;  %v12288_v27 = vld [vmem:[#allocation10 + $0x3e4] ss:$236 sps:$4 sm:$0xff]   ;;  %v12291_v28 = vld [vmem:[#allocation10 + $0x3ec] ss:$236 sps:$4 sm:$0xff]  }
 0x68c   :  { %v12286_v29 = vld [vmem:[#allocation10 + $0x3e0] ss:$236 sps:$4 sm:$0xff]  }
 0x68e   :  { %8402 = vmatpush1.bf16.msra.mxu1 %v12196_v30  ;;  %8443 = vmatpush1.bf16.msra.mxu0 %v12199_v31  ;;  %v12289_v30 = vld [vmem:[#allocation10 + $0x3e8] ss:$236 sps:$4 sm:$0xff]  }
 0x68f   :  { %8403 = vmatprep.subr.bf16.mxu1 %v12204_v32  ;;  %8444 = vmatprep.subr.bf16.mxu0 %v12207_v33  ;;  %v12294_v31 = vld [vmem:[#allocation10 + $0x5bc] ss:$236 sps:$4 sm:$0xff]   ;;  %v12297_v32 = vld [vmem:[#allocation10 + $0x5c4] ss:$236 sps:$4 sm:$0xff]  }
 0x690   :  { %v12292_v33 = vld [vmem:[#allocation10 + $0x5b8] ss:$236 sps:$4 sm:$0xff]  }
 0x692   :  { %8404 = vmatpush1.bf16.msra.mxu1 %v12202_v34  ;;  %8445 = vmatpush1.bf16.msra.mxu0 %v12205_v35  ;;  %v12295_v34 = vld [vmem:[#allocation10 + $0x5c0] ss:$236 sps:$4 sm:$0xff]  }
 0x693   :  { %8405 = vmatprep.subr.bf16.mxu1 %v12210_v36  ;;  %8446 = vmatprep.subr.bf16.mxu0 %v12213_v37  ;;  %v12300_v35 = vld [vmem:[#allocation10 + $0x794] ss:$236 sps:$4 sm:$0xff]   ;;  %v12303_v36 = vld [vmem:[#allocation10 + $0x79c] ss:$236 sps:$4 sm:$0xff]  }
 0x694   :  { %v12298_v37 = vld [vmem:[#allocation10 + $0x790] ss:$236 sps:$4 sm:$0xff]  }
 0x696   :  { %8406 = vmatpush1.bf16.msra.mxu1 %v12208_v38  ;;  %8447 = vmatpush1.bf16.msra.mxu0 %v12211_v39  ;;  %v12301_v38 = vld [vmem:[#allocation10 + $0x798] ss:$236 sps:$4 sm:$0xff]  }
 0x697   :  { %8407 = vmatprep.subr.bf16.mxu1 %v12216_v40  ;;  %8448 = vmatprep.subr.bf16.mxu0 %v12219_v41  ;;  %v12306_v39 = vld [vmem:[#allocation10 + $0x96c] ss:$236 sps:$4 sm:$0xff]   ;;  %v12309_v40 = vld [vmem:[#allocation10 + $0x974] ss:$236 sps:$4 sm:$0xff]  }
 0x698   :  { %v12304_v41 = vld [vmem:[#allocation10 + $0x968] ss:$236 sps:$4 sm:$0xff]  }
 0x69a   :  { %8408 = vmatpush1.bf16.msra.mxu1 %v12214_v42  ;;  %8449 = vmatpush1.bf16.msra.mxu0 %v12217_v43  ;;  %v12307_v42 = vld [vmem:[#allocation10 + $0x970] ss:$236 sps:$4 sm:$0xff]  }
 0x69b   :  { %8409 = vmatprep.subr.bf16.mxu1 %v12222_v44  ;;  %8450 = vmatprep.subr.bf16.mxu0 %v12225_v45  ;;  %v12312_v43 = vld [vmem:[#allocation10 + $0xb44] ss:$236 sps:$4 sm:$0xff]   ;;  %v12315_v44 = vld [vmem:[#allocation10 + $0xb4c] ss:$236 sps:$4 sm:$0xff]  }
 0x69c   :  { %v12310_v45 = vld [vmem:[#allocation10 + $0xb40] ss:$236 sps:$4 sm:$0xff]  }
 0x69e   :  { %8410 = vmatpush1.bf16.msra.mxu1 %v12220_v46  ;;  %8451 = vmatpush1.bf16.msra.mxu0 %v12223_v47  ;;  %v12313_v46 = vld [vmem:[#allocation10 + $0xb48] ss:$236 sps:$4 sm:$0xff]  }
 0x69f   :  { %8477 = vmatprep.subr.bf16.mxu1 %v12228_v48  ;;  %8518 = vmatprep.subr.bf16.mxu0 %v12231_v49  ;;  %v12318_v47 = vld [vmem:[#allocation10 + $0xd1c] ss:$236 sps:$4 sm:$0xff]   ;;  %v12321_v48 = vld [vmem:[#allocation10 + $0xd24] ss:$236 sps:$4 sm:$0xff]  }
 0x6a0   :  { %v12316_v49 = vld [vmem:[#allocation10 + $0xd18] ss:$236 sps:$4 sm:$0xff]  }
 0x6a1   :  { %8428 = vmatmul.mubr.bf16.vlgmr.msra.gmra.mrb[76].mxu1 %v13434_v19  ;;  %8469 = vmatmul.mubr.bf16.vlgmr.msra.gmra.mrb[68].mxu0 %v13434_v19 }
 0x6a2   :  { %8478 = vmatpush1.bf16.msra.mxu1 %v12226_v50  ;;  %8519 = vmatpush1.bf16.msra.mxu0 %v12229_v51  ;;  %v12319_v50 = vld [vmem:[#allocation10 + $0xd20] ss:$236 sps:$4 sm:$0xff]   ;;  %v12324_v51 = vld [vmem:[#allocation10 + $0x44] ss:$236 sps:$4 sm:$0xff]  }
 0x6a3   :  { %8479 = vmatprep.subr.bf16.mxu1 %v12234_v52  ;;  %8520 = vmatprep.subr.bf16.mxu0 %v12237_v53  ;;  %v12327_v52 = vld [vmem:[#allocation10 + $0x4c] ss:$236 sps:$4 sm:$0xff]  }
 0x6a4   :  { %8509 = vmatprep.mubr.bf16.mxu1 %v13245_v10  ;;  %8550 = vmatprep.mubr.bf16.mxu0 %v13245_v10  ;;  %v12322_v53 = vld [vmem:[#allocation10 + $0x40] ss:$236 sps:$4 sm:$0xff]  }
 0x6a6   :  { %8480 = vmatpush1.bf16.msra.mxu1 %v12232_v54  ;;  %8521 = vmatpush1.bf16.msra.mxu0 %v12235_v55  ;;  %v12325_v54 = vld [vmem:[#allocation10 + $0x48] ss:$236 sps:$4 sm:$0xff]  }
 0x6a7   :  { %8481 = vmatprep.subr.bf16.mxu1 %v12240_v56  ;;  %8522 = vmatprep.subr.bf16.mxu0 %v12243_v57  ;;  %v12330_v55 = vld [vmem:[#allocation10 + $0x21c] ss:$236 sps:$4 sm:$0xff]   ;;  %v12333_v56 = vld [vmem:[#allocation10 + $0x224] ss:$236 sps:$4 sm:$0xff]  }
 0x6a8   :  { %v12328_v57 = vld [vmem:[#allocation10 + $0x218] ss:$236 sps:$4 sm:$0xff]  }
 0x6aa   :  { %8482 = vmatpush1.bf16.msra.mxu1 %v12238_v58  ;;  %8523 = vmatpush1.bf16.msra.mxu0 %v12241_v59  ;;  %v12331_v58 = vld [vmem:[#allocation10 + $0x220] ss:$236 sps:$4 sm:$0xff]  }
 0x6ab   :  { %8483 = vmatprep.subr.bf16.mxu1 %v12246_v60  ;;  %8524 = vmatprep.subr.bf16.mxu0 %v12249_v61  ;;  %v12336_v59 = vld [vmem:[#allocation10 + $0x3f4] ss:$236 sps:$4 sm:$0xff]   ;;  %v12339_v60 = vld [vmem:[#allocation10 + $0x3fc] ss:$236 sps:$4 sm:$0xff]  }
 0x6ac   :  { %v12334_v61 = vld [vmem:[#allocation10 + $0x3f0] ss:$236 sps:$4 sm:$0xff]  }
 0x6ae   :  { %8484 = vmatpush1.bf16.msra.mxu1 %v12244_v62  ;;  %8525 = vmatpush1.bf16.msra.mxu0 %v12247_v63  ;;  %v12337_v62 = vld [vmem:[#allocation10 + $0x3f8] ss:$236 sps:$4 sm:$0xff]  }
 0x6af   :  { %8485 = vmatprep.subr.bf16.mxu1 %v12252_v0  ;;  %8526 = vmatprep.subr.bf16.mxu0 %v12255_v1  ;;  %v12342_v63 = vld [vmem:[#allocation10 + $0x5cc] ss:$236 sps:$4 sm:$0xff]   ;;  %v12345_v0 = vld [vmem:[#allocation10 + $0x5d4] ss:$236 sps:$4 sm:$0xff]  }
 0x6b0   :  { %v12340_v1 = vld [vmem:[#allocation10 + $0x5c8] ss:$236 sps:$4 sm:$0xff]  }
 0x6b2   :  { %8486 = vmatpush1.bf16.msra.mxu1 %v12250_v2  ;;  %8527 = vmatpush1.bf16.msra.mxu0 %v12253_v3  ;;  %v12343_v2 = vld [vmem:[#allocation10 + $0x5d0] ss:$236 sps:$4 sm:$0xff]  }
 0x6b3   :  { %8487 = vmatprep.subr.bf16.mxu1 %v12258_v4  ;;  %8528 = vmatprep.subr.bf16.mxu0 %v12261_v6  ;;  %v12348_v3 = vld [vmem:[#allocation10 + $0x7a4] ss:$236 sps:$4 sm:$0xff]   ;;  %v12351_v4 = vld [vmem:[#allocation10 + $0x7ac] ss:$236 sps:$4 sm:$0xff]  }
 0x6b4   :  { %v12346_v6 = vld [vmem:[#allocation10 + $0x7a0] ss:$236 sps:$4 sm:$0xff]  }
 0x6b6   :  { %8488 = vmatpush1.bf16.msra.mxu1 %v12256_v7  ;;  %8529 = vmatpush1.bf16.msra.mxu0 %v12259_v8  ;;  %v12349_v7 = vld [vmem:[#allocation10 + $0x7a8] ss:$236 sps:$4 sm:$0xff]  }
 0x6b7   :  { %8489 = vmatprep.subr.bf16.mxu1 %v12264_v9  ;;  %8530 = vmatprep.subr.bf16.mxu0 %v12267_v11  ;;  %v12354_v8 = vld [vmem:[#allocation10 + $0x97c] ss:$236 sps:$4 sm:$0xff]   ;;  %v12357_v9 = vld [vmem:[#allocation10 + $0x984] ss:$236 sps:$4 sm:$0xff]  }
 0x6b8   :  { %v12352_v11 = vld [vmem:[#allocation10 + $0x978] ss:$236 sps:$4 sm:$0xff]  }
 0x6ba   :  { %8490 = vmatpush1.bf16.msra.mxu1 %v12262_v12  ;;  %8531 = vmatpush1.bf16.msra.mxu0 %v12265_v13  ;;  %v12355_v12 = vld [vmem:[#allocation10 + $0x980] ss:$236 sps:$4 sm:$0xff]  }
 0x6bb   :  { %8491 = vmatprep.subr.bf16.mxu1 %v12270_v14  ;;  %8532 = vmatprep.subr.bf16.mxu0 %v12273_v15  ;;  %v12360_v13 = vld [vmem:[#allocation10 + $0xb54] ss:$236 sps:$4 sm:$0xff]   ;;  %v12363_v14 = vld [vmem:[#allocation10 + $0xb5c] ss:$236 sps:$4 sm:$0xff]  }
 0x6bc   :  { %v12358_v15 = vld [vmem:[#allocation10 + $0xb50] ss:$236 sps:$4 sm:$0xff]  }
 0x6be   :  { %8492 = vmatpush1.bf16.msra.mxu1 %v12268_v16  ;;  %8533 = vmatpush1.bf16.msra.mxu0 %v12271_v17  ;;  %v12361_v16 = vld [vmem:[#allocation10 + $0xb58] ss:$236 sps:$4 sm:$0xff]  }
 0x6bf   :  { %8559 = vmatprep.subr.bf16.mxu1 %v12276_v18  ;;  %8600 = vmatprep.subr.bf16.mxu0 %v12279_v20  ;;  %v12366_v17 = vld [vmem:[#allocation10 + $0xd2c] ss:$236 sps:$4 sm:$0xff]   ;;  %v12369_v18 = vld [vmem:[#allocation10 + $0xd34] ss:$236 sps:$4 sm:$0xff]  }
 0x6c0   :  { %v12364_v20 = vld [vmem:[#allocation10 + $0xd28] ss:$236 sps:$4 sm:$0xff]  }
 0x6c1   :  { %8510 = vmatmul.mubr.bf16.vlgmr.msra.gmra.mrb[80].mxu1 %v13434_v19  ;;  %8551 = vmatmul.mubr.bf16.vlgmr.msra.gmra.mrb[72].mxu0 %v13434_v19 }
 0x6c2   :  { %8560 = vmatpush1.bf16.msra.mxu1 %v12274_v21  ;;  %8601 = vmatpush1.bf16.msra.mxu0 %v12277_v22  ;;  %v12367_v21 = vld [vmem:[#allocation10 + $0xd30] ss:$236 sps:$4 sm:$0xff]   ;;  %v12372_v22 = vld [vmem:[#allocation10 + $0x54] ss:$236 sps:$4 sm:$0xff]  }
 0x6c3   :  { %8561 = vmatprep.subr.bf16.mxu1 %v12282_v23  ;;  %8602 = vmatprep.subr.bf16.mxu0 %v12285_v24  ;;  %v12375_v23 = vld [vmem:[#allocation10 + $0x5c] ss:$236 sps:$4 sm:$0xff]  }
 0x6c4   :  { %8591 = vmatprep.mubr.bf16.mxu1 %v13245_v10  ;;  %8632 = vmatprep.mubr.bf16.mxu0 %v13245_v10  ;;  %v12370_v24 = vld [vmem:[#allocation10 + $0x50] ss:$236 sps:$4 sm:$0xff]  }
 0x6c6   :  { %8562 = vmatpush1.bf16.msra.mxu1 %v12280_v25  ;;  %8603 = vmatpush1.bf16.msra.mxu0 %v12283_v26  ;;  %v12373_v25 = vld [vmem:[#allocation10 + $0x58] ss:$236 sps:$4 sm:$0xff]  }
 0x6c7   :  { %8563 = vmatprep.subr.bf16.mxu1 %v12288_v27  ;;  %8604 = vmatprep.subr.bf16.mxu0 %v12291_v28  ;;  %v12378_v26 = vld [vmem:[#allocation10 + $0x22c] ss:$236 sps:$4 sm:$0xff]   ;;  %v12381_v27 = vld [vmem:[#allocation10 + $0x234] ss:$236 sps:$4 sm:$0xff]  }
 0x6c8   :  { %v12376_v28 = vld [vmem:[#allocation10 + $0x228] ss:$236 sps:$4 sm:$0xff]  }
 0x6ca   :  { %8564 = vmatpush1.bf16.msra.mxu1 %v12286_v29  ;;  %8605 = vmatpush1.bf16.msra.mxu0 %v12289_v30  ;;  %v12379_v29 = vld [vmem:[#allocation10 + $0x230] ss:$236 sps:$4 sm:$0xff]  }
 0x6cb   :  { %8565 = vmatprep.subr.bf16.mxu1 %v12294_v31  ;;  %8606 = vmatprep.subr.bf16.mxu0 %v12297_v32  ;;  %v12384_v30 = vld [vmem:[#allocation10 + $0x404] ss:$236 sps:$4 sm:$0xff]   ;;  %v12387_v31 = vld [vmem:[#allocation10 + $0x40c] ss:$236 sps:$4 sm:$0xff]  }
 0x6cc   :  { %v12382_v32 = vld [vmem:[#allocation10 + $0x400] ss:$236 sps:$4 sm:$0xff]  }
 0x6ce   :  { %8566 = vmatpush1.bf16.msra.mxu1 %v12292_v33  ;;  %8607 = vmatpush1.bf16.msra.mxu0 %v12295_v34  ;;  %v12385_v33 = vld [vmem:[#allocation10 + $0x408] ss:$236 sps:$4 sm:$0xff]  }
 0x6cf   :  { %8567 = vmatprep.subr.bf16.mxu1 %v12300_v35  ;;  %8608 = vmatprep.subr.bf16.mxu0 %v12303_v36  ;;  %v12390_v34 = vld [vmem:[#allocation10 + $0x5dc] ss:$236 sps:$4 sm:$0xff]   ;;  %v12393_v35 = vld [vmem:[#allocation10 + $0x5e4] ss:$236 sps:$4 sm:$0xff]  }
 0x6d0   :  { %v12388_v36 = vld [vmem:[#allocation10 + $0x5d8] ss:$236 sps:$4 sm:$0xff]  }
 0x6d2   :  { %8568 = vmatpush1.bf16.msra.mxu1 %v12298_v37  ;;  %8609 = vmatpush1.bf16.msra.mxu0 %v12301_v38  ;;  %v12391_v37 = vld [vmem:[#allocation10 + $0x5e0] ss:$236 sps:$4 sm:$0xff]  }
 0x6d3   :  { %8569 = vmatprep.subr.bf16.mxu1 %v12306_v39  ;;  %8610 = vmatprep.subr.bf16.mxu0 %v12309_v40  ;;  %v12396_v38 = vld [vmem:[#allocation10 + $0x7b4] ss:$236 sps:$4 sm:$0xff]   ;;  %v12399_v39 = vld [vmem:[#allocation10 + $0x7bc] ss:$236 sps:$4 sm:$0xff]  }
 0x6d4   :  { %v12394_v40 = vld [vmem:[#allocation10 + $0x7b0] ss:$236 sps:$4 sm:$0xff]  }
 0x6d6   :  { %8570 = vmatpush1.bf16.msra.mxu1 %v12304_v41  ;;  %8611 = vmatpush1.bf16.msra.mxu0 %v12307_v42  ;;  %v12397_v41 = vld [vmem:[#allocation10 + $0x7b8] ss:$236 sps:$4 sm:$0xff]  }
 0x6d7   :  { %8571 = vmatprep.subr.bf16.mxu1 %v12312_v43  ;;  %8612 = vmatprep.subr.bf16.mxu0 %v12315_v44  ;;  %v12402_v42 = vld [vmem:[#allocation10 + $0x98c] ss:$236 sps:$4 sm:$0xff]   ;;  %v12405_v43 = vld [vmem:[#allocation10 + $0x994] ss:$236 sps:$4 sm:$0xff]  }
 0x6d8   :  { %v12400_v44 = vld [vmem:[#allocation10 + $0x988] ss:$236 sps:$4 sm:$0xff]  }
 0x6da   :  { %8572 = vmatpush1.bf16.msra.mxu1 %v12310_v45  ;;  %8613 = vmatpush1.bf16.msra.mxu0 %v12313_v46  ;;  %v12403_v45 = vld [vmem:[#allocation10 + $0x990] ss:$236 sps:$4 sm:$0xff]  }
 0x6db   :  { %8573 = vmatprep.subr.bf16.mxu1 %v12318_v47  ;;  %8614 = vmatprep.subr.bf16.mxu0 %v12321_v48  ;;  %v12408_v46 = vld [vmem:[#allocation10 + $0xb64] ss:$236 sps:$4 sm:$0xff]   ;;  %v12411_v47 = vld [vmem:[#allocation10 + $0xb6c] ss:$236 sps:$4 sm:$0xff]  }
 0x6dc   :  { %v12406_v48 = vld [vmem:[#allocation10 + $0xb60] ss:$236 sps:$4 sm:$0xff]  }
 0x6de   :  { %8574 = vmatpush1.bf16.msra.mxu1 %v12316_v49  ;;  %8615 = vmatpush1.bf16.msra.mxu0 %v12319_v50  ;;  %v12409_v49 = vld [vmem:[#allocation10 + $0xb68] ss:$236 sps:$4 sm:$0xff]  }
 0x6df   :  { %8641 = vmatprep.subr.bf16.mxu1 %v12324_v51  ;;  %8682 = vmatprep.subr.bf16.mxu0 %v12327_v52  ;;  %v12414_v50 = vld [vmem:[#allocation10 + $0xd3c] ss:$236 sps:$4 sm:$0xff]   ;;  %v12417_v51 = vld [vmem:[#allocation10 + $0xd44] ss:$236 sps:$4 sm:$0xff]  }
 0x6e0   :  { %v12412_v52 = vld [vmem:[#allocation10 + $0xd38] ss:$236 sps:$4 sm:$0xff]  }
 0x6e1   :  { %8592 = vmatmul.mubr.bf16.vlgmr.msra.gmra.mrb[84].mxu1 %v13434_v19  ;;  %8633 = vmatmul.mubr.bf16.vlgmr.msra.gmra.mrb[76].mxu0 %v13434_v19 }
 0x6e2   :  { %8642 = vmatpush1.bf16.msra.mxu1 %v12322_v53  ;;  %8683 = vmatpush1.bf16.msra.mxu0 %v12325_v54  ;;  %v12415_v53 = vld [vmem:[#allocation10 + $0xd40] ss:$236 sps:$4 sm:$0xff]   ;;  %v12420_v54 = vld [vmem:[#allocation10 + $0x64] ss:$236 sps:$4 sm:$0xff]  }
 0x6e3   :  { %8643 = vmatprep.subr.bf16.mxu1 %v12330_v55  ;;  %8684 = vmatprep.subr.bf16.mxu0 %v12333_v56  ;;  %v12423_v55 = vld [vmem:[#allocation10 + $0x6c] ss:$236 sps:$4 sm:$0xff]  }
 0x6e4   :  { %8673 = vmatprep.mubr.bf16.mxu1 %v13245_v10  ;;  %8714 = vmatprep.mubr.bf16.mxu0 %v13245_v10  ;;  %v12418_v56 = vld [vmem:[#allocation10 + $0x60] ss:$236 sps:$4 sm:$0xff]  }
 0x6e6   :  { %8644 = vmatpush1.bf16.msra.mxu1 %v12328_v57  ;;  %8685 = vmatpush1.bf16.msra.mxu0 %v12331_v58  ;;  %v12421_v57 = vld [vmem:[#allocation10 + $0x68] ss:$236 sps:$4 sm:$0xff]  }
 0x6e7   :  { %8645 = vmatprep.subr.bf16.mxu1 %v12336_v59  ;;  %8686 = vmatprep.subr.bf16.mxu0 %v12339_v60  ;;  %v12426_v58 = vld [vmem:[#allocation10 + $0x23c] ss:$236 sps:$4 sm:$0xff]   ;;  %v12429_v59 = vld [vmem:[#allocation10 + $0x244] ss:$236 sps:$4 sm:$0xff]  }
 0x6e8   :  { %v12424_v60 = vld [vmem:[#allocation10 + $0x238] ss:$236 sps:$4 sm:$0xff]  }
 0x6ea   :  { %8646 = vmatpush1.bf16.msra.mxu1 %v12334_v61  ;;  %8687 = vmatpush1.bf16.msra.mxu0 %v12337_v62  ;;  %v12427_v61 = vld [vmem:[#allocation10 + $0x240] ss:$236 sps:$4 sm:$0xff]  }
 0x6eb   :  { %8647 = vmatprep.subr.bf16.mxu1 %v12342_v63  ;;  %8688 = vmatprep.subr.bf16.mxu0 %v12345_v0  ;;  %v12432_v62 = vld [vmem:[#allocation10 + $0x414] ss:$236 sps:$4 sm:$0xff]   ;;  %v12435_v63 = vld [vmem:[#allocation10 + $0x41c] ss:$236 sps:$4 sm:$0xff]  }
 0x6ec   :  { %v12430_v0 = vld [vmem:[#allocation10 + $0x410] ss:$236 sps:$4 sm:$0xff]  }
 0x6ee   :  { %8648 = vmatpush1.bf16.msra.mxu1 %v12340_v1  ;;  %8689 = vmatpush1.bf16.msra.mxu0 %v12343_v2  ;;  %v12433_v1 = vld [vmem:[#allocation10 + $0x418] ss:$236 sps:$4 sm:$0xff]  }
 0x6ef   :  { %8649 = vmatprep.subr.bf16.mxu1 %v12348_v3  ;;  %8690 = vmatprep.subr.bf16.mxu0 %v12351_v4  ;;  %v12438_v2 = vld [vmem:[#allocation10 + $0x5ec] ss:$236 sps:$4 sm:$0xff]   ;;  %v12441_v3 = vld [vmem:[#allocation10 + $0x5f4] ss:$236 sps:$4 sm:$0xff]  }
 0x6f0   :  { %v12436_v4 = vld [vmem:[#allocation10 + $0x5e8] ss:$236 sps:$4 sm:$0xff]  }
 0x6f2   :  { %8650 = vmatpush1.bf16.msra.mxu1 %v12346_v6  ;;  %8691 = vmatpush1.bf16.msra.mxu0 %v12349_v7  ;;  %v12439_v6 = vld [vmem:[#allocation10 + $0x5f0] ss:$236 sps:$4 sm:$0xff]  }
 0x6f3   :  { %8651 = vmatprep.subr.bf16.mxu1 %v12354_v8  ;;  %8692 = vmatprep.subr.bf16.mxu0 %v12357_v9  ;;  %v12444_v7 = vld [vmem:[#allocation10 + $0x7c4] ss:$236 sps:$4 sm:$0xff]   ;;  %v12447_v8 = vld [vmem:[#allocation10 + $0x7cc] ss:$236 sps:$4 sm:$0xff]  }
 0x6f4   :  { %v12442_v9 = vld [vmem:[#allocation10 + $0x7c0] ss:$236 sps:$4 sm:$0xff]  }
 0x6f6   :  { %8652 = vmatpush1.bf16.msra.mxu1 %v12352_v11  ;;  %8693 = vmatpush1.bf16.msra.mxu0 %v12355_v12  ;;  %v12445_v11 = vld [vmem:[#allocation10 + $0x7c8] ss:$236 sps:$4 sm:$0xff]  }
 0x6f7   :  { %8653 = vmatprep.subr.bf16.mxu1 %v12360_v13  ;;  %8694 = vmatprep.subr.bf16.mxu0 %v12363_v14  ;;  %v12450_v12 = vld [vmem:[#allocation10 + $0x99c] ss:$236 sps:$4 sm:$0xff]   ;;  %v12453_v13 = vld [vmem:[#allocation10 + $0x9a4] ss:$236 sps:$4 sm:$0xff]  }
 0x6f8   :  { %v12448_v14 = vld [vmem:[#allocation10 + $0x998] ss:$236 sps:$4 sm:$0xff]  }
 0x6fa   :  { %8654 = vmatpush1.bf16.msra.mxu1 %v12358_v15  ;;  %8695 = vmatpush1.bf16.msra.mxu0 %v12361_v16  ;;  %v12451_v15 = vld [vmem:[#allocation10 + $0x9a0] ss:$236 sps:$4 sm:$0xff]  }
 0x6fb   :  { %8655 = vmatprep.subr.bf16.mxu1 %v12366_v17  ;;  %8696 = vmatprep.subr.bf16.mxu0 %v12369_v18  ;;  %v12456_v16 = vld [vmem:[#allocation10 + $0xb74] ss:$236 sps:$4 sm:$0xff]   ;;  %v12459_v17 = vld [vmem:[#allocation10 + $0xb7c] ss:$236 sps:$4 sm:$0xff]  }
 0x6fc   :  { %v12454_v18 = vld [vmem:[#allocation10 + $0xb70] ss:$236 sps:$4 sm:$0xff]  }
 0x6fe   :  { %8656 = vmatpush1.bf16.msra.mxu1 %v12364_v20  ;;  %8697 = vmatpush1.bf16.msra.mxu0 %v12367_v21  ;;  %v12457_v20 = vld [vmem:[#allocation10 + $0xb78] ss:$236 sps:$4 sm:$0xff]  }
 0x6ff   :  { %8723 = vmatprep.subr.bf16.mxu1 %v12372_v22  ;;  %8764 = vmatprep.subr.bf16.mxu0 %v12375_v23  ;;  %v12462_v21 = vld [vmem:[#allocation10 + $0xd4c] ss:$236 sps:$4 sm:$0xff]   ;;  %v12465_v22 = vld [vmem:[#allocation10 + $0xd54] ss:$236 sps:$4 sm:$0xff]  }
 0x700   :  { %v12460_v23 = vld [vmem:[#allocation10 + $0xd48] ss:$236 sps:$4 sm:$0xff]  }
 0x701   :  { %8674 = vmatmul.mubr.bf16.vlgmr.msra.gmra.mrb[88].mxu1 %v13434_v19  ;;  %8715 = vmatmul.mubr.bf16.vlgmr.msra.gmra.mrb[80].mxu0 %v13434_v19 }
 0x702   :  { %8724 = vmatpush1.bf16.msra.mxu1 %v12370_v24  ;;  %8765 = vmatpush1.bf16.msra.mxu0 %v12373_v25  ;;  %v12463_v24 = vld [vmem:[#allocation10 + $0xd50] ss:$236 sps:$4 sm:$0xff]   ;;  %v12468_v25 = vld [vmem:[#allocation10 + $0x74] ss:$236 sps:$4 sm:$0xff]  }
 0x703   :  { %8725 = vmatprep.subr.bf16.mxu1 %v12378_v26  ;;  %8766 = vmatprep.subr.bf16.mxu0 %v12381_v27  ;;  %v12471_v26 = vld [vmem:[#allocation10 + $0x7c] ss:$236 sps:$4 sm:$0xff]  }
 0x704   :  { %8755 = vmatprep.mubr.bf16.mxu1 %v13245_v10  ;;  %8796 = vmatprep.mubr.bf16.mxu0 %v13245_v10  ;;  %v12466_v27 = vld [vmem:[#allocation10 + $0x70] ss:$236 sps:$4 sm:$0xff]  }
 0x706   :  { %8726 = vmatpush1.bf16.msra.mxu1 %v12376_v28  ;;  %8767 = vmatpush1.bf16.msra.mxu0 %v12379_v29  ;;  %v12469_v28 = vld [vmem:[#allocation10 + $0x78] ss:$236 sps:$4 sm:$0xff]  }
 0x707   :  { %8727 = vmatprep.subr.bf16.mxu1 %v12384_v30  ;;  %8768 = vmatprep.subr.bf16.mxu0 %v12387_v31  ;;  %v12474_v29 = vld [vmem:[#allocation10 + $0x24c] ss:$236 sps:$4 sm:$0xff]   ;;  %v12477_v30 = vld [vmem:[#allocation10 + $0x254] ss:$236 sps:$4 sm:$0xff]  }
 0x708   :  { %v12472_v31 = vld [vmem:[#allocation10 + $0x248] ss:$236 sps:$4 sm:$0xff]  }
 0x70a   :  { %8728 = vmatpush1.bf16.msra.mxu1 %v12382_v32  ;;  %8769 = vmatpush1.bf16.msra.mxu0 %v12385_v33  ;;  %v12475_v32 = vld [vmem:[#allocation10 + $0x250] ss:$236 sps:$4 sm:$0xff]  }
 0x70b   :  { %8729 = vmatprep.subr.bf16.mxu1 %v12390_v34  ;;  %8770 = vmatprep.subr.bf16.mxu0 %v12393_v35  ;;  %v12480_v33 = vld [vmem:[#allocation10 + $0x424] ss:$236 sps:$4 sm:$0xff]   ;;  %v12483_v34 = vld [vmem:[#allocation10 + $0x42c] ss:$236 sps:$4 sm:$0xff]  }
 0x70c   :  { %v12478_v35 = vld [vmem:[#allocation10 + $0x420] ss:$236 sps:$4 sm:$0xff]  }
 0x70e   :  { %8730 = vmatpush1.bf16.msra.mxu1 %v12388_v36  ;;  %8771 = vmatpush1.bf16.msra.mxu0 %v12391_v37  ;;  %v12481_v36 = vld [vmem:[#allocation10 + $0x428] ss:$236 sps:$4 sm:$0xff]  }
 0x70f   :  { %8731 = vmatprep.subr.bf16.mxu1 %v12396_v38  ;;  %8772 = vmatprep.subr.bf16.mxu0 %v12399_v39  ;;  %v12486_v37 = vld [vmem:[#allocation10 + $0x5fc] ss:$236 sps:$4 sm:$0xff]   ;;  %v12489_v38 = vld [vmem:[#allocation10 + $0x604] ss:$236 sps:$4 sm:$0xff]  }
 0x710   :  { %v12484_v39 = vld [vmem:[#allocation10 + $0x5f8] ss:$236 sps:$4 sm:$0xff]  }
 0x712   :  { %8732 = vmatpush1.bf16.msra.mxu1 %v12394_v40  ;;  %8773 = vmatpush1.bf16.msra.mxu0 %v12397_v41  ;;  %v12487_v40 = vld [vmem:[#allocation10 + $0x600] ss:$236 sps:$4 sm:$0xff]  }
 0x713   :  { %8733 = vmatprep.subr.bf16.mxu1 %v12402_v42  ;;  %8774 = vmatprep.subr.bf16.mxu0 %v12405_v43  ;;  %v12492_v41 = vld [vmem:[#allocation10 + $0x7d4] ss:$236 sps:$4 sm:$0xff]   ;;  %v12495_v42 = vld [vmem:[#allocation10 + $0x7dc] ss:$236 sps:$4 sm:$0xff]  }
 0x714   :  { %v12490_v43 = vld [vmem:[#allocation10 + $0x7d0] ss:$236 sps:$4 sm:$0xff]  }
 0x716   :  { %8734 = vmatpush1.bf16.msra.mxu1 %v12400_v44  ;;  %8775 = vmatpush1.bf16.msra.mxu0 %v12403_v45  ;;  %v12493_v44 = vld [vmem:[#allocation10 + $0x7d8] ss:$236 sps:$4 sm:$0xff]  }
 0x717   :  { %8735 = vmatprep.subr.bf16.mxu1 %v12408_v46  ;;  %8776 = vmatprep.subr.bf16.mxu0 %v12411_v47  ;;  %v12498_v45 = vld [vmem:[#allocation10 + $0x9ac] ss:$236 sps:$4 sm:$0xff]   ;;  %v12501_v46 = vld [vmem:[#allocation10 + $0x9b4] ss:$236 sps:$4 sm:$0xff]  }
 0x718   :  { %v12496_v47 = vld [vmem:[#allocation10 + $0x9a8] ss:$236 sps:$4 sm:$0xff]  }
 0x71a   :  { %8736 = vmatpush1.bf16.msra.mxu1 %v12406_v48  ;;  %8777 = vmatpush1.bf16.msra.mxu0 %v12409_v49  ;;  %v12499_v48 = vld [vmem:[#allocation10 + $0x9b0] ss:$236 sps:$4 sm:$0xff]  }
 0x71b   :  { %8737 = vmatprep.subr.bf16.mxu1 %v12414_v50  ;;  %8778 = vmatprep.subr.bf16.mxu0 %v12417_v51  ;;  %v12504_v49 = vld [vmem:[#allocation10 + $0xb84] ss:$236 sps:$4 sm:$0xff]   ;;  %v12507_v50 = vld [vmem:[#allocation10 + $0xb8c] ss:$236 sps:$4 sm:$0xff]  }
 0x71e   :  { %8738 = vmatpush1.bf16.msra.mxu1 %v12412_v52  ;;  %8779 = vmatpush1.bf16.msra.mxu0 %v12415_v53  ;;  %v12502_v53 = vld [vmem:[#allocation10 + $0xb80] ss:$236 sps:$4 sm:$0xff]  }
 0x71f   :  { %8805 = vmatprep.subr.bf16.mxu1 %v12420_v54  ;;  %8846 = vmatprep.subr.bf16.mxu0 %v12423_v55  ;;  %v12505_v54 = vld [vmem:[#allocation10 + $0xb88] ss:$236 sps:$4 sm:$0xff]  }
 0x721   :  { %8756 = vmatmul.mubr.bf16.vlgmr.msra.gmra.mrb[92].mxu1 %v13434_v19  ;;  %8797 = vmatmul.mubr.bf16.vlgmr.msra.gmra.mrb[84].mxu0 %v13434_v19 }
 0x722   :  { %8806 = vmatpush1.bf16.msra.mxu1 %v12418_v56  ;;  %8847 = vmatpush1.bf16.msra.mxu0 %v12421_v57 }
 0x723   :  { %8807 = vmatprep.subr.bf16.mxu1 %v12426_v58  ;;  %8848 = vmatprep.subr.bf16.mxu0 %v12429_v59  ;;  %v12510_v59 = vld [vmem:[#allocation10 + $0xd5c] ss:$236 sps:$4 sm:$0xff]  }
 0x724   :  { %8837 = vmatprep.mubr.bf16.mxu1 %v13245_v10  ;;  %8878 = vmatprep.mubr.bf16.mxu0 %v13245_v10 }
 0x726   :  { %8808 = vmatpush1.bf16.msra.mxu1 %v12424_v60  ;;  %8849 = vmatpush1.bf16.msra.mxu0 %v12427_v61 }
 0x727   :  { %8809 = vmatprep.subr.bf16.mxu1 %v12432_v62  ;;  %8850 = vmatprep.subr.bf16.mxu0 %v12435_v63 }
 0x72a   :  { %8810 = vmatpush1.bf16.msra.mxu1 %v12430_v0  ;;  %8851 = vmatpush1.bf16.msra.mxu0 %v12433_v1  ;;  %v12513_v0 = vld [vmem:[#allocation10 + $0xd64] ss:$236 sps:$4 sm:$0xff]  }
 0x72b   :  { %8811 = vmatprep.subr.bf16.mxu1 %v12438_v2  ;;  %8852 = vmatprep.subr.bf16.mxu0 %v12441_v3 }
 0x72e   :  { %8812 = vmatpush1.bf16.msra.mxu1 %v12436_v4  ;;  %8853 = vmatpush1.bf16.msra.mxu0 %v12439_v6 }
 0x72f   :  { %8813 = vmatprep.subr.bf16.mxu1 %v12444_v7  ;;  %8854 = vmatprep.subr.bf16.mxu0 %v12447_v8  ;;  %v12508_v8 = vld [vmem:[#allocation10 + $0xd58] ss:$236 sps:$4 sm:$0xff]  }
 0x732   :  { %8814 = vmatpush1.bf16.msra.mxu1 %v12442_v9  ;;  %8855 = vmatpush1.bf16.msra.mxu0 %v12445_v11  ;;  %v12511_v9 = vld [vmem:[#allocation10 + $0xd60] ss:$236 sps:$4 sm:$0xff]   ;;  %v12516_v11 = vld [vmem:[#allocation10 + $0x84] ss:$236 sps:$4 sm:$0xff]  }
 0x733   :  { %8815 = vmatprep.subr.bf16.mxu1 %v12450_v12  ;;  %8856 = vmatprep.subr.bf16.mxu0 %v12453_v13  ;;  %v12519_v12 = vld [vmem:[#allocation10 + $0x8c] ss:$236 sps:$4 sm:$0xff]  }
 0x734   :  { %v12514_v13 = vld [vmem:[#allocation10 + $0x80] ss:$236 sps:$4 sm:$0xff]  }
 0x736   :  { %8816 = vmatpush1.bf16.msra.mxu1 %v12448_v14  ;;  %8857 = vmatpush1.bf16.msra.mxu0 %v12451_v15  ;;  %v12517_v14 = vld [vmem:[#allocation10 + $0x88] ss:$236 sps:$4 sm:$0xff]  }
 0x737   :  { %8817 = vmatprep.subr.bf16.mxu1 %v12456_v16  ;;  %8858 = vmatprep.subr.bf16.mxu0 %v12459_v17  ;;  %v12522_v15 = vld [vmem:[#allocation10 + $0x25c] ss:$236 sps:$4 sm:$0xff]   ;;  %v12525_v16 = vld [vmem:[#allocation10 + $0x264] ss:$236 sps:$4 sm:$0xff]  }
 0x738   :  { %v12520_v17 = vld [vmem:[#allocation10 + $0x258] ss:$236 sps:$4 sm:$0xff]  }
 0x73a   :  { %8818 = vmatpush1.bf16.msra.mxu1 %v12454_v18  ;;  %8859 = vmatpush1.bf16.msra.mxu0 %v12457_v20  ;;  %v12523_v18 = vld [vmem:[#allocation10 + $0x260] ss:$236 sps:$4 sm:$0xff]  }
 0x73b   :  { %8819 = vmatprep.subr.bf16.mxu1 %v12462_v21  ;;  %8860 = vmatprep.subr.bf16.mxu0 %v12465_v22  ;;  %v12528_v21 = vld [vmem:[#allocation10 + $0x434] ss:$236 sps:$4 sm:$0xff]   ;;  %v12531_v22 = vld [vmem:[#allocation10 + $0x43c] ss:$236 sps:$4 sm:$0xff]  }
 0x73e   :  { %8820 = vmatpush1.bf16.msra.mxu1 %v12460_v23  ;;  %8861 = vmatpush1.bf16.msra.mxu0 %v12463_v24 }
 0x73f   :  { %8887 = vmatprep.subr.bf16.mxu1 %v12468_v25  ;;  %8928 = vmatprep.subr.bf16.mxu0 %v12471_v26 }
 0x741   :  { %8838 = vmatmul.mubr.bf16.vlgmr.msra.gmra.mrb[96].mxu1 %v13434_v19  ;;  %8879 = vmatmul.mubr.bf16.vlgmr.msra.gmra.mrb[88].mxu0 %v13434_v19 }
 0x742   :  { %8888 = vmatpush1.bf16.msra.mxu1 %v12466_v27  ;;  %8929 = vmatpush1.bf16.msra.mxu0 %v12469_v28 }
 0x743   :  { %8889 = vmatprep.subr.bf16.mxu1 %v12474_v29  ;;  %8930 = vmatprep.subr.bf16.mxu0 %v12477_v30  ;;  %v12526_v29 = vld [vmem:[#allocation10 + $0x430] ss:$236 sps:$4 sm:$0xff]   ;;  %v12529_v30 = vld [vmem:[#allocation10 + $0x438] ss:$236 sps:$4 sm:$0xff]  }
 0x744   :  { %8919 = vmatprep.mubr.bf16.mxu1 %v13245_v10  ;;  %8960 = vmatprep.mubr.bf16.mxu0 %v13245_v10 }
 0x746   :  { %8890 = vmatpush1.bf16.msra.mxu1 %v12472_v31  ;;  %8931 = vmatpush1.bf16.msra.mxu0 %v12475_v32  ;;  %v12534_v32 = vld [vmem:[#allocation10 + $0x60c] ss:$236 sps:$4 sm:$0xff]  }
 0x747   :  { %8891 = vmatprep.subr.bf16.mxu1 %v12480_v33  ;;  %8932 = vmatprep.subr.bf16.mxu0 %v12483_v34  ;;  %v12537_v33 = vld [vmem:[#allocation10 + $0x614] ss:$236 sps:$4 sm:$0xff]  }
 0x748   :  { %v12532_v34 = vld [vmem:[#allocation10 + $0x608] ss:$236 sps:$4 sm:$0xff]  }
 0x74a   :  { %8892 = vmatpush1.bf16.msra.mxu1 %v12478_v35  ;;  %8933 = vmatpush1.bf16.msra.mxu0 %v12481_v36  ;;  %v12535_v35 = vld [vmem:[#allocation10 + $0x610] ss:$236 sps:$4 sm:$0xff]  }
 0x74b   :  { %8893 = vmatprep.subr.bf16.mxu1 %v12486_v37  ;;  %8934 = vmatprep.subr.bf16.mxu0 %v12489_v38  ;;  %v12540_v36 = vld [vmem:[#allocation10 + $0x7e4] ss:$236 sps:$4 sm:$0xff]   ;;  %v12543_v37 = vld [vmem:[#allocation10 + $0x7ec] ss:$236 sps:$4 sm:$0xff]  }
 0x74c   :  { %v12538_v38 = vld [vmem:[#allocation10 + $0x7e0] ss:$236 sps:$4 sm:$0xff]  }
 0x74e   :  { %8894 = vmatpush1.bf16.msra.mxu1 %v12484_v39  ;;  %8935 = vmatpush1.bf16.msra.mxu0 %v12487_v40  ;;  %v12541_v39 = vld [vmem:[#allocation10 + $0x7e8] ss:$236 sps:$4 sm:$0xff]  }
 0x74f   :  { %8895 = vmatprep.subr.bf16.mxu1 %v12492_v41  ;;  %8936 = vmatprep.subr.bf16.mxu0 %v12495_v42  ;;  %v12546_v40 = vld [vmem:[#allocation10 + $0x9bc] ss:$236 sps:$4 sm:$0xff]   ;;  %v12549_v41 = vld [vmem:[#allocation10 + $0x9c4] ss:$236 sps:$4 sm:$0xff]  }
 0x752   :  { %8896 = vmatpush1.bf16.msra.mxu1 %v12490_v43  ;;  %8937 = vmatpush1.bf16.msra.mxu0 %v12493_v44 }
 0x753   :  { %8897 = vmatprep.subr.bf16.mxu1 %v12498_v45  ;;  %8938 = vmatprep.subr.bf16.mxu0 %v12501_v46  ;;  %v12544_v45 = vld [vmem:[#allocation10 + $0x9b8] ss:$236 sps:$4 sm:$0xff]   ;;  %v12547_v46 = vld [vmem:[#allocation10 + $0x9c0] ss:$236 sps:$4 sm:$0xff]  }
 0x754   :  { %v8347_v51 = vpop.f32.mrb[72].mxu1  ;;  %v8388_v52 = vpop.f32.mrb[64].mxu0 }
 0x755   :  { %v9542_v55 = vsub.f32 0.0, %v8347_v51  ;;  %v9544_v56 = vsub.f32 0.0, %v8388_v52  ;;  %v8349_v57 = vpop.f32.mrb[73].mxu1  ;;  %v8390_v58 = vpop.f32.mrb[65].mxu0  ;;  %v12550_v52 = vld [vmem:[#allocation10 + $0xb90] ss:$236 sps:$4 sm:$0xff]  }
 0x756   :  { %v9543_v60 = vsub.f32 0.0, %v8349_v57  ;;  %v9545_v61 = vsub.f32 0.0, %v8390_v58  ;;  %8898 = vmatpush1.bf16.msra.mxu1 %v12496_v47  ;;  %8939 = vmatpush1.bf16.msra.mxu0 %v12499_v48  ;;  %v8351_v62 = vpop.f32.mrb[74].mxu1  ;;  %v8392_v63 = vpop.f32.mrb[66].mxu0  ;;  %v12552_v48 = vld [vmem:[#allocation10 + $0xb94] ss:$236 sps:$4 sm:$0xff]  }
 0x757   :  { %v9601_v1 = vmul.f32 1.442695, %v9542_v55  ;;  %v9605_v2 = vmul.f32 1.442695, %v9544_v56  ;;  %v8352_v3 = vpop.f32.mrb[75].mxu1  ;;  %v8393_v4 = vpop.f32.mrb[67].mxu0  ;;  %8899 = vmatprep.subr.bf16.mxu1 %v12504_v49  ;;  %8940 = vmatprep.subr.bf16.mxu0 %v12507_v50 }
 0x758   :  { %v9603_v6 = vmul.f32 1.442695, %v9543_v60  ;;  %v9607_v7 = vmul.f32 1.442695, %v9545_v61  ;;  %v12555_v49 = vld [vmem:[#allocation10 + $0xb9c] ss:$236 sps:$4 sm:$0xff]  }
 0x759   :  { %12834 = vpow2.f32 %v9601_v1  ;;  %v12558_v58 = vld [vmem:[#allocation10 + $0xd6c] ss:$236 sps:$4 sm:$0xff]   ;;  %v12561_v63 = vld [vmem:[#allocation10 + $0xd74] ss:$236 sps:$4 sm:$0xff]  }
 0x75a   :  { %12836 = vpow2.f32 %v9605_v2  ;;  %8900 = vmatpush1.bf16.msra.mxu1 %v12502_v53  ;;  %8941 = vmatpush1.bf16.msra.mxu0 %v12505_v54  ;;  %v12553_v53 = vld [vmem:[#allocation10 + $0xb98] ss:$236 sps:$4 sm:$0xff]  }
 0x75b   :  { %12838 = vpow2.f32 %v9603_v6  ;;  %8901 = vmatprep.subr.bf16.mxu1 %v12510_v59  ;;  %8942 = vmatprep.subr.bf16.mxu0 %v12513_v0 }
 0x75c   :  { %12840 = vpow2.f32 %v9607_v7  ;;  %v12556_v7 = vld [vmem:[#allocation10 + $0xd68] ss:$236 sps:$4 sm:$0xff]  }
 0x75e   :  { %8902 = vmatpush1.bf16.msra.mxu1 %v12508_v8  ;;  %8943 = vmatpush1.bf16.msra.mxu0 %v12511_v9  ;;  %v12559_v8 = vld [vmem:[#allocation10 + $0xd70] ss:$236 sps:$4 sm:$0xff]   ;;  %v12564_v9 = vld [vmem:[#allocation10 + $0x94] ss:$236 sps:$4 sm:$0xff]  }
 0x75f   :  { %8969 = vmatprep.subr.bf16.mxu1 %v12516_v11  ;;  %9010 = vmatprep.subr.bf16.mxu0 %v12519_v12  ;;  %v12567_v11 = vld [vmem:[#allocation10 + $0x9c] ss:$236 sps:$4 sm:$0xff]  }
 0x760   :  { %v12562_v12 = vld [vmem:[#allocation10 + $0x90] ss:$236 sps:$4 sm:$0xff]  }
 0x761   :  { %8920 = vmatmul.mubr.bf16.vlgmr.msra.gmra.mrb[100].mxu1 %v13434_v19  ;;  %8961 = vmatmul.mubr.bf16.vlgmr.msra.gmra.mrb[92].mxu0 %v13434_v19 }
 0x762   :  { %8970 = vmatpush1.bf16.msra.mxu1 %v12514_v13  ;;  %9011 = vmatpush1.bf16.msra.mxu0 %v12517_v14  ;;  %v12565_v13 = vld [vmem:[#allocation10 + $0x98] ss:$236 sps:$4 sm:$0xff]  }
 0x763   :  { %v12835_v20 = vpop.eup %12834  ;;  %8971 = vmatprep.subr.bf16.mxu1 %v12522_v15  ;;  %9012 = vmatprep.subr.bf16.mxu0 %v12525_v16  ;;  %v12570_v14 = vld [vmem:[#allocation10 + $0x26c] ss:$236 sps:$4 sm:$0xff]   ;;  %v12573_v15 = vld [vmem:[#allocation10 + $0x274] ss:$236 sps:$4 sm:$0xff]  }
 0x764   :  { %v12837_v23 = vpop.eup %12836  ;;  %v9719_v24 = vadd.f32 1.0, %v12835_v20  ;;  %9001 = vmatprep.mubr.bf16.mxu1 %v13245_v10  ;;  %9042 = vmatprep.mubr.bf16.mxu0 %v13245_v10  ;;  %v12568_v16 = vld [vmem:[#allocation10 + $0x268] ss:$236 sps:$4 sm:$0xff]   ;;  %v12576_v20 = vld [vmem:[#allocation10 + $0x444] ss:$236 sps:$4 sm:$0xff]  }
 0x765   :  { %v12839_v25 = vpop.eup %12838  ;;  %v9721_v26 = vadd.f32 1.0, %v12837_v23 }
 0x766   :  { %v12841_v27 = vpop.eup %12840  ;;  %12842 = vrcp.f32 %v9719_v24  ;;  %v9720_v28 = vadd.f32 1.0, %v12839_v25  ;;  %8972 = vmatpush1.bf16.msra.mxu1 %v12520_v17  ;;  %9013 = vmatpush1.bf16.msra.mxu0 %v12523_v18  ;;  %v12571_v17 = vld [vmem:[#allocation10 + $0x270] ss:$236 sps:$4 sm:$0xff]  }
 0x767   :  { %12844 = vrcp.f32 %v9721_v26  ;;  %v9722_v31 = vadd.f32 1.0, %v12841_v27  ;;  %8973 = vmatprep.subr.bf16.mxu1 %v12528_v21  ;;  %9014 = vmatprep.subr.bf16.mxu0 %v12531_v22  ;;  %v12579_v21 = vld [vmem:[#allocation10 + $0x44c] ss:$236 sps:$4 sm:$0xff]  }
 0x768   :  { %12846 = vrcp.f32 %v9720_v28  ;;  %v12574_v28 = vld [vmem:[#allocation10 + $0x440] ss:$236 sps:$4 sm:$0xff]  }
 0x769   :  { %12848 = vrcp.f32 %v9722_v31  ;;  %v12582_v31 = vld [vmem:[#allocation10 + $0x61c] ss:$236 sps:$4 sm:$0xff]  }
 0x76a   :  { %8974 = vmatpush1.bf16.msra.mxu1 %v12526_v29  ;;  %9015 = vmatpush1.bf16.msra.mxu0 %v12529_v30  ;;  %v12577_v29 = vld [vmem:[#allocation10 + $0x448] ss:$236 sps:$4 sm:$0xff]  }
 0x76b   :  { %8975 = vmatprep.subr.bf16.mxu1 %v12534_v32  ;;  %9016 = vmatprep.subr.bf16.mxu0 %v12537_v33  ;;  %v12585_v32 = vld [vmem:[#allocation10 + $0x624] ss:$236 sps:$4 sm:$0xff]  }
 0x76c   :  { %v12580_v33 = vld [vmem:[#allocation10 + $0x618] ss:$236 sps:$4 sm:$0xff]  }
 0x76e   :  { %8976 = vmatpush1.bf16.msra.mxu1 %v12532_v34  ;;  %9017 = vmatpush1.bf16.msra.mxu0 %v12535_v35  ;;  %v12583_v34 = vld [vmem:[#allocation10 + $0x620] ss:$236 sps:$4 sm:$0xff]  }
 0x76f   :  { %8977 = vmatprep.subr.bf16.mxu1 %v12540_v36  ;;  %9018 = vmatprep.subr.bf16.mxu0 %v12543_v37  ;;  %v12588_v35 = vld [vmem:[#allocation10 + $0x7f4] ss:$236 sps:$4 sm:$0xff]   ;;  %v12591_v36 = vld [vmem:[#allocation10 + $0x7fc] ss:$236 sps:$4 sm:$0xff]  }
 0x770   :  { %v12843_v42 = vpop.eup %12842  ;;  %v12586_v37 = vld [vmem:[#allocation10 + $0x7f0] ss:$236 sps:$4 sm:$0xff]  }
 0x771   :  { %v12845_v43 = vpop.eup %12844  ;;  %9837 = vst [vmem:[#allocation11] sm:$0xff] %v12843_v42 }
 0x772   :  { %v12847_v44 = vpop.eup %12846  ;;  %9839 = vst [vmem:[#allocation11 + $0x10] sm:$0xff] %v12845_v43  ;;  %8978 = vmatpush1.bf16.msra.mxu1 %v12538_v38  ;;  %9019 = vmatpush1.bf16.msra.mxu0 %v12541_v39  ;;  %v12589_v38 = vld [vmem:[#allocation10 + $0x7f8] ss:$236 sps:$4 sm:$0xff]  }
 0x773   :  { %v12849_v47 = vpop.eup %12848  ;;  %9838 = vst [vmem:[#allocation11 + $0x8] sm:$0xff] %v12847_v44  ;;  %8979 = vmatprep.subr.bf16.mxu1 %v12546_v40  ;;  %9020 = vmatprep.subr.bf16.mxu0 %v12549_v41  ;;  %v12594_v39 = vld [vmem:[#allocation10 + $0x9cc] ss:$236 sps:$4 sm:$0xff]   ;;  %v12597_v40 = vld [vmem:[#allocation10 + $0x9d4] ss:$236 sps:$4 sm:$0xff]  }
 0x774   :  { %9840 = vst [vmem:[#allocation11 + $0x18] sm:$0xff] %v12849_v47  ;;  %v8429_v50 = vpop.f32.mrb[76].mxu1  ;;  %v8470_v51 = vpop.f32.mrb[68].mxu0  ;;  %v12592_v44 = vld [vmem:[#allocation10 + $0x9c8] ss:$236 sps:$4 sm:$0xff]  }
 0x775   :  { %v9546_v54 = vsub.f32 0.0, %v8429_v50  ;;  %v9548_v55 = vsub.f32 0.0, %v8470_v51  ;;  %v8431_v56 = vpop.f32.mrb[77].mxu1  ;;  %v8472_v57 = vpop.f32.mrb[69].mxu0  ;;  %v12600_v47 = vld [vmem:[#allocation10 + $0xba4] ss:$236 sps:$4 sm:$0xff]  }
 0x776   :  { %v9547_v59 = vsub.f32 0.0, %v8431_v56  ;;  %v9549_v60 = vsub.f32 0.0, %v8472_v57  ;;  %v8433_v61 = vpop.f32.mrb[78].mxu1  ;;  %v8474_v62 = vpop.f32.mrb[70].mxu0  ;;  %8980 = vmatpush1.bf16.msra.mxu1 %v12544_v45  ;;  %9021 = vmatpush1.bf16.msra.mxu0 %v12547_v46  ;;  %v12595_v45 = vld [vmem:[#allocation10 + $0x9d0] ss:$236 sps:$4 sm:$0xff]  }
 0x777   :  { %v9609_v0 = vmul.f32 1.442695, %v9546_v54  ;;  %v9613_v1 = vmul.f32 1.442695, %v9548_v55  ;;  %v8434_v2 = vpop.f32.mrb[79].mxu1  ;;  %v8475_v3 = vpop.f32.mrb[71].mxu0  ;;  %8981 = vmatprep.subr.bf16.mxu1 %v12552_v48  ;;  %9022 = vmatprep.subr.bf16.mxu0 %v12555_v49 }
 0x778   :  { %v9611_v4 = vmul.f32 1.442695, %v9547_v59  ;;  %v9615_v6 = vmul.f32 1.442695, %v9549_v60  ;;  %v12603_v48 = vld [vmem:[#allocation10 + $0xbac] ss:$236 sps:$4 sm:$0xff]  }
 0x779   :  { %12850 = vpow2.f32 %v9609_v0  ;;  %v12598_v51 = vld [vmem:[#allocation10 + $0xba0] ss:$236 sps:$4 sm:$0xff]   ;;  %v12606_v57 = vld [vmem:[#allocation10 + $0xd7c] ss:$236 sps:$4 sm:$0xff]   ;;  %v12609_v62 = vld [vmem:[#allocation10 + $0xd84] ss:$236 sps:$4 sm:$0xff]  }
 0x77a   :  { %12852 = vpow2.f32 %v9613_v1  ;;  %8982 = vmatpush1.bf16.msra.mxu1 %v12550_v52  ;;  %9023 = vmatpush1.bf16.msra.mxu0 %v12553_v53  ;;  %v12601_v52 = vld [vmem:[#allocation10 + $0xba8] ss:$236 sps:$4 sm:$0xff]  }
 0x77b   :  { %12854 = vpow2.f32 %v9611_v4  ;;  %8983 = vmatprep.subr.bf16.mxu1 %v12558_v58  ;;  %9024 = vmatprep.subr.bf16.mxu0 %v12561_v63 }
 0x77c   :  { %12856 = vpow2.f32 %v9615_v6  ;;  %v12604_v6 = vld [vmem:[#allocation10 + $0xd78] ss:$236 sps:$4 sm:$0xff]  }
 0x77e   :  { %8984 = vmatpush1.bf16.msra.mxu1 %v12556_v7  ;;  %9025 = vmatpush1.bf16.msra.mxu0 %v12559_v8  ;;  %v12607_v7 = vld [vmem:[#allocation10 + $0xd80] ss:$236 sps:$4 sm:$0xff]   ;;  %v12612_v8 = vld [vmem:[#allocation10 + $0xa4] ss:$236 sps:$4 sm:$0xff]  }
 0x77f   :  { %9051 = vmatprep.subr.bf16.mxu1 %v12564_v9  ;;  %9092 = vmatprep.subr.bf16.mxu0 %v12567_v11  ;;  %v12615_v9 = vld [vmem:[#allocation10 + $0xac] ss:$236 sps:$4 sm:$0xff]  }
 0x780   :  { %v12610_v11 = vld [vmem:[#allocation10 + $0xa0] ss:$236 sps:$4 sm:$0xff]  }
 0x781   :  { %9002 = vmatmul.mubr.bf16.vlgmr.msra.gmra.mrb[104].mxu1 %v13434_v19  ;;  %9043 = vmatmul.mubr.bf16.vlgmr.msra.gmra.mrb[96].mxu0 %v13434_v19 }
 0x782   :  { %9052 = vmatpush1.bf16.msra.mxu1 %v12562_v12  ;;  %9093 = vmatpush1.bf16.msra.mxu0 %v12565_v13  ;;  %v12613_v12 = vld [vmem:[#allocation10 + $0xa8] ss:$236 sps:$4 sm:$0xff]  }
 0x783   :  { %v12851_v18 = vpop.eup %12850  ;;  %9053 = vmatprep.subr.bf16.mxu1 %v12570_v14  ;;  %9094 = vmatprep.subr.bf16.mxu0 %v12573_v15  ;;  %v12618_v13 = vld [vmem:[#allocation10 + $0x27c] ss:$236 sps:$4 sm:$0xff]   ;;  %v12621_v14 = vld [vmem:[#allocation10 + $0x284] ss:$236 sps:$4 sm:$0xff]  }
 0x784   :  { %v12853_v22 = vpop.eup %12852  ;;  %v9723_v23 = vadd.f32 1.0, %v12851_v18  ;;  %9083 = vmatprep.mubr.bf16.mxu1 %v13245_v10  ;;  %9124 = vmatprep.mubr.bf16.mxu0 %v13245_v10  ;;  %v12616_v15 = vld [vmem:[#allocation10 + $0x278] ss:$236 sps:$4 sm:$0xff]   ;;  %v12624_v18 = vld [vmem:[#allocation10 + $0x454] ss:$236 sps:$4 sm:$0xff]  }
 0x785   :  { %v12855_v24 = vpop.eup %12854  ;;  %v9725_v25 = vadd.f32 1.0, %v12853_v22 }
 0x786   :  { %v12857_v26 = vpop.eup %12856  ;;  %12858 = vrcp.f32 %v9723_v23  ;;  %v9724_v27 = vadd.f32 1.0, %v12855_v24  ;;  %9054 = vmatpush1.bf16.msra.mxu1 %v12568_v16  ;;  %9095 = vmatpush1.bf16.msra.mxu0 %v12571_v17  ;;  %v12619_v16 = vld [vmem:[#allocation10 + $0x280] ss:$236 sps:$4 sm:$0xff]  }
 0x787   :  { %12860 = vrcp.f32 %v9725_v25  ;;  %v9726_v30 = vadd.f32 1.0, %v12857_v26  ;;  %9055 = vmatprep.subr.bf16.mxu1 %v12576_v20  ;;  %9096 = vmatprep.subr.bf16.mxu0 %v12579_v21  ;;  %v12627_v20 = vld [vmem:[#allocation10 + $0x45c] ss:$236 sps:$4 sm:$0xff]  }
 0x788   :  { %12862 = vrcp.f32 %v9724_v27  ;;  %v12622_v27 = vld [vmem:[#allocation10 + $0x450] ss:$236 sps:$4 sm:$0xff]  }
 0x789   :  { %12864 = vrcp.f32 %v9726_v30  ;;  %v12630_v30 = vld [vmem:[#allocation10 + $0x62c] ss:$236 sps:$4 sm:$0xff]  }
 0x78a   :  { %9056 = vmatpush1.bf16.msra.mxu1 %v12574_v28  ;;  %9097 = vmatpush1.bf16.msra.mxu0 %v12577_v29  ;;  %v12625_v28 = vld [vmem:[#allocation10 + $0x458] ss:$236 sps:$4 sm:$0xff]  }
 0x78b   :  { %9057 = vmatprep.subr.bf16.mxu1 %v12582_v31  ;;  %9098 = vmatprep.subr.bf16.mxu0 %v12585_v32  ;;  %v12633_v31 = vld [vmem:[#allocation10 + $0x634] ss:$236 sps:$4 sm:$0xff]  }
 0x78c   :  { %v12628_v32 = vld [vmem:[#allocation10 + $0x628] ss:$236 sps:$4 sm:$0xff]  }
 0x78e   :  { %9058 = vmatpush1.bf16.msra.mxu1 %v12580_v33  ;;  %9099 = vmatpush1.bf16.msra.mxu0 %v12583_v34  ;;  %v12631_v33 = vld [vmem:[#allocation10 + $0x630] ss:$236 sps:$4 sm:$0xff]  }
 0x78f   :  { %9059 = vmatprep.subr.bf16.mxu1 %v12588_v35  ;;  %9100 = vmatprep.subr.bf16.mxu0 %v12591_v36  ;;  %v12636_v34 = vld [vmem:[#allocation10 + $0x804] ss:$236 sps:$4 sm:$0xff]   ;;  %v12639_v35 = vld [vmem:[#allocation10 + $0x80c] ss:$236 sps:$4 sm:$0xff]  }
 0x790   :  { %v12859_v41 = vpop.eup %12858  ;;  %v12634_v36 = vld [vmem:[#allocation10 + $0x800] ss:$236 sps:$4 sm:$0xff]  }
 0x791   :  { %v12861_v42 = vpop.eup %12860  ;;  %9841 = vst [vmem:[#allocation11 + $0x20] sm:$0xff] %v12859_v41 }
 0x792   :  { %v12863_v43 = vpop.eup %12862  ;;  %9843 = vst [vmem:[#allocation11 + $0x30] sm:$0xff] %v12861_v42  ;;  %9060 = vmatpush1.bf16.msra.mxu1 %v12586_v37  ;;  %9101 = vmatpush1.bf16.msra.mxu0 %v12589_v38  ;;  %v12637_v37 = vld [vmem:[#allocation10 + $0x808] ss:$236 sps:$4 sm:$0xff]  }
 0x793   :  { %v12865_v46 = vpop.eup %12864  ;;  %9842 = vst [vmem:[#allocation11 + $0x28] sm:$0xff] %v12863_v43  ;;  %9061 = vmatprep.subr.bf16.mxu1 %v12594_v39  ;;  %9102 = vmatprep.subr.bf16.mxu0 %v12597_v40  ;;  %v12642_v38 = vld [vmem:[#allocation10 + $0x9dc] ss:$236 sps:$4 sm:$0xff]   ;;  %v12645_v39 = vld [vmem:[#allocation10 + $0x9e4] ss:$236 sps:$4 sm:$0xff]  }
 0x794   :  { %9844 = vst [vmem:[#allocation11 + $0x38] sm:$0xff] %v12865_v46  ;;  %v8511_v49 = vpop.f32.mrb[80].mxu1  ;;  %v8552_v50 = vpop.f32.mrb[72].mxu0  ;;  %v12640_v43 = vld [vmem:[#allocation10 + $0x9d8] ss:$236 sps:$4 sm:$0xff]  }
 0x795   :  { %v9550_v53 = vsub.f32 0.0, %v8511_v49  ;;  %v9552_v54 = vsub.f32 0.0, %v8552_v50  ;;  %v8513_v55 = vpop.f32.mrb[81].mxu1  ;;  %v8554_v56 = vpop.f32.mrb[73].mxu0  ;;  %v12648_v46 = vld [vmem:[#allocation10 + $0xbb4] ss:$236 sps:$4 sm:$0xff]  }
 0x796   :  { %v9551_v58 = vsub.f32 0.0, %v8513_v55  ;;  %v9553_v59 = vsub.f32 0.0, %v8554_v56  ;;  %v8515_v60 = vpop.f32.mrb[82].mxu1  ;;  %v8556_v61 = vpop.f32.mrb[74].mxu0  ;;  %9062 = vmatpush1.bf16.msra.mxu1 %v12592_v44  ;;  %9103 = vmatpush1.bf16.msra.mxu0 %v12595_v45  ;;  %v12643_v44 = vld [vmem:[#allocation10 + $0x9e0] ss:$236 sps:$4 sm:$0xff]  }
 0x797   :  { %v9617_v63 = vmul.f32 1.442695, %v9550_v53  ;;  %v9621_v0 = vmul.f32 1.442695, %v9552_v54  ;;  %v8516_v1 = vpop.f32.mrb[83].mxu1  ;;  %v8557_v2 = vpop.f32.mrb[75].mxu0  ;;  %9063 = vmatprep.subr.bf16.mxu1 %v12600_v47  ;;  %9104 = vmatprep.subr.bf16.mxu0 %v12603_v48 }
 0x798   :  { %v9619_v3 = vmul.f32 1.442695, %v9551_v58  ;;  %v9623_v4 = vmul.f32 1.442695, %v9553_v59  ;;  %v12651_v47 = vld [vmem:[#allocation10 + $0xbbc] ss:$236 sps:$4 sm:$0xff]  }
 0x799   :  { %12866 = vpow2.f32 %v9617_v63  ;;  %v12646_v50 = vld [vmem:[#allocation10 + $0xbb0] ss:$236 sps:$4 sm:$0xff]   ;;  %v12654_v56 = vld [vmem:[#allocation10 + $0xd8c] ss:$236 sps:$4 sm:$0xff]   ;;  %v12657_v61 = vld [vmem:[#allocation10 + $0xd94] ss:$236 sps:$4 sm:$0xff]  }
 0x79a   :  { %12868 = vpow2.f32 %v9621_v0  ;;  %9064 = vmatpush1.bf16.msra.mxu1 %v12598_v51  ;;  %9105 = vmatpush1.bf16.msra.mxu0 %v12601_v52  ;;  %v12649_v51 = vld [vmem:[#allocation10 + $0xbb8] ss:$236 sps:$4 sm:$0xff]  }
 0x79b   :  { %12870 = vpow2.f32 %v9619_v3  ;;  %9065 = vmatprep.subr.bf16.mxu1 %v12606_v57  ;;  %9106 = vmatprep.subr.bf16.mxu0 %v12609_v62 }
 0x79c   :  { %12872 = vpow2.f32 %v9623_v4  ;;  %v12652_v4 = vld [vmem:[#allocation10 + $0xd88] ss:$236 sps:$4 sm:$0xff]  }
 0x79e   :  { %9066 = vmatpush1.bf16.msra.mxu1 %v12604_v6  ;;  %9107 = vmatpush1.bf16.msra.mxu0 %v12607_v7  ;;  %v12655_v6 = vld [vmem:[#allocation10 + $0xd90] ss:$236 sps:$4 sm:$0xff]   ;;  %v12660_v7 = vld [vmem:[#allocation10 + $0xb4] ss:$236 sps:$4 sm:$0xff]  }
 0x79f   :  { %9133 = vmatprep.subr.bf16.mxu1 %v12612_v8  ;;  %9174 = vmatprep.subr.bf16.mxu0 %v12615_v9  ;;  %v12663_v8 = vld [vmem:[#allocation10 + $0xbc] ss:$236 sps:$4 sm:$0xff]  }
 0x7a0   :  { %v12658_v9 = vld [vmem:[#allocation10 + $0xb0] ss:$236 sps:$4 sm:$0xff]  }
 0x7a1   :  { %9084 = vmatmul.mubr.bf16.vlgmr.msra.gmra.mrb[108].mxu1 %v13434_v19  ;;  %9125 = vmatmul.mubr.bf16.vlgmr.msra.gmra.mrb[100].mxu0 %v13434_v19 }
 0x7a2   :  { %9134 = vmatpush1.bf16.msra.mxu1 %v12610_v11  ;;  %9175 = vmatpush1.bf16.msra.mxu0 %v12613_v12  ;;  %v12661_v11 = vld [vmem:[#allocation10 + $0xb8] ss:$236 sps:$4 sm:$0xff]  }
 0x7a3   :  { %v12867_v17 = vpop.eup %12866  ;;  %9135 = vmatprep.subr.bf16.mxu1 %v12618_v13  ;;  %9176 = vmatprep.subr.bf16.mxu0 %v12621_v14  ;;  %v12666_v12 = vld [vmem:[#allocation10 + $0x28c] ss:$236 sps:$4 sm:$0xff]   ;;  %v12669_v13 = vld [vmem:[#allocation10 + $0x294] ss:$236 sps:$4 sm:$0xff]  }
 0x7a4   :  { %v12869_v21 = vpop.eup %12868  ;;  %v9727_v22 = vadd.f32 1.0, %v12867_v17  ;;  %9165 = vmatprep.mubr.bf16.mxu1 %v13245_v10  ;;  %9206 = vmatprep.mubr.bf16.mxu0 %v13245_v10  ;;  %v12664_v14 = vld [vmem:[#allocation10 + $0x288] ss:$236 sps:$4 sm:$0xff]   ;;  %v12672_v17 = vld [vmem:[#allocation10 + $0x464] ss:$236 sps:$4 sm:$0xff]  }
 0x7a5   :  { %v12871_v23 = vpop.eup %12870  ;;  %v9729_v24 = vadd.f32 1.0, %v12869_v21 }
 0x7a6   :  { %v12873_v25 = vpop.eup %12872  ;;  %12874 = vrcp.f32 %v9727_v22  ;;  %v9728_v26 = vadd.f32 1.0, %v12871_v23  ;;  %9136 = vmatpush1.bf16.msra.mxu1 %v12616_v15  ;;  %9177 = vmatpush1.bf16.msra.mxu0 %v12619_v16  ;;  %v12667_v15 = vld [vmem:[#allocation10 + $0x290] ss:$236 sps:$4 sm:$0xff]  }
 0x7a7   :  { %12876 = vrcp.f32 %v9729_v24  ;;  %v9730_v29 = vadd.f32 1.0, %v12873_v25  ;;  %9137 = vmatprep.subr.bf16.mxu1 %v12624_v18  ;;  %9178 = vmatprep.subr.bf16.mxu0 %v12627_v20  ;;  %v12675_v18 = vld [vmem:[#allocation10 + $0x46c] ss:$236 sps:$4 sm:$0xff]  }
 0x7a8   :  { %12878 = vrcp.f32 %v9728_v26  ;;  %v12670_v26 = vld [vmem:[#allocation10 + $0x460] ss:$236 sps:$4 sm:$0xff]  }
 0x7a9   :  { %12880 = vrcp.f32 %v9730_v29  ;;  %v12678_v29 = vld [vmem:[#allocation10 + $0x63c] ss:$236 sps:$4 sm:$0xff]  }
 0x7aa   :  { %9138 = vmatpush1.bf16.msra.mxu1 %v12622_v27  ;;  %9179 = vmatpush1.bf16.msra.mxu0 %v12625_v28  ;;  %v12673_v27 = vld [vmem:[#allocation10 + $0x468] ss:$236 sps:$4 sm:$0xff]  }
 0x7ab   :  { %9139 = vmatprep.subr.bf16.mxu1 %v12630_v30  ;;  %9180 = vmatprep.subr.bf16.mxu0 %v12633_v31  ;;  %v12681_v30 = vld [vmem:[#allocation10 + $0x644] ss:$236 sps:$4 sm:$0xff]  }
 0x7ac   :  { %v12676_v31 = vld [vmem:[#allocation10 + $0x638] ss:$236 sps:$4 sm:$0xff]  }
 0x7ae   :  { %9140 = vmatpush1.bf16.msra.mxu1 %v12628_v32  ;;  %9181 = vmatpush1.bf16.msra.mxu0 %v12631_v33  ;;  %v12679_v32 = vld [vmem:[#allocation10 + $0x640] ss:$236 sps:$4 sm:$0xff]  }
 0x7af   :  { %9141 = vmatprep.subr.bf16.mxu1 %v12636_v34  ;;  %9182 = vmatprep.subr.bf16.mxu0 %v12639_v35  ;;  %v12684_v33 = vld [vmem:[#allocation10 + $0x814] ss:$236 sps:$4 sm:$0xff]   ;;  %v12687_v34 = vld [vmem:[#allocation10 + $0x81c] ss:$236 sps:$4 sm:$0xff]  }
 0x7b0   :  { %v12875_v40 = vpop.eup %12874  ;;  %v12682_v35 = vld [vmem:[#allocation10 + $0x810] ss:$236 sps:$4 sm:$0xff]  }
 0x7b1   :  { %v12877_v41 = vpop.eup %12876  ;;  %9845 = vst [vmem:[#allocation11 + $0x40] sm:$0xff] %v12875_v40 }
 0x7b2   :  { %v12879_v42 = vpop.eup %12878  ;;  %9847 = vst [vmem:[#allocation11 + $0x50] sm:$0xff] %v12877_v41  ;;  %9142 = vmatpush1.bf16.msra.mxu1 %v12634_v36  ;;  %9183 = vmatpush1.bf16.msra.mxu0 %v12637_v37  ;;  %v12685_v36 = vld [vmem:[#allocation10 + $0x818] ss:$236 sps:$4 sm:$0xff]  }
 0x7b3   :  { %v12881_v45 = vpop.eup %12880  ;;  %9846 = vst [vmem:[#allocation11 + $0x48] sm:$0xff] %v12879_v42  ;;  %9143 = vmatprep.subr.bf16.mxu1 %v12642_v38  ;;  %9184 = vmatprep.subr.bf16.mxu0 %v12645_v39  ;;  %v12690_v37 = vld [vmem:[#allocation10 + $0x9ec] ss:$236 sps:$4 sm:$0xff]   ;;  %v12693_v38 = vld [vmem:[#allocation10 + $0x9f4] ss:$236 sps:$4 sm:$0xff]  }
 0x7b4   :  { %9848 = vst [vmem:[#allocation11 + $0x58] sm:$0xff] %v12881_v45  ;;  %v8593_v48 = vpop.f32.mrb[84].mxu1  ;;  %v8634_v49 = vpop.f32.mrb[76].mxu0  ;;  %v12688_v42 = vld [vmem:[#allocation10 + $0x9e8] ss:$236 sps:$4 sm:$0xff]  }
 0x7b5   :  { %v9554_v52 = vsub.f32 0.0, %v8593_v48  ;;  %v9556_v53 = vsub.f32 0.0, %v8634_v49  ;;  %v8595_v54 = vpop.f32.mrb[85].mxu1  ;;  %v8636_v55 = vpop.f32.mrb[77].mxu0  ;;  %v12696_v45 = vld [vmem:[#allocation10 + $0xbc4] ss:$236 sps:$4 sm:$0xff]  }
 0x7b6   :  { %v9555_v57 = vsub.f32 0.0, %v8595_v54  ;;  %v9557_v58 = vsub.f32 0.0, %v8636_v55  ;;  %v8597_v59 = vpop.f32.mrb[86].mxu1  ;;  %v8638_v60 = vpop.f32.mrb[78].mxu0  ;;  %9144 = vmatpush1.bf16.msra.mxu1 %v12640_v43  ;;  %9185 = vmatpush1.bf16.msra.mxu0 %v12643_v44  ;;  %v12691_v43 = vld [vmem:[#allocation10 + $0x9f0] ss:$236 sps:$4 sm:$0xff]  }
 0x7b7   :  { %v9625_v62 = vmul.f32 1.442695, %v9554_v52  ;;  %v9629_v63 = vmul.f32 1.442695, %v9556_v53  ;;  %v8598_v0 = vpop.f32.mrb[87].mxu1  ;;  %v8639_v1 = vpop.f32.mrb[79].mxu0  ;;  %9145 = vmatprep.subr.bf16.mxu1 %v12648_v46  ;;  %9186 = vmatprep.subr.bf16.mxu0 %v12651_v47 }
 0x7b8   :  { %v9627_v2 = vmul.f32 1.442695, %v9555_v57  ;;  %v9631_v3 = vmul.f32 1.442695, %v9557_v58  ;;  %v12699_v46 = vld [vmem:[#allocation10 + $0xbcc] ss:$236 sps:$4 sm:$0xff]  }
 0x7b9   :  { %12882 = vpow2.f32 %v9625_v62  ;;  %v12694_v49 = vld [vmem:[#allocation10 + $0xbc0] ss:$236 sps:$4 sm:$0xff]   ;;  %v12702_v55 = vld [vmem:[#allocation10 + $0xd9c] ss:$236 sps:$4 sm:$0xff]   ;;  %v12705_v60 = vld [vmem:[#allocation10 + $0xda4] ss:$236 sps:$4 sm:$0xff]  }
 0x7ba   :  { %12884 = vpow2.f32 %v9629_v63  ;;  %9146 = vmatpush1.bf16.msra.mxu1 %v12646_v50  ;;  %9187 = vmatpush1.bf16.msra.mxu0 %v12649_v51  ;;  %v12697_v50 = vld [vmem:[#allocation10 + $0xbc8] ss:$236 sps:$4 sm:$0xff]  }
 0x7bb   :  { %12886 = vpow2.f32 %v9627_v2  ;;  %9147 = vmatprep.subr.bf16.mxu1 %v12654_v56  ;;  %9188 = vmatprep.subr.bf16.mxu0 %v12657_v61 }
 0x7bc   :  { %12888 = vpow2.f32 %v9631_v3  ;;  %v12700_v3 = vld [vmem:[#allocation10 + $0xd98] ss:$236 sps:$4 sm:$0xff]  }
 0x7be   :  { %9148 = vmatpush1.bf16.msra.mxu1 %v12652_v4  ;;  %9189 = vmatpush1.bf16.msra.mxu0 %v12655_v6  ;;  %v12703_v4 = vld [vmem:[#allocation10 + $0xda0] ss:$236 sps:$4 sm:$0xff]   ;;  %v12708_v6 = vld [vmem:[#allocation10 + $0xc4] ss:$236 sps:$4 sm:$0xff]  }
 0x7bf   :  { %9215 = vmatprep.subr.bf16.mxu1 %v12660_v7  ;;  %9256 = vmatprep.subr.bf16.mxu0 %v12663_v8  ;;  %v12711_v7 = vld [vmem:[#allocation10 + $0xcc] ss:$236 sps:$4 sm:$0xff]  }
 0x7c0   :  { %v12706_v8 = vld [vmem:[#allocation10 + $0xc0] ss:$236 sps:$4 sm:$0xff]  }
 0x7c1   :  { %9166 = vmatmul.mubr.bf16.vlgmr.msra.gmra.mrb[112].mxu1 %v13434_v19  ;;  %9207 = vmatmul.mubr.bf16.vlgmr.msra.gmra.mrb[104].mxu0 %v13434_v19 }
 0x7c2   :  { %9216 = vmatpush1.bf16.msra.mxu1 %v12658_v9  ;;  %9257 = vmatpush1.bf16.msra.mxu0 %v12661_v11  ;;  %v12709_v9 = vld [vmem:[#allocation10 + $0xc8] ss:$236 sps:$4 sm:$0xff]  }
 0x7c3   :  { %v12883_v16 = vpop.eup %12882  ;;  %9217 = vmatprep.subr.bf16.mxu1 %v12666_v12  ;;  %9258 = vmatprep.subr.bf16.mxu0 %v12669_v13  ;;  %v12714_v11 = vld [vmem:[#allocation10 + $0x29c] ss:$236 sps:$4 sm:$0xff]   ;;  %v12717_v12 = vld [vmem:[#allocation10 + $0x2a4] ss:$236 sps:$4 sm:$0xff]  }
 0x7c4   :  { %v12885_v20 = vpop.eup %12884  ;;  %v9731_v21 = vadd.f32 1.0, %v12883_v16  ;;  %9247 = vmatprep.mubr.bf16.mxu1 %v13245_v10  ;;  %9288 = vmatprep.mubr.bf16.mxu0 %v13245_v10  ;;  %v12712_v13 = vld [vmem:[#allocation10 + $0x298] ss:$236 sps:$4 sm:$0xff]   ;;  %v12720_v16 = vld [vmem:[#allocation10 + $0x474] ss:$236 sps:$4 sm:$0xff]  }
 0x7c5   :  { %v12887_v22 = vpop.eup %12886  ;;  %v9733_v23 = vadd.f32 1.0, %v12885_v20 }
 0x7c6   :  { %v12889_v24 = vpop.eup %12888  ;;  %12890 = vrcp.f32 %v9731_v21  ;;  %v9732_v25 = vadd.f32 1.0, %v12887_v22  ;;  %9218 = vmatpush1.bf16.msra.mxu1 %v12664_v14  ;;  %9259 = vmatpush1.bf16.msra.mxu0 %v12667_v15  ;;  %v12715_v14 = vld [vmem:[#allocation10 + $0x2a0] ss:$236 sps:$4 sm:$0xff]  }
 0x7c7   :  { %12892 = vrcp.f32 %v9733_v23  ;;  %v9734_v28 = vadd.f32 1.0, %v12889_v24  ;;  %9219 = vmatprep.subr.bf16.mxu1 %v12672_v17  ;;  %9260 = vmatprep.subr.bf16.mxu0 %v12675_v18  ;;  %v12723_v17 = vld [vmem:[#allocation10 + $0x47c] ss:$236 sps:$4 sm:$0xff]  }
 0x7c8   :  { %12894 = vrcp.f32 %v9732_v25  ;;  %v12718_v25 = vld [vmem:[#allocation10 + $0x470] ss:$236 sps:$4 sm:$0xff]  }
 0x7c9   :  { %12896 = vrcp.f32 %v9734_v28  ;;  %v12726_v28 = vld [vmem:[#allocation10 + $0x64c] ss:$236 sps:$4 sm:$0xff]  }
 0x7ca   :  { %9220 = vmatpush1.bf16.msra.mxu1 %v12670_v26  ;;  %9261 = vmatpush1.bf16.msra.mxu0 %v12673_v27  ;;  %v12721_v26 = vld [vmem:[#allocation10 + $0x478] ss:$236 sps:$4 sm:$0xff]  }
 0x7cb   :  { %9221 = vmatprep.subr.bf16.mxu1 %v12678_v29  ;;  %9262 = vmatprep.subr.bf16.mxu0 %v12681_v30  ;;  %v12729_v29 = vld [vmem:[#allocation10 + $0x654] ss:$236 sps:$4 sm:$0xff]  }
 0x7cc   :  { %v12724_v30 = vld [vmem:[#allocation10 + $0x648] ss:$236 sps:$4 sm:$0xff]  }
 0x7ce   :  { %9222 = vmatpush1.bf16.msra.mxu1 %v12676_v31  ;;  %9263 = vmatpush1.bf16.msra.mxu0 %v12679_v32  ;;  %v12727_v31 = vld [vmem:[#allocation10 + $0x650] ss:$236 sps:$4 sm:$0xff]  }
 0x7cf   :  { %9223 = vmatprep.subr.bf16.mxu1 %v12684_v33  ;;  %9264 = vmatprep.subr.bf16.mxu0 %v12687_v34  ;;  %v12732_v32 = vld [vmem:[#allocation10 + $0x824] ss:$236 sps:$4 sm:$0xff]   ;;  %v12735_v33 = vld [vmem:[#allocation10 + $0x82c] ss:$236 sps:$4 sm:$0xff]  }
 0x7d0   :  { %v12891_v39 = vpop.eup %12890  ;;  %v12730_v34 = vld [vmem:[#allocation10 + $0x820] ss:$236 sps:$4 sm:$0xff]  }
 0x7d1   :  { %v12893_v40 = vpop.eup %12892  ;;  %9849 = vst [vmem:[#allocation11 + $0x60] sm:$0xff] %v12891_v39 }
 0x7d2   :  { %v12895_v41 = vpop.eup %12894  ;;  %9851 = vst [vmem:[#allocation11 + $0x70] sm:$0xff] %v12893_v40  ;;  %9224 = vmatpush1.bf16.msra.mxu1 %v12682_v35  ;;  %9265 = vmatpush1.bf16.msra.mxu0 %v12685_v36  ;;  %v12733_v35 = vld [vmem:[#allocation10 + $0x828] ss:$236 sps:$4 sm:$0xff]  }
 0x7d3   :  { %v12897_v44 = vpop.eup %12896  ;;  %9850 = vst [vmem:[#allocation11 + $0x68] sm:$0xff] %v12895_v41  ;;  %9225 = vmatprep.subr.bf16.mxu1 %v12690_v37  ;;  %9266 = vmatprep.subr.bf16.mxu0 %v12693_v38  ;;  %v12738_v36 = vld [vmem:[#allocation10 + $0x9fc] ss:$236 sps:$4 sm:$0xff]   ;;  %v12741_v37 = vld [vmem:[#allocation10 + $0xa04] ss:$236 sps:$4 sm:$0xff]  }
 0x7d4   :  { %9852 = vst [vmem:[#allocation11 + $0x78] sm:$0xff] %v12897_v44  ;;  %v8675_v47 = vpop.f32.mrb[88].mxu1  ;;  %v8716_v48 = vpop.f32.mrb[80].mxu0  ;;  %v12736_v41 = vld [vmem:[#allocation10 + $0x9f8] ss:$236 sps:$4 sm:$0xff]  }
 0x7d5   :  { %v9558_v51 = vsub.f32 0.0, %v8675_v47  ;;  %v9560_v52 = vsub.f32 0.0, %v8716_v48  ;;  %v8677_v53 = vpop.f32.mrb[89].mxu1  ;;  %v8718_v54 = vpop.f32.mrb[81].mxu0  ;;  %v12744_v44 = vld [vmem:[#allocation10 + $0xbd4] ss:$236 sps:$4 sm:$0xff]  }
 0x7d6   :  { %v9559_v56 = vsub.f32 0.0, %v8677_v53  ;;  %v9561_v57 = vsub.f32 0.0, %v8718_v54  ;;  %v8679_v58 = vpop.f32.mrb[90].mxu1  ;;  %v8720_v59 = vpop.f32.mrb[82].mxu0  ;;  %9226 = vmatpush1.bf16.msra.mxu1 %v12688_v42  ;;  %9267 = vmatpush1.bf16.msra.mxu0 %v12691_v43  ;;  %v12739_v42 = vld [vmem:[#allocation10 + $0xa00] ss:$236 sps:$4 sm:$0xff]  }
 0x7d7   :  { %v9633_v61 = vmul.f32 1.442695, %v9558_v51  ;;  %v9637_v62 = vmul.f32 1.442695, %v9560_v52  ;;  %v8680_v63 = vpop.f32.mrb[91].mxu1  ;;  %v8721_v0 = vpop.f32.mrb[83].mxu0  ;;  %9227 = vmatprep.subr.bf16.mxu1 %v12696_v45  ;;  %9268 = vmatprep.subr.bf16.mxu0 %v12699_v46 }
 0x7d8   :  { %v9635_v1 = vmul.f32 1.442695, %v9559_v56  ;;  %v9639_v2 = vmul.f32 1.442695, %v9561_v57  ;;  %v12747_v45 = vld [vmem:[#allocation10 + $0xbdc] ss:$236 sps:$4 sm:$0xff]  }
 0x7d9   :  { %12898 = vpow2.f32 %v9633_v61  ;;  %v12742_v48 = vld [vmem:[#allocation10 + $0xbd0] ss:$236 sps:$4 sm:$0xff]   ;;  %v12750_v54 = vld [vmem:[#allocation10 + $0xdac] ss:$236 sps:$4 sm:$0xff]   ;;  %v12753_v59 = vld [vmem:[#allocation10 + $0xdb4] ss:$236 sps:$4 sm:$0xff]  }
 0x7da   :  { %12900 = vpow2.f32 %v9637_v62  ;;  %9228 = vmatpush1.bf16.msra.mxu1 %v12694_v49  ;;  %9269 = vmatpush1.bf16.msra.mxu0 %v12697_v50  ;;  %v12745_v49 = vld [vmem:[#allocation10 + $0xbd8] ss:$236 sps:$4 sm:$0xff]  }
 0x7db   :  { %12902 = vpow2.f32 %v9635_v1  ;;  %9229 = vmatprep.subr.bf16.mxu1 %v12702_v55  ;;  %9270 = vmatprep.subr.bf16.mxu0 %v12705_v60 }
 0x7dc   :  { %12904 = vpow2.f32 %v9639_v2  ;;  %v12748_v2 = vld [vmem:[#allocation10 + $0xda8] ss:$236 sps:$4 sm:$0xff]  }
 0x7de   :  { %9230 = vmatpush1.bf16.msra.mxu1 %v12700_v3  ;;  %9271 = vmatpush1.bf16.msra.mxu0 %v12703_v4  ;;  %v12751_v3 = vld [vmem:[#allocation10 + $0xdb0] ss:$236 sps:$4 sm:$0xff]   ;;  %v12756_v4 = vld [vmem:[#allocation10 + $0xd4] ss:$236 sps:$4 sm:$0xff]  }
 0x7df   :  { %9297 = vmatprep.subr.bf16.mxu1 %v12708_v6  ;;  %9338 = vmatprep.subr.bf16.mxu0 %v12711_v7  ;;  %v12759_v6 = vld [vmem:[#allocation10 + $0xdc] ss:$236 sps:$4 sm:$0xff]  }
 0x7e0   :  { %v12754_v7 = vld [vmem:[#allocation10 + $0xd0] ss:$236 sps:$4 sm:$0xff]  }
 0x7e1   :  { %9248 = vmatmul.mubr.bf16.vlgmr.msra.gmra.mrb[116].mxu1 %v13434_v19  ;;  %9289 = vmatmul.mubr.bf16.vlgmr.msra.gmra.mrb[108].mxu0 %v13434_v19 }
 0x7e2   :  { %9298 = vmatpush1.bf16.msra.mxu1 %v12706_v8  ;;  %9339 = vmatpush1.bf16.msra.mxu0 %v12709_v9  ;;  %v12757_v8 = vld [vmem:[#allocation10 + $0xd8] ss:$236 sps:$4 sm:$0xff]  }
 0x7e3   :  { %v12899_v15 = vpop.eup %12898  ;;  %9299 = vmatprep.subr.bf16.mxu1 %v12714_v11  ;;  %9340 = vmatprep.subr.bf16.mxu0 %v12717_v12  ;;  %v12762_v9 = vld [vmem:[#allocation10 + $0x2ac] ss:$236 sps:$4 sm:$0xff]   ;;  %v12765_v11 = vld [vmem:[#allocation10 + $0x2b4] ss:$236 sps:$4 sm:$0xff]  }
 0x7e4   :  { %v12901_v18 = vpop.eup %12900  ;;  %v9735_v20 = vadd.f32 1.0, %v12899_v15  ;;  %9329 = vmatprep.mubr.bf16.mxu1 %v13245_v10  ;;  %9370 = vmatprep.mubr.bf16.mxu0 %v13245_v10  ;;  %v12760_v12 = vld [vmem:[#allocation10 + $0x2a8] ss:$236 sps:$4 sm:$0xff]   ;;  %v12768_v15 = vld [vmem:[#allocation10 + $0x484] ss:$236 sps:$4 sm:$0xff]  }
 0x7e5   :  { %v12903_v21 = vpop.eup %12902  ;;  %v9737_v22 = vadd.f32 1.0, %v12901_v18 }
 0x7e6   :  { %v12905_v23 = vpop.eup %12904  ;;  %12906 = vrcp.f32 %v9735_v20  ;;  %v9736_v24 = vadd.f32 1.0, %v12903_v21  ;;  %9300 = vmatpush1.bf16.msra.mxu1 %v12712_v13  ;;  %9341 = vmatpush1.bf16.msra.mxu0 %v12715_v14  ;;  %v12763_v13 = vld [vmem:[#allocation10 + $0x2b0] ss:$236 sps:$4 sm:$0xff]  }
 0x7e7   :  { %12908 = vrcp.f32 %v9737_v22  ;;  %v9738_v27 = vadd.f32 1.0, %v12905_v23  ;;  %9301 = vmatprep.subr.bf16.mxu1 %v12720_v16  ;;  %9342 = vmatprep.subr.bf16.mxu0 %v12723_v17  ;;  %v12771_v16 = vld [vmem:[#allocation10 + $0x48c] ss:$236 sps:$4 sm:$0xff]  }
 0x7e8   :  { %12910 = vrcp.f32 %v9736_v24  ;;  %v12766_v24 = vld [vmem:[#allocation10 + $0x480] ss:$236 sps:$4 sm:$0xff]  }
 0x7e9   :  { %12912 = vrcp.f32 %v9738_v27  ;;  %v12774_v27 = vld [vmem:[#allocation10 + $0x65c] ss:$236 sps:$4 sm:$0xff]  }
 0x7ea   :  { %9302 = vmatpush1.bf16.msra.mxu1 %v12718_v25  ;;  %9343 = vmatpush1.bf16.msra.mxu0 %v12721_v26  ;;  %v12769_v25 = vld [vmem:[#allocation10 + $0x488] ss:$236 sps:$4 sm:$0xff]  }
 0x7eb   :  { %9303 = vmatprep.subr.bf16.mxu1 %v12726_v28  ;;  %9344 = vmatprep.subr.bf16.mxu0 %v12729_v29  ;;  %v12777_v28 = vld [vmem:[#allocation10 + $0x664] ss:$236 sps:$4 sm:$0xff]  }
 0x7ec   :  { %v12772_v29 = vld [vmem:[#allocation10 + $0x658] ss:$236 sps:$4 sm:$0xff]  }
 0x7ee   :  { %9304 = vmatpush1.bf16.msra.mxu1 %v12724_v30  ;;  %9345 = vmatpush1.bf16.msra.mxu0 %v12727_v31  ;;  %v12775_v30 = vld [vmem:[#allocation10 + $0x660] ss:$236 sps:$4 sm:$0xff]  }
 0x7ef   :  { %9305 = vmatprep.subr.bf16.mxu1 %v12732_v32  ;;  %9346 = vmatprep.subr.bf16.mxu0 %v12735_v33  ;;  %v12780_v31 = vld [vmem:[#allocation10 + $0x834] ss:$236 sps:$4 sm:$0xff]   ;;  %v12783_v32 = vld [vmem:[#allocation10 + $0x83c] ss:$236 sps:$4 sm:$0xff]  }
 0x7f0   :  { %v12907_v38 = vpop.eup %12906  ;;  %v12778_v33 = vld [vmem:[#allocation10 + $0x830] ss:$236 sps:$4 sm:$0xff]  }
 0x7f1   :  { %v12909_v39 = vpop.eup %12908  ;;  %9853 = vst [vmem:[#allocation11 + $0x80] sm:$0xff] %v12907_v38 }
 0x7f2   :  { %v12911_v40 = vpop.eup %12910  ;;  %9855 = vst [vmem:[#allocation11 + $0x90] sm:$0xff] %v12909_v39  ;;  %9306 = vmatpush1.bf16.msra.mxu1 %v12730_v34  ;;  %9347 = vmatpush1.bf16.msra.mxu0 %v12733_v35  ;;  %v12781_v34 = vld [vmem:[#allocation10 + $0x838] ss:$236 sps:$4 sm:$0xff]  }
 0x7f3   :  { %v12913_v43 = vpop.eup %12912  ;;  %9854 = vst [vmem:[#allocation11 + $0x88] sm:$0xff] %v12911_v40  ;;  %9307 = vmatprep.subr.bf16.mxu1 %v12738_v36  ;;  %9348 = vmatprep.subr.bf16.mxu0 %v12741_v37  ;;  %v12786_v35 = vld [vmem:[#allocation10 + $0xa0c] ss:$236 sps:$4 sm:$0xff]   ;;  %v12789_v36 = vld [vmem:[#allocation10 + $0xa14] ss:$236 sps:$4 sm:$0xff]  }
 0x7f4   :  { %9856 = vst [vmem:[#allocation11 + $0x98] sm:$0xff] %v12913_v43  ;;  %v8757_v46 = vpop.f32.mrb[92].mxu1  ;;  %v8798_v47 = vpop.f32.mrb[84].mxu0  ;;  %v12784_v40 = vld [vmem:[#allocation10 + $0xa08] ss:$236 sps:$4 sm:$0xff]  }
 0x7f5   :  { %v9562_v50 = vsub.f32 0.0, %v8757_v46  ;;  %v9564_v51 = vsub.f32 0.0, %v8798_v47  ;;  %v8759_v52 = vpop.f32.mrb[93].mxu1  ;;  %v8800_v53 = vpop.f32.mrb[85].mxu0  ;;  %v12792_v43 = vld [vmem:[#allocation10 + $0xbe4] ss:$236 sps:$4 sm:$0xff]  }
 0x7f6   :  { %v9563_v55 = vsub.f32 0.0, %v8759_v52  ;;  %v9565_v56 = vsub.f32 0.0, %v8800_v53  ;;  %v8761_v57 = vpop.f32.mrb[94].mxu1  ;;  %v8802_v58 = vpop.f32.mrb[86].mxu0  ;;  %9308 = vmatpush1.bf16.msra.mxu1 %v12736_v41  ;;  %9349 = vmatpush1.bf16.msra.mxu0 %v12739_v42  ;;  %v12787_v41 = vld [vmem:[#allocation10 + $0xa10] ss:$236 sps:$4 sm:$0xff]  }
 0x7f7   :  { %v9641_v60 = vmul.f32 1.442695, %v9562_v50  ;;  %v9645_v61 = vmul.f32 1.442695, %v9564_v51  ;;  %v8762_v62 = vpop.f32.mrb[95].mxu1  ;;  %v8803_v63 = vpop.f32.mrb[87].mxu0  ;;  %9309 = vmatprep.subr.bf16.mxu1 %v12744_v44  ;;  %9350 = vmatprep.subr.bf16.mxu0 %v12747_v45 }
 0x7f8   :  { %v9643_v0 = vmul.f32 1.442695, %v9563_v55  ;;  %v9647_v1 = vmul.f32 1.442695, %v9565_v56  ;;  %v12795_v44 = vld [vmem:[#allocation10 + $0xbec] ss:$236 sps:$4 sm:$0xff]  }
 0x7f9   :  { %12914 = vpow2.f32 %v9641_v60  ;;  %v12790_v47 = vld [vmem:[#allocation10 + $0xbe0] ss:$236 sps:$4 sm:$0xff]   ;;  %v12798_v53 = vld [vmem:[#allocation10 + $0xdbc] ss:$236 sps:$4 sm:$0xff]   ;;  %v12801_v58 = vld [vmem:[#allocation10 + $0xdc4] ss:$236 sps:$4 sm:$0xff]  }
 0x7fa   :  { %12916 = vpow2.f32 %v9645_v61  ;;  %9310 = vmatpush1.bf16.msra.mxu1 %v12742_v48  ;;  %9351 = vmatpush1.bf16.msra.mxu0 %v12745_v49  ;;  %v12793_v48 = vld [vmem:[#allocation10 + $0xbe8] ss:$236 sps:$4 sm:$0xff]  }
 0x7fb   :  { %12918 = vpow2.f32 %v9643_v0  ;;  %9311 = vmatprep.subr.bf16.mxu1 %v12750_v54  ;;  %9352 = vmatprep.subr.bf16.mxu0 %v12753_v59 }
 0x7fc   :  { %12920 = vpow2.f32 %v9647_v1  ;;  %v12796_v1 = vld [vmem:[#allocation10 + $0xdb8] ss:$236 sps:$4 sm:$0xff]  }
 0x7fe   :  { %9312 = vmatpush1.bf16.msra.mxu1 %v12748_v2  ;;  %9353 = vmatpush1.bf16.msra.mxu0 %v12751_v3  ;;  %v12799_v2 = vld [vmem:[#allocation10 + $0xdc0] ss:$236 sps:$4 sm:$0xff]   ;;  %v12804_v3 = vld [vmem:[#allocation10 + $0xe4] ss:$236 sps:$4 sm:$0xff]  }
 0x7ff   :  { %9379 = vmatprep.subr.bf16.mxu1 %v12756_v4  ;;  %9420 = vmatprep.subr.bf16.mxu0 %v12759_v6  ;;  %v12802_v4 = vld [vmem:[#allocation10 + $0xe0] ss:$236 sps:$4 sm:$0xff]   ;;  %v12805_v6 = vld [vmem:[#allocation10 + $0xe8] ss:$236 sps:$4 sm:$0xff]  }
 0x801   :  { %9330 = vmatmul.mubr.bf16.vlgmr.msra.gmra.mrb[120].mxu1 %v13434_v19  ;;  %9371 = vmatmul.mubr.bf16.vlgmr.msra.gmra.mrb[112].mxu0 %v13434_v19 }
 0x802   :  { %9380 = vmatpush1.bf16.msra.mxu1 %v12754_v7  ;;  %9421 = vmatpush1.bf16.msra.mxu0 %v12757_v8  ;;  %v12808_v7 = vld [vmem:[#allocation10 + $0x2bc] ss:$236 sps:$4 sm:$0xff]   ;;  %v12806_v8 = vld [vmem:[#allocation10 + $0x2b8] ss:$236 sps:$4 sm:$0xff]  }
 0x803   :  { %v12915_v14 = vpop.eup %12914  ;;  %9381 = vmatprep.subr.bf16.mxu1 %v12762_v9  ;;  %9422 = vmatprep.subr.bf16.mxu0 %v12765_v11  ;;  %v12809_v9 = vld [vmem:[#allocation10 + $0x2c0] ss:$236 sps:$4 sm:$0xff]  }
 0x804   :  { %v12917_v17 = vpop.eup %12916  ;;  %v9739_v18 = vadd.f32 1.0, %v12915_v14  ;;  %9411 = vmatprep.mubr.bf16.mxu1 %v13245_v10  ;;  %9452 = vmatprep.mubr.bf16.mxu0 %v13245_v10 }
 0x805   :  { %v12919_v20 = vpop.eup %12918  ;;  %v9741_v21 = vadd.f32 1.0, %v12917_v17 }
 0x806   :  { %v12921_v22 = vpop.eup %12920  ;;  %12922 = vrcp.f32 %v9739_v18  ;;  %v9740_v23 = vadd.f32 1.0, %v12919_v20  ;;  %9382 = vmatpush1.bf16.msra.mxu1 %v12760_v12  ;;  %9423 = vmatpush1.bf16.msra.mxu0 %v12763_v13  ;;  %v12812_v12 = vld [vmem:[#allocation10 + $0x494] ss:$236 sps:$4 sm:$0xff]   ;;  %v12810_v20 = vld [vmem:[#allocation10 + $0x490] ss:$236 sps:$4 sm:$0xff]  }
 0x807   :  { %12924 = vrcp.f32 %v9741_v21  ;;  %v9742_v26 = vadd.f32 1.0, %v12921_v22  ;;  %9383 = vmatprep.subr.bf16.mxu1 %v12768_v15  ;;  %9424 = vmatprep.subr.bf16.mxu0 %v12771_v16  ;;  %v12813_v21 = vld [vmem:[#allocation10 + $0x498] ss:$236 sps:$4 sm:$0xff]  }
 0x808   :  { %12926 = vrcp.f32 %v9740_v23  ;;  %v12816_v23 = vld [vmem:[#allocation10 + $0x66c] ss:$236 sps:$4 sm:$0xff]  }
 0x809   :  { %12928 = vrcp.f32 %v9742_v26  ;;  %v12818_v26 = vld [vmem:[#allocation10 + $0x840] ss:$236 sps:$4 sm:$0xff]  }
 0x80a   :  { %9384 = vmatpush1.bf16.msra.mxu1 %v12766_v24  ;;  %9425 = vmatpush1.bf16.msra.mxu0 %v12769_v25  ;;  %v12817_v24 = vld [vmem:[#allocation10 + $0x670] ss:$236 sps:$4 sm:$0xff]  }
 0x80b   :  { %9385 = vmatprep.subr.bf16.mxu1 %v12774_v27  ;;  %9426 = vmatprep.subr.bf16.mxu0 %v12777_v28  ;;  %v12820_v25 = vld [vmem:[#allocation10 + $0x844] ss:$236 sps:$4 sm:$0xff]   ;;  %v12821_v27 = vld [vmem:[#allocation10 + $0x848] ss:$236 sps:$4 sm:$0xff]  }
 0x80c   :  { %v12824_v28 = vld [vmem:[#allocation10 + $0xa1c] ss:$236 sps:$4 sm:$0xff]  }
 0x80e   :  { %9386 = vmatpush1.bf16.msra.mxu1 %v12772_v29  ;;  %9427 = vmatpush1.bf16.msra.mxu0 %v12775_v30 }
 0x80f   :  { %9387 = vmatprep.subr.bf16.mxu1 %v12780_v31  ;;  %9428 = vmatprep.subr.bf16.mxu0 %v12783_v32  ;;  %v12822_v32 = vld [vmem:[#allocation10 + $0xa18] ss:$236 sps:$4 sm:$0xff]  }
 0x810   :  { %v12923_v37 = vpop.eup %12922 }
 0x811   :  { %v12925_v38 = vpop.eup %12924  ;;  %9857 = vst [vmem:[#allocation11 + $0xa0] sm:$0xff] %v12923_v37 }
 0x812   :  { %v12927_v39 = vpop.eup %12926  ;;  %9859 = vst [vmem:[#allocation11 + $0xb0] sm:$0xff] %v12925_v38  ;;  %9388 = vmatpush1.bf16.msra.mxu1 %v12778_v33  ;;  %9429 = vmatpush1.bf16.msra.mxu0 %v12781_v34  ;;  %v12825_v33 = vld [vmem:[#allocation10 + $0xa20] ss:$236 sps:$4 sm:$0xff]   ;;  %v12826_v38 = vld [vmem:[#allocation10 + $0xbf0] ss:$236 sps:$4 sm:$0xff]  }
 0x813   :  { %v12929_v42 = vpop.eup %12928  ;;  %9858 = vst [vmem:[#allocation11 + $0xa8] sm:$0xff] %v12927_v39  ;;  %9389 = vmatprep.subr.bf16.mxu1 %v12786_v35  ;;  %9430 = vmatprep.subr.bf16.mxu0 %v12789_v36  ;;  %v12828_v35 = vld [vmem:[#allocation10 + $0xbf4] ss:$236 sps:$4 sm:$0xff]  }
 0x814   :  { %9860 = vst [vmem:[#allocation11 + $0xb8] sm:$0xff] %v12929_v42  ;;  %v8839_v45 = vpop.f32.mrb[96].mxu1  ;;  %v8880_v46 = vpop.f32.mrb[88].mxu0 }
 0x815   :  { %v9566_v49 = vsub.f32 0.0, %v8839_v45  ;;  %v9568_v50 = vsub.f32 0.0, %v8880_v46  ;;  %v8841_v51 = vpop.f32.mrb[97].mxu1  ;;  %v8882_v52 = vpop.f32.mrb[89].mxu0 }
 0x816   :  { %v9567_v54 = vsub.f32 0.0, %v8841_v51  ;;  %v9569_v55 = vsub.f32 0.0, %v8882_v52  ;;  %v8843_v56 = vpop.f32.mrb[98].mxu1  ;;  %v8884_v57 = vpop.f32.mrb[90].mxu0  ;;  %9390 = vmatpush1.bf16.msra.mxu1 %v12784_v40  ;;  %9431 = vmatpush1.bf16.msra.mxu0 %v12787_v41 }
 0x817   :  { %v9649_v59 = vmul.f32 1.442695, %v9566_v49  ;;  %v9653_v60 = vmul.f32 1.442695, %v9568_v50  ;;  %v8844_v61 = vpop.f32.mrb[99].mxu1  ;;  %v8885_v62 = vpop.f32.mrb[91].mxu0  ;;  %9391 = vmatprep.subr.bf16.mxu1 %v12792_v43  ;;  %9432 = vmatprep.subr.bf16.mxu0 %v12795_v44 }
 0x818   :  { %v9651_v63 = vmul.f32 1.442695, %v9567_v54  ;;  %v9655_v0 = vmul.f32 1.442695, %v9569_v55  ;;  %v12829_v43 = vld [vmem:[#allocation10 + $0xbf8] ss:$236 sps:$4 sm:$0xff]  }
 0x819   :  { %12930 = vpow2.f32 %v9649_v59  ;;  %v12830_v55 = vld [vmem:[#allocation10 + $0xdc8] ss:$236 sps:$4 sm:$0xff]   ;;  %v12833_v56 = vld [vmem:[#allocation10 + $0xdd0] ss:$236 sps:$4 sm:$0xff]  }
 0x81a   :  { %12932 = vpow2.f32 %v9653_v60  ;;  %9392 = vmatpush1.bf16.msra.mxu1 %v12790_v47  ;;  %9433 = vmatpush1.bf16.msra.mxu0 %v12793_v48  ;;  %v12832_v48 = vld [vmem:[#allocation10 + $0xdcc] ss:$236 sps:$4 sm:$0xff]  }
 0x81b   :  { %12934 = vpow2.f32 %v9651_v63  ;;  %9393 = vmatprep.subr.bf16.mxu1 %v12798_v53  ;;  %9434 = vmatprep.subr.bf16.mxu0 %v12801_v58 }
 0x81c   :  { %12936 = vpow2.f32 %v9655_v0 }
 0x81e   :  { %9394 = vmatpush1.bf16.msra.mxu1 %v12796_v1  ;;  %9435 = vmatpush1.bf16.msra.mxu0 %v12799_v2 }
 0x81f   :  { %9461 = vmatprep.subr.bf16.mxu1 %v12804_v3  ;;  %11614 = vmatprep.subr.bf16.mxu0 %v13243_v5 }
 0x821   :  { %9412 = vmatmul.mubr.bf16.vlgmr.msra.gmra.mrb[124].mxu1 %v13434_v19  ;;  %9453 = vmatmul.mubr.bf16.vlgmr.msra.gmra.mrb[116].mxu0 %v13434_v19 }
 0x822   :  { %9462 = vmatpush1.bf16.msra.mxu1 %v12802_v4  ;;  %11615 = vmatpush3.bf16.msra.mxu0 %v12805_v6 }
 0x823   :  { %v12931_v11 = vpop.eup %12930  ;;  %9463 = vmatprep.subr.bf16.mxu1 %v12808_v7  ;;  %11616 = vmatprep.subr.bf16.mxu0 %v13243_v5 }
 0x824   :  { %v12933_v13 = vpop.eup %12932  ;;  %v9743_v14 = vadd.f32 1.0, %v12931_v11  ;;  %9493 = vmatprep.mubr.bf16.mxu1 %v13245_v10  ;;  %11630 = vmatprep.mubr.msk.bf16.mxu0 %vm13244_vm0, %v13243_v5  ;;  %v12814_v10 = vld [vmem:[#allocation10 + $0x668] ss:$236 sps:$4 sm:$0xff]  }
 0x825   :  { %v12935_v15 = vpop.eup %12934  ;;  %v9745_v16 = vadd.f32 1.0, %v12933_v13 }
 0x826   :  { %v12937_v17 = vpop.eup %12936  ;;  %12938 = vrcp.f32 %v9743_v14  ;;  %v9744_v18 = vadd.f32 1.0, %v12935_v15  ;;  %9464 = vmatpush1.bf16.msra.mxu1 %v12806_v8  ;;  %11617 = vmatpush3.bf16.msra.mxu0 %v12809_v9 }
 0x827   :  { %12940 = vrcp.f32 %v9745_v16  ;;  %v9746_v22 = vadd.f32 1.0, %v12937_v17  ;;  %9465 = vmatprep.subr.bf16.mxu1 %v12812_v12  ;;  %11618 = vmatprep.subr.bf16.mxu0 %v13243_v5 }
 0x828   :  { %12942 = vrcp.f32 %v9744_v18 }
 0x829   :  { %12944 = vrcp.f32 %v9746_v22 }
 0x82a   :  { %9466 = vmatpush1.bf16.msra.mxu1 %v12810_v20  ;;  %11619 = vmatpush3.bf16.msra.mxu0 %v12813_v21 }
 0x82b   :  { %9467 = vmatprep.subr.bf16.mxu1 %v12816_v23  ;;  %11620 = vmatprep.subr.bf16.mxu0 %v13243_v5 }
 0x82e   :  { %9468 = vmatpush1.bf16.msra.mxu1 %v12814_v10  ;;  %11621 = vmatpush3.bf16.msra.mxu0 %v12817_v24 }
 0x82f   :  { %9469 = vmatprep.subr.bf16.mxu1 %v12820_v25  ;;  %11622 = vmatprep.subr.bf16.mxu0 %v13243_v5 }
 0x830   :  { %v12939_v29 = vpop.eup %12938 }
 0x831   :  { %v12941_v30 = vpop.eup %12940  ;;  %9861 = vst [vmem:[#allocation11 + $0xc0] sm:$0xff] %v12939_v29 }
 0x832   :  { %v12943_v31 = vpop.eup %12942  ;;  %9863 = vst [vmem:[#allocation11 + $0xd0] sm:$0xff] %v12941_v30  ;;  %9470 = vmatpush1.bf16.msra.mxu1 %v12818_v26  ;;  %11623 = vmatpush3.bf16.msra.mxu0 %v12821_v27 }
 0x833   :  { %v12945_v34 = vpop.eup %12944  ;;  %9862 = vst [vmem:[#allocation11 + $0xc8] sm:$0xff] %v12943_v31  ;;  %9471 = vmatprep.subr.bf16.mxu1 %v12824_v28  ;;  %11624 = vmatprep.subr.bf16.mxu0 %v13243_v5 }
 0x834   :  { %9864 = vst [vmem:[#allocation11 + $0xd8] sm:$0xff] %v12945_v34  ;;  %v8921_v36 = vpop.f32.mrb[100].mxu1  ;;  %v8962_v37 = vpop.f32.mrb[92].mxu0 }
 0x835   :  { %v9570_v39 = vsub.f32 0.0, %v8921_v36  ;;  %v9572_v40 = vsub.f32 0.0, %v8962_v37  ;;  %v8923_v41 = vpop.f32.mrb[101].mxu1  ;;  %v8964_v42 = vpop.f32.mrb[93].mxu0 }
 0x836   :  { %v9571_v44 = vsub.f32 0.0, %v8923_v41  ;;  %v9573_v45 = vsub.f32 0.0, %v8964_v42  ;;  %v8925_v46 = vpop.f32.mrb[102].mxu1  ;;  %v8966_v47 = vpop.f32.mrb[94].mxu0  ;;  %9472 = vmatpush1.bf16.msra.mxu1 %v12822_v32  ;;  %11625 = vmatpush3.bf16.msra.mxu0 %v12825_v33 }
 0x837   :  { %v9657_v49 = vmul.f32 1.442695, %v9570_v39  ;;  %v9661_v50 = vmul.f32 1.442695, %v9572_v40  ;;  %v8926_v51 = vpop.f32.mrb[103].mxu1  ;;  %v8967_v52 = vpop.f32.mrb[95].mxu0  ;;  %9473 = vmatprep.subr.bf16.mxu1 %v12828_v35  ;;  %11626 = vmatprep.subr.bf16.mxu0 %v13243_v5 }
 0x838   :  { %v9659_v53 = vmul.f32 1.442695, %v9571_v44  ;;  %v9663_v54 = vmul.f32 1.442695, %v9573_v45 }
 0x839   :  { %12946 = vpow2.f32 %v9657_v49 }
 0x83a   :  { %12948 = vpow2.f32 %v9661_v50  ;;  %9474 = vmatpush1.bf16.msra.mxu1 %v12826_v38  ;;  %11627 = vmatpush3.bf16.msra.mxu0 %v12829_v43 }
 0x83b   :  { %12950 = vpow2.f32 %v9659_v53  ;;  %9475 = vmatprep.subr.bf16.mxu1 %v12832_v48  ;;  %11628 = vmatprep.subr.bf16.mxu0 %v13243_v5 }
 0x83c   :  { %12952 = vpow2.f32 %v9663_v54 }
 0x83e   :  { %9476 = vmatpush1.bf16.msra.mxu1 %v12830_v55  ;;  %11629 = vmatpush3.bf16.msra.mxu0 %v12833_v56 }
 0x841   :  { %9494 = vmatmul.mubr.bf16.vlgmr.msra.gmra.mrb[128].mxu1 %v13434_v19  ;;  %11631 = vmatmul.mubr.bf16.vlgmr.msra.gmra.mrb[120].mxu0 %v13434_v19 }
 0x843   :  { %v12947_v57 = vpop.eup %12946 }
 0x844   :  { %v12949_v58 = vpop.eup %12948  ;;  %v9747_v59 = vadd.f32 1.0, %v12947_v57 }
 0x845   :  { %v12951_v60 = vpop.eup %12950  ;;  %v9749_v61 = vadd.f32 1.0, %v12949_v58 }
 0x846   :  { %v12953_v62 = vpop.eup %12952  ;;  %12954 = vrcp.f32 %v9747_v59  ;;  %v9748_v63 = vadd.f32 1.0, %v12951_v60 }
 0x847   :  { %12956 = vrcp.f32 %v9749_v61  ;;  %v9750_v0 = vadd.f32 1.0, %v12953_v62 }
 0x848   :  { %12958 = vrcp.f32 %v9748_v63 }
 0x849   :  { %12960 = vrcp.f32 %v9750_v0 }
 0x850   :  { %v12955_v5 = vpop.eup %12954 }
 0x851   :  { %v12957_v1 = vpop.eup %12956  ;;  %9865 = vst [vmem:[#allocation11 + $0xe0] sm:$0xff] %v12955_v5 }
 0x852   :  { %v12959_v2 = vpop.eup %12958  ;;  %9867 = vst [vmem:[#allocation11 + $0xf0] sm:$0xff] %v12957_v1 }
 0x853   :  { %v12961_v3 = vpop.eup %12960  ;;  %9866 = vst [vmem:[#allocation11 + $0xe8] sm:$0xff] %v12959_v2 }
 0x854   :  { %9868 = vst [vmem:[#allocation11 + $0xf8] sm:$0xff] %v12961_v3  ;;  %v9003_v19 = vpop.f32.mrb[104].mxu1  ;;  %v9044_v4 = vpop.f32.mrb[96].mxu0 }
 0x855   :  { %v9574_v6 = vsub.f32 0.0, %v9003_v19  ;;  %v9576_v7 = vsub.f32 0.0, %v9044_v4  ;;  %v9005_v8 = vpop.f32.mrb[105].mxu1  ;;  %v9046_v9 = vpop.f32.mrb[97].mxu0 }
 0x856   :  { %v9575_v11 = vsub.f32 0.0, %v9005_v8  ;;  %v9577_v12 = vsub.f32 0.0, %v9046_v9  ;;  %v9007_v13 = vpop.f32.mrb[106].mxu1  ;;  %v9048_v14 = vpop.f32.mrb[98].mxu0 }
 0x857   :  { %v9665_v15 = vmul.f32 1.442695, %v9574_v6  ;;  %v9669_v16 = vmul.f32 1.442695, %v9576_v7  ;;  %v9008_v17 = vpop.f32.mrb[107].mxu1  ;;  %v9049_v18 = vpop.f32.mrb[99].mxu0 }
 0x858   :  { %v9667_v20 = vmul.f32 1.442695, %v9575_v11  ;;  %v9671_v21 = vmul.f32 1.442695, %v9577_v12 }
 0x859   :  { %12962 = vpow2.f32 %v9665_v15 }
 0x85a   :  { %12964 = vpow2.f32 %v9669_v16 }
 0x85b   :  { %12966 = vpow2.f32 %v9667_v20 }
 0x85c   :  { %12968 = vpow2.f32 %v9671_v21 }
 0x863   :  { %v12963_v22 = vpop.eup %12962 }
 0x864   :  { %v12965_v23 = vpop.eup %12964  ;;  %v9751_v10 = vadd.f32 1.0, %v12963_v22 }
 0x865   :  { %v12967_v24 = vpop.eup %12966  ;;  %v9753_v25 = vadd.f32 1.0, %v12965_v23 }
 0x866   :  { %v12969_v26 = vpop.eup %12968  ;;  %12970 = vrcp.f32 %v9751_v10  ;;  %v9752_v27 = vadd.f32 1.0, %v12967_v24 }
 0x867   :  { %12972 = vrcp.f32 %v9753_v25  ;;  %v9754_v28 = vadd.f32 1.0, %v12969_v26 }
 0x868   :  { %12974 = vrcp.f32 %v9752_v27 }
 0x869   :  { %12976 = vrcp.f32 %v9754_v28 }
 0x870   :  { %v12971_v29 = vpop.eup %12970 }
 0x871   :  { %v12973_v30 = vpop.eup %12972  ;;  %9869 = vst [vmem:[#allocation11 + $0x100] sm:$0xff] %v12971_v29 }
 0x872   :  { %v12975_v31 = vpop.eup %12974  ;;  %9871 = vst [vmem:[#allocation11 + $0x110] sm:$0xff] %v12973_v30 }
 0x873   :  { %v12977_v32 = vpop.eup %12976  ;;  %9870 = vst [vmem:[#allocation11 + $0x108] sm:$0xff] %v12975_v31 }
 0x874   :  { %9872 = vst [vmem:[#allocation11 + $0x118] sm:$0xff] %v12977_v32  ;;  %v9085_v33 = vpop.f32.mrb[108].mxu1  ;;  %v9126_v34 = vpop.f32.mrb[100].mxu0 }
 0x875   :  { %v9578_v35 = vsub.f32 0.0, %v9085_v33  ;;  %v9580_v36 = vsub.f32 0.0, %v9126_v34  ;;  %v9087_v37 = vpop.f32.mrb[109].mxu1  ;;  %v9128_v38 = vpop.f32.mrb[101].mxu0 }
 0x876   :  { %v9579_v39 = vsub.f32 0.0, %v9087_v37  ;;  %v9581_v40 = vsub.f32 0.0, %v9128_v38  ;;  %v9089_v41 = vpop.f32.mrb[110].mxu1  ;;  %v9130_v42 = vpop.f32.mrb[102].mxu0 }
 0x877   :  { %v9673_v43 = vmul.f32 1.442695, %v9578_v35  ;;  %v9677_v44 = vmul.f32 1.442695, %v9580_v36  ;;  %v9090_v45 = vpop.f32.mrb[111].mxu1  ;;  %v9131_v46 = vpop.f32.mrb[103].mxu0 }
 0x878   :  { %v9675_v47 = vmul.f32 1.442695, %v9579_v39  ;;  %v9679_v48 = vmul.f32 1.442695, %v9581_v40 }
 0x879   :  { %12978 = vpow2.f32 %v9673_v43 }
 0x87a   :  { %12980 = vpow2.f32 %v9677_v44 }
 0x87b   :  { %12982 = vpow2.f32 %v9675_v47 }
 0x87c   :  { %12984 = vpow2.f32 %v9679_v48 }
 0x883   :  { %v12979_v49 = vpop.eup %12978 }
 0x884   :  { %v12981_v50 = vpop.eup %12980  ;;  %v9755_v51 = vadd.f32 1.0, %v12979_v49 }
 0x885   :  { %v12983_v52 = vpop.eup %12982  ;;  %v9757_v53 = vadd.f32 1.0, %v12981_v50 }
 0x886   :  { %v12985_v54 = vpop.eup %12984  ;;  %12986 = vrcp.f32 %v9755_v51  ;;  %v9756_v55 = vadd.f32 1.0, %v12983_v52 }
 0x887   :  { %12988 = vrcp.f32 %v9757_v53  ;;  %v9758_v56 = vadd.f32 1.0, %v12985_v54 }
 0x888   :  { %12990 = vrcp.f32 %v9756_v55 }
 0x889   :  { %12992 = vrcp.f32 %v9758_v56 }
 0x890   :  { %v12987_v57 = vpop.eup %12986 }
 0x891   :  { %v12989_v58 = vpop.eup %12988  ;;  %9873 = vst [vmem:[#allocation11 + $0x120] sm:$0xff] %v12987_v57 }
 0x892   :  { %v12991_v59 = vpop.eup %12990  ;;  %9875 = vst [vmem:[#allocation11 + $0x130] sm:$0xff] %v12989_v58 }
 0x893   :  { %v12993_v60 = vpop.eup %12992  ;;  %9874 = vst [vmem:[#allocation11 + $0x128] sm:$0xff] %v12991_v59 }
 0x894   :  { %9876 = vst [vmem:[#allocation11 + $0x138] sm:$0xff] %v12993_v60  ;;  %v9167_v61 = vpop.f32.mrb[112].mxu1  ;;  %v9208_v62 = vpop.f32.mrb[104].mxu0 }
 0x895   :  { %v9582_v63 = vsub.f32 0.0, %v9167_v61  ;;  %v9584_v0 = vsub.f32 0.0, %v9208_v62  ;;  %v9169_v5 = vpop.f32.mrb[113].mxu1  ;;  %v9210_v1 = vpop.f32.mrb[105].mxu0 }
 0x896   :  { %v9583_v2 = vsub.f32 0.0, %v9169_v5  ;;  %v9585_v3 = vsub.f32 0.0, %v9210_v1  ;;  %v9171_v19 = vpop.f32.mrb[114].mxu1  ;;  %v9212_v4 = vpop.f32.mrb[106].mxu0 }
 0x897   :  { %v9681_v6 = vmul.f32 1.442695, %v9582_v63  ;;  %v9685_v7 = vmul.f32 1.442695, %v9584_v0  ;;  %v9172_v8 = vpop.f32.mrb[115].mxu1  ;;  %v9213_v9 = vpop.f32.mrb[107].mxu0 }
 0x898   :  { %v9683_v11 = vmul.f32 1.442695, %v9583_v2  ;;  %v9687_v12 = vmul.f32 1.442695, %v9585_v3 }
 0x899   :  { %12994 = vpow2.f32 %v9681_v6 }
 0x89a   :  { %12996 = vpow2.f32 %v9685_v7 }
 0x89b   :  { %12998 = vpow2.f32 %v9683_v11 }
 0x89c   :  { %13000 = vpow2.f32 %v9687_v12 }
 0x8a3   :  { %v12995_v13 = vpop.eup %12994 }
 0x8a4   :  { %v12997_v14 = vpop.eup %12996  ;;  %v9759_v15 = vadd.f32 1.0, %v12995_v13 }
 0x8a5   :  { %v12999_v16 = vpop.eup %12998  ;;  %v9761_v17 = vadd.f32 1.0, %v12997_v14 }
 0x8a6   :  { %v13001_v18 = vpop.eup %13000  ;;  %13002 = vrcp.f32 %v9759_v15  ;;  %v9760_v20 = vadd.f32 1.0, %v12999_v16 }
 0x8a7   :  { %13004 = vrcp.f32 %v9761_v17  ;;  %v9762_v21 = vadd.f32 1.0, %v13001_v18 }
 0x8a8   :  { %13006 = vrcp.f32 %v9760_v20 }
 0x8a9   :  { %13008 = vrcp.f32 %v9762_v21 }
 0x8b0   :  { %v13003_v22 = vpop.eup %13002 }
 0x8b1   :  { %v13005_v23 = vpop.eup %13004  ;;  %9877 = vst [vmem:[#allocation11 + $0x140] sm:$0xff] %v13003_v22 }
 0x8b2   :  { %v13007_v10 = vpop.eup %13006  ;;  %9879 = vst [vmem:[#allocation11 + $0x150] sm:$0xff] %v13005_v23 }
 0x8b3   :  { %v13009_v24 = vpop.eup %13008  ;;  %9878 = vst [vmem:[#allocation11 + $0x148] sm:$0xff] %v13007_v10 }
 0x8b4   :  { %9880 = vst [vmem:[#allocation11 + $0x158] sm:$0xff] %v13009_v24  ;;  %v9249_v25 = vpop.f32.mrb[116].mxu1  ;;  %v9290_v26 = vpop.f32.mrb[108].mxu0 }
 0x8b5   :  { %v9586_v27 = vsub.f32 0.0, %v9249_v25  ;;  %v9588_v28 = vsub.f32 0.0, %v9290_v26  ;;  %v9251_v29 = vpop.f32.mrb[117].mxu1  ;;  %v9292_v30 = vpop.f32.mrb[109].mxu0 }
 0x8b6   :  { %13191 = shalt.err (!%p13188_p2)
}
 0x8b7   :  { %s13192_s17 = scalar_lea.hbm %s13535_s8, 128 }
 0x8b8   :  { %p13193_p3 = scmp.ne.s32.totalorder %s13535_s8, %s13192_s17  ;;  %p13196_p4 = scmp.lt.u32.totalorder %s13192_s17, %s13535_s8 }
 0x8ba   :  { %p13198_p5 = pnand %p13196_p4, %p13193_p3 }
 0x8bc   :  { %13201 = shalt.err (!%p13198_p5)
}
 0x8bd   :  { %9916 = dma.vmem_to_hbm [thread:$0]  %s9914_s3, 128, %s13535_s8, [#allocation13]   ;;  %v9587_v31 = vsub.f32 0.0, %v9251_v29  ;;  %v9589_v32 = vsub.f32 0.0, %v9292_v30  ;;  %v9253_v33 = vpop.f32.mrb[118].mxu1  ;;  %v9294_v34 = vpop.f32.mrb[110].mxu0 }
 0x8be   :  { %v9689_v35 = vmul.f32 1.442695, %v9586_v27  ;;  %v9693_v36 = vmul.f32 1.442695, %v9588_v28  ;;  %v9254_v37 = vpop.f32.mrb[119].mxu1  ;;  %v9295_v38 = vpop.f32.mrb[111].mxu0 }
 0x8bf   :  { %v9691_v39 = vmul.f32 1.442695, %v9587_v31  ;;  %v9695_v40 = vmul.f32 1.442695, %v9589_v32  ;;  %s13247_s8 = smov [#allocation11]  }
 0x8c0   :  { %13010 = vpow2.f32 %v9689_v35  ;;  %s9903_s16 = sshll.u32 %s13247_s8, 4  ;;  %s9904_s16 = int_to_ptr.vmem [resolvable:$true] %s9903_s16 }
 0x8c1   :  { %13012 = vpow2.f32 %v9693_v36  ;;  %s13202_s20 = scalar_lea.vmem %s9904_s16, 7552  ;;  %p13207_p7 = scmp.lt.s32.totalorder %s9904_s16, %s9904_s16 }
 0x8c2   :  { %13014 = vpow2.f32 %v9691_v39  ;;  %p13203_p6 = scmp.ne.s32.totalorder %s9904_s16, %s13202_s20  ;;  %p13208_p8 = scmp.lt.s32.totalorder %s13202_s20, %s13202_s20 }
 0x8c3   :  { %13016 = vpow2.f32 %v9695_v40 }
 0x8c4   :  { %p13209_p9 = por %p13208_p8, %p13207_p7 }
 0x8c6   :  { %p13210_p10 = pnand %p13209_p9, %p13203_p6 }
 0x8ca   :  { %v13011_v41 = vpop.eup %13010 }
 0x8cb   :  { %v13013_v42 = vpop.eup %13012  ;;  %v9763_v43 = vadd.f32 1.0, %v13011_v41 }
 0x8cc   :  { %v13015_v44 = vpop.eup %13014  ;;  %v9765_v45 = vadd.f32 1.0, %v13013_v42 }
 0x8cd   :  { %v13017_v46 = vpop.eup %13016  ;;  %13018 = vrcp.f32 %v9763_v43  ;;  %v9764_v47 = vadd.f32 1.0, %v13015_v44 }
 0x8ce   :  { %13020 = vrcp.f32 %v9765_v45  ;;  %v9766_v48 = vadd.f32 1.0, %v13017_v46 }
 0x8cf   :  { %13022 = vrcp.f32 %v9764_v47 }
 0x8d0   :  { %13024 = vrcp.f32 %v9766_v48 }
 0x8d4   :  { %v9331_v53 = vpop.f32.mrb[120].mxu1  ;;  %v9372_v54 = vpop.f32.mrb[112].mxu0 }
 0x8d5   :  { %v9590_v55 = vsub.f32 0.0, %v9331_v53  ;;  %v9592_v56 = vsub.f32 0.0, %v9372_v54  ;;  %v9333_v57 = vpop.f32.mrb[121].mxu1  ;;  %v9374_v58 = vpop.f32.mrb[113].mxu0 }
 0x8d6   :  { %v9591_v59 = vsub.f32 0.0, %v9333_v57  ;;  %v9593_v60 = vsub.f32 0.0, %v9374_v58  ;;  %v9335_v61 = vpop.f32.mrb[122].mxu1  ;;  %v9376_v62 = vpop.f32.mrb[114].mxu0 }
 0x8d7   :  { %v13019_v49 = vpop.eup %13018  ;;  %v9697_v63 = vmul.f32 1.442695, %v9590_v55  ;;  %v9701_v0 = vmul.f32 1.442695, %v9592_v56  ;;  %v9336_v5 = vpop.f32.mrb[123].mxu1 }
 0x8d8   :  { %v13021_v50 = vpop.eup %13020  ;;  %9881 = vst [vmem:[#allocation11 + $0x160] sm:$0xff] %v13019_v49  ;;  %v9377_v1 = vpop.f32.mrb[115].mxu0  ;;  %v9699_v2 = vmul.f32 1.442695, %v9591_v59  ;;  %v9703_v3 = vmul.f32 1.442695, %v9593_v60 }
 0x8d9   :  { %v13023_v51 = vpop.eup %13022  ;;  %9883 = vst [vmem:[#allocation11 + $0x170] sm:$0xff] %v13021_v50  ;;  %13026 = vpow2.f32 %v9697_v63 }
 0x8da   :  { %v13025_v52 = vpop.eup %13024  ;;  %9882 = vst [vmem:[#allocation11 + $0x168] sm:$0xff] %v13023_v51  ;;  %13028 = vpow2.f32 %v9701_v0 }
 0x8db   :  { %9884 = vst [vmem:[#allocation11 + $0x178] sm:$0xff] %v13025_v52  ;;  %13030 = vpow2.f32 %v9699_v2 }
 0x8dc   :  { %13032 = vpow2.f32 %v9703_v3 }
 0x8e3   :  { %v13027_v19 = vpop.eup %13026 }
 0x8e4   :  { %v13029_v4 = vpop.eup %13028  ;;  %v9767_v6 = vadd.f32 1.0, %v13027_v19 }
 0x8e5   :  { %v13031_v7 = vpop.eup %13030  ;;  %v9769_v8 = vadd.f32 1.0, %v13029_v4 }
 0x8e6   :  { %v13033_v9 = vpop.eup %13032  ;;  %13034 = vrcp.f32 %v9767_v6  ;;  %v9768_v11 = vadd.f32 1.0, %v13031_v7 }
 0x8e7   :  { %13036 = vrcp.f32 %v9769_v8  ;;  %v9770_v12 = vadd.f32 1.0, %v13033_v9 }
 0x8e8   :  { %13038 = vrcp.f32 %v9768_v11 }
 0x8e9   :  { %13040 = vrcp.f32 %v9770_v12 }
 0x8f0   :  { %v13035_v13 = vpop.eup %13034 }
 0x8f1   :  { %v13037_v14 = vpop.eup %13036  ;;  %9885 = vst [vmem:[#allocation11 + $0x180] sm:$0xff] %v13035_v13 }
 0x8f2   :  { %v13039_v15 = vpop.eup %13038  ;;  %9887 = vst [vmem:[#allocation11 + $0x190] sm:$0xff] %v13037_v14 }
 0x8f3   :  { %v13041_v16 = vpop.eup %13040  ;;  %9886 = vst [vmem:[#allocation11 + $0x188] sm:$0xff] %v13039_v15 }
 0x8f4   :  { %9888 = vst [vmem:[#allocation11 + $0x198] sm:$0xff] %v13041_v16  ;;  %v9413_v17 = vpop.f32.mrb[124].mxu1  ;;  %v9454_v18 = vpop.f32.mrb[116].mxu0 }
 0x8f5   :  { %v9594_v20 = vsub.f32 0.0, %v9413_v17  ;;  %v9596_v21 = vsub.f32 0.0, %v9454_v18  ;;  %v9415_v22 = vpop.f32.mrb[125].mxu1  ;;  %v9456_v23 = vpop.f32.mrb[117].mxu0 }
 0x8f6   :  { %v9595_v10 = vsub.f32 0.0, %v9415_v22  ;;  %v9597_v24 = vsub.f32 0.0, %v9456_v23  ;;  %v9417_v25 = vpop.f32.mrb[126].mxu1  ;;  %v9458_v26 = vpop.f32.mrb[118].mxu0 }
 0x8f7   :  { %v9705_v27 = vmul.f32 1.442695, %v9594_v20  ;;  %v9709_v28 = vmul.f32 1.442695, %v9596_v21  ;;  %v9418_v29 = vpop.f32.mrb[127].mxu1  ;;  %v9459_v30 = vpop.f32.mrb[119].mxu0 }
 0x8f8   :  { %v9707_v31 = vmul.f32 1.442695, %v9595_v10  ;;  %v9711_v32 = vmul.f32 1.442695, %v9597_v24 }
 0x8f9   :  { %13042 = vpow2.f32 %v9705_v27 }
 0x8fa   :  { %13044 = vpow2.f32 %v9709_v28 }
 0x8fb   :  { %13046 = vpow2.f32 %v9707_v31 }
 0x8fc   :  { %13048 = vpow2.f32 %v9711_v32 }
 0x903   :  { %v13043_v33 = vpop.eup %13042 }
 0x904   :  { %v13045_v34 = vpop.eup %13044  ;;  %v9771_v35 = vadd.f32 1.0, %v13043_v33 }
 0x905   :  { %v13047_v36 = vpop.eup %13046  ;;  %v9773_v37 = vadd.f32 1.0, %v13045_v34 }
 0x906   :  { %v13049_v38 = vpop.eup %13048  ;;  %13050 = vrcp.f32 %v9771_v35  ;;  %v9772_v39 = vadd.f32 1.0, %v13047_v36 }
 0x907   :  { %13052 = vrcp.f32 %v9773_v37  ;;  %v9774_v40 = vadd.f32 1.0, %v13049_v38 }
 0x908   :  { %13054 = vrcp.f32 %v9772_v39 }
 0x909   :  { %13056 = vrcp.f32 %v9774_v40 }
 0x910   :  { %v13051_v41 = vpop.eup %13050 }
 0x911   :  { %v13053_v42 = vpop.eup %13052  ;;  %9889 = vst [vmem:[#allocation11 + $0x1a0] sm:$0xff] %v13051_v41 }
 0x912   :  { %v13055_v43 = vpop.eup %13054  ;;  %9891 = vst [vmem:[#allocation11 + $0x1b0] sm:$0xff] %v13053_v42 }
 0x913   :  { %v13057_v44 = vpop.eup %13056  ;;  %9890 = vst [vmem:[#allocation11 + $0x1a8] sm:$0xff] %v13055_v43 }
 0x914   :  { %9892 = vst [vmem:[#allocation11 + $0x1b8] sm:$0xff] %v13057_v44  ;;  %v9495_v45 = vpop.f32.mrb[128].mxu1  ;;  %v9536_v46 = vpop.f32.mrb[120].mxu0 }
 0x915   :  { %v9598_v47 = vsub.f32 0.0, %v9495_v45  ;;  %v9600_v48 = vsub.f32 0.0, %v9536_v46  ;;  %v9497_v49 = vpop.f32.mrb[129].mxu1  ;;  %v11632_v50 = vpop.f32.mrb[121].mxu0 }
 0x916   :  { %v9599_v51 = vsub.f32 0.0, %v9497_v49  ;;  %v9499_v52 = vpop.f32.mrb[130].mxu1  ;;  %v9539_v53 = vpop.f32.mrb[122].mxu0 }
 0x917   :  { %v9713_v54 = vmul.f32 1.442695, %v9598_v47  ;;  %v9717_v55 = vmul.f32 1.442695, %v9600_v48  ;;  %v9500_v56 = vpop.f32.mrb[131].mxu1  ;;  %v11633_v57 = vpop.f32.mrb[123].mxu0 }
 0x918   :  { %v9715_v58 = vmul.f32 1.442695, %v9599_v51 }
 0x919   :  { %13058 = vpow2.f32 %v9713_v54 }
 0x91a   :  { %13060 = vpow2.f32 %v9717_v55 }
 0x91b   :  { %13062 = vpow2.f32 %v9715_v58 }
 0x923   :  { %v13059_v59 = vpop.eup %13058 }
 0x924   :  { %v13061_v60 = vpop.eup %13060  ;;  %v9775_v61 = vadd.f32 1.0, %v13059_v59 }
 0x925   :  { %v13063_v62 = vpop.eup %13062  ;;  %v9777_v63 = vadd.f32 1.0, %v13061_v60 }
 0x926   :  { %13064 = vrcp.f32 %v9775_v61  ;;  %v9776_v0 = vadd.f32 1.0, %v13063_v62 }
 0x927   :  { %13066 = vrcp.f32 %v9777_v63 }
 0x928   :  { %13068 = vrcp.f32 %v9776_v0 }
 0x930   :  { %v13065_v5 = vpop.eup %13064 }
 0x931   :  { %v13067_v1 = vpop.eup %13066  ;;  %9893 = vst [vmem:[#allocation11 + $0x1c0] sm:$0xff] %v13065_v5 }
 0x932   :  { %v13069_v2 = vpop.eup %13068  ;;  %9895 = vst [vmem:[#allocation11 + $0x1d0] sm:$0xff] %v13067_v1 }
 0x933   :  { %9894 = vst [vmem:[#allocation11 + $0x1c8] sm:$0xff] %v13069_v2 }
 0x934   :  { %13213 = shalt.err (!%p13210_p10)
}
 0x935   :  { %s13214_s24 = scalar_lea.hbm %s13534_s7, 7552 }
 0x936   :  { %p13215_p11 = scmp.ne.s32.totalorder %s13534_s7, %s13214_s24  ;;  %p13218_p12 = scmp.lt.u32.totalorder %s13214_s24, %s13534_s7 }
 0x938   :  { %p13220_p13 = pnand %p13218_p12, %p13215_p11 }
 0x93a   :  { %13223 = shalt.err (!%p13220_p13)
}
 0x93b   :  { %9906 = dma.vmem_to_hbm [thread:$0]  %s9904_s16, 7552, %s13534_s7, [#allocation4]  }
 0x93c   :  { %13230 = dma.done.wait [#allocation4], 7552  }
 0x93d   :  { %13231 = vsyncadd [#allocation4], 4294959744 }
 0x93e   :  { %13232 = dma.done.wait [#allocation13], 128  }
 0x93f   :  { %13233 = vsyncadd [#allocation13], 4294967168 }
 0x940   :  { %9923 = vsyncpa [#allocation3], 1 }
 0x941   :  { %9924 = vsyncpa [#allocation6], 1 }
 0x942   :  { %9925 = vsyncpa [#allocation9], 1 }
 0x943   :  { %9926 = vsyncpa [#allocation4], 1 }
 0x944   :  { %9927 = vsyncpa [#allocation13], 1 }

</bundles_post_ra>
